<compile_context>
chip_gen: v5e
topology: v5e:2x2
jax: 0.10.0
libtpu: 0.0.40
codegen_flags: <defaults>
</compile_context>

<pallas_src>
import functools

import jax
import jax.numpy as jnp
from jax.experimental import pallas as pl
from jax.experimental.pallas import tpu as pltpu


def _msa_kernel(x_ref, mpool_ref, ecat_ref, w1bd_ref, b1_ref, w3all_ref,
                b3_ref, mask_ref, gnw_ref, gnb_ref, gsum_ref, out_ref,
                *, h, w, cg, eps):
    f32 = jnp.float32
    hw = h * w
    x = x_ref[...]                                            # (R, hw), lane-dense

    # --- directional avg pools + shared 1x1 conv + sigmoid gates (MXU + EUP) --
    pooled = jnp.dot(x, mpool_ref[...], preferred_element_type=f32)        # (R, h+w)
    mixed = jnp.dot(w1bd_ref[...], pooled, preferred_element_type=f32) + b1_ref[...]
    gates = jax.nn.sigmoid(mixed)                                          # (R, h+w)
    # single fused broadcast-back matmul; split (R, 2*hw) with static lane slices
    gate_hw = jnp.dot(gates, ecat_ref[...], preferred_element_type=f32)    # (R, 2hw)
    x1 = x * gate_hw[:, :hw] * gate_hw[:, hw:]

    # --- GroupNorm (cg groups of 1 channel == per-row norm), single pass ------
    inv_hw = 1.0 / hw
    s1 = jnp.sum(x1, axis=-1, keepdims=True)
    s2 = jnp.sum(x1 * x1, axis=-1, keepdims=True)
    mu = s1 * inv_hw
    var = jnp.maximum(s2 * inv_hw - mu * mu, 0.0)
    scale = jax.lax.rsqrt(var + eps) * gnw_ref[...]
    x1 = x1 * scale + (gnb_ref[...] - mu * scale)

    # --- 3x3 conv: 9 taps = XLU roll + (1,hw) zero-halo mask, then ONE fused
    #     big-K block-diagonal channel-mix matmul on the MXU ------------------
    taps = []
    t = 0
    for dy in (-1, 0, 1):
        for dx in (-1, 0, 1):
            off = dy * w + dx
            sh = x if off == 0 else pltpu.roll(x, shift=(-off) % hw, axis=1)
            if dy != 0 or dx != 0:
                sh = sh * mask_ref[t]                          # (1, hw) halo mask
            taps.append(sh)
            t += 1
    stacked = jnp.concatenate(taps, axis=0)                    # (9R, hw)
    x2 = jnp.dot(w3all_ref[...], stacked, preferred_element_type=f32) + b3_ref[...]

    # --- per-slice channel softmax of spatial means (group ops via Gsum) ------
    gsum = gsum_ref[...]                                       # (R, R) kron(I, ones)
    inv_cg = 1.0 / cg
    a1 = jnp.sum(x1, axis=-1, keepdims=True) * inv_hw          # (R, 1)
    a2 = jnp.sum(x2, axis=-1, keepdims=True) * inv_hw
    # shift-invariant softmax: subtract the per-group mean (exact algebra)
    c1 = jnp.dot(gsum, a1, preferred_element_type=f32) * inv_cg
    c2 = jnp.dot(gsum, a2, preferred_element_type=f32) * inv_cg
    e1 = jnp.exp(a1 - c1)
    e2 = jnp.exp(a2 - c2)
    x11 = e1 / jnp.dot(gsum, e1, preferred_element_type=f32)
    x21 = e2 / jnp.dot(gsum, e2, preferred_element_type=f32)

    # --- per-slice channel contraction -> weight map -> gate the input --------
    wmap = jnp.dot(gsum, x11 * x2 + x21 * x1, preferred_element_type=f32)  # (R, hw)
    out_ref[...] = (x * jax.nn.sigmoid(wmap)).astype(out_ref.dtype)


def _default_num_blocks():
    """2 parallel grid steps on dual-TensorCore v7x, 1 on single-TC v5e/v6e."""
    try:
        kind = jax.devices()[0].device_kind.lower()
    except Exception:
        return 1
    if "v7" in kind or "7x" in kind:
        return 2
    return 1


def make_msa(params, x_shape, groups=8, num_blocks=None):
    """Build all constants once and return a jitted forward fn x -> MSA(x)."""
    w1, b1, w3, b3, gn_w, gn_b = params
    b, c, h, w = x_shape
    cg = c // groups
    bg = b * groups
    hw = h * w

    if num_blocks is None:
        num_blocks = _default_num_blocks()
    nblk = 1
    for cand in range(min(num_blocks, bg), 0, -1):
        if bg % cand == 0 and ((bg // cand) * cg) % 8 == 0:
            nblk = cand
            break
    bg_blk = bg // nblk
    r = bg_blk * cg                                  # rows (sublanes) per grid step

    # --- small constant operands (built once per parameter set) ---------------
    p = jnp.arange(hw)
    row = p // w
    col = p % w
    e_row = (row[None, :] == jnp.arange(h)[:, None]).astype(jnp.float32)   # (h, hw)
    e_col = (col[None, :] == jnp.arange(w)[:, None]).astype(jnp.float32)   # (w, hw)
    m_pool = jnp.concatenate([e_row.T / w, e_col.T / h], axis=1)           # (hw, h+w)
    e_row_full = jnp.concatenate([e_row, jnp.zeros((w, hw), jnp.float32)], axis=0)
    e_col_full = jnp.concatenate([jnp.zeros((h, hw), jnp.float32), e_col], axis=0)
    ecat = jnp.concatenate([e_row_full, e_col_full], axis=1)               # (h+w, 2hw)

    # zero-halo validity masks for the 9 taps (row-major (dy, dx) order)
    mask_list = []
    for dy in (-1, 0, 1):
        for dx in (-1, 0, 1):
            valid = ((row + dy >= 0) & (row + dy < h) &
                     (col + dx >= 0) & (col + dx < w))
            mask_list.append(valid.astype(jnp.float32))
    masks = jnp.stack(mask_list, axis=0).reshape(9, 1, hw)                 # (9,1,hw)

    # block-diagonal (per-slice) channel-mix / group-sum matrices
    eye_bg = jnp.eye(bg_blk, dtype=jnp.float32)
    w1bd = jnp.kron(eye_bg, w1[:, :, 0, 0].astype(jnp.float32))            # (r, r)
    w3taps = jnp.transpose(w3.astype(jnp.float32), (2, 3, 0, 1)).reshape(9, cg, cg)
    w3all = jnp.concatenate(
        [jnp.kron(eye_bg, w3taps[t]) for t in range(9)], axis=1)           # (r, 9r)
    gsum = jnp.kron(eye_bg, jnp.ones((cg, cg), jnp.float32))               # (r, r)

    def per_row(v):                       # tile a (cg,) param over the r rows
        return jnp.tile(v.astype(jnp.float32).reshape(1, cg), (bg_blk, 1)).reshape(r, 1)
    b1c, b3c, gnwc, gnbc = per_row(b1), per_row(b3), per_row(gn_w), per_row(gn_b)

    consts = (m_pool, ecat, w1bd, b1c, w3all, b3c, masks, gnwc, gnbc, gsum)

    kernel = functools.partial(_msa_kernel, h=h, w=w, cg=cg, eps=1e-5)

    def const_spec(arr):
        if nblk > 1:
            # v7x: constants are grid-invariant -> single-buffer them (halves
            # their VMEM footprint while both TensorCores run in parallel).
            return pl.BlockSpec(arr.shape, lambda i: (0,) * arr.ndim,
                                pipeline_mode=pl.Buffered(1))
        return pl.BlockSpec(arr.shape, lambda i: (0,) * arr.ndim)

    call = pl.pallas_call(
        kernel,
        out_shape=jax.ShapeDtypeStruct((bg * cg, hw), jnp.float32),
        grid=(nblk,),
        in_specs=[pl.BlockSpec((r, hw), lambda i: (i, 0))]
                 + [const_spec(a) for a in consts],
        out_specs=pl.BlockSpec((r, hw), lambda i: (i, 0)),
        compiler_params=pltpu.CompilerParams(dimension_semantics=("parallel",)),
    )

    @jax.jit
    def run(x):
        # NCHW -> (bg*cg, hw): pure reshape, no transpose; hw is the lane axis.
        x2d = x.reshape(bg * cg, hw).astype(jnp.float32)
        out2d = call(x2d, *consts)
        return out2d.reshape(b, c, h, w)

    return run


def msa_reference(x, params, groups=8):
    """Pure-JAX mirror of the PyTorch forward (NCHW) for correctness checking."""
    w1, b1, w3, b3, gn_w, gn_b = params
    b, c, h, w = x.shape
    gx = x.reshape(b * groups, c // groups, h, w)
    x_h = jnp.mean(gx, axis=3, keepdims=True)                     # (bg,cg,h,1)
    x_w = jnp.mean(gx, axis=2, keepdims=True)                     # (bg,cg,1,w)
    cat = jnp.concatenate([x_h, jnp.transpose(x_w, (0, 1, 3, 2))], axis=2)
    hw = jnp.einsum('oi,bisq->bosq', w1[:, :, 0, 0], cat,
                    precision=jax.lax.Precision.HIGHEST) + b1[None, :, None, None]
    xh_c, xw_c = hw[:, :, :h, :], hw[:, :, h:, :]
    x1 = gx * jax.nn.sigmoid(xh_c) * jax.nn.sigmoid(jnp.transpose(xw_c, (0, 1, 3, 2)))
    mu = jnp.mean(x1, axis=(2, 3), keepdims=True)
    var = jnp.mean((x1 - mu) ** 2, axis=(2, 3), keepdims=True)
    x1 = (x1 - mu) / jnp.sqrt(var + 1e-5) * gn_w[None, :, None, None] \
        + gn_b[None, :, None, None]
    x2 = jax.lax.conv_general_dilated(
        gx, w3, window_strides=(1, 1), padding=((1, 1), (1, 1)),
        dimension_numbers=('NCHW', 'OIHW', 'NCHW'),
        precision=jax.lax.Precision.HIGHEST) + b3[None, :, None, None]
    x11 = jax.nn.softmax(jnp.mean(x1, axis=(2, 3)), axis=-1)      # (bg,cg)
    x21 = jax.nn.softmax(jnp.mean(x2, axis=(2, 3)), axis=-1)
    wm = (jnp.einsum('bc,bchw->bhw', x11, x2, precision=jax.lax.Precision.HIGHEST)
          + jnp.einsum('bc,bchw->bhw', x21, x1, precision=jax.lax.Precision.HIGHEST))
    out = gx * jax.nn.sigmoid(wm)[:, None, :, :]
    return out.reshape(b, c, h, w)


if __name__ == "__main__":
    key = jax.random.PRNGKey(0)
    b, c, h, w, groups = 2, 32, 16, 16, 8
    cg = c // groups
    ks = jax.random.split(key, 7)

    x = jax.random.normal(ks[0], (b, c, h, w), jnp.float32)
    # Deterministic synthetic parameters (shapes from MSA.__init__, factor=8).
    w1 = 0.3 * jax.random.normal(ks[1], (cg, cg, 1, 1), jnp.float32)   # conv1x1
    b1 = 0.1 * jax.random.normal(ks[2], (cg,), jnp.float32)
    w3 = 0.2 * jax.random.normal(ks[3], (cg, cg, 3, 3), jnp.float32)   # conv3x3
    b3 = 0.1 * jax.random.normal(ks[4], (cg,), jnp.float32)
    gn_w = 1.0 + 0.1 * jax.random.normal(ks[5], (cg,), jnp.float32)    # GroupNorm affine
    gn_b = 0.1 * jax.random.normal(ks[6], (cg,), jnp.float32)
    params = (w1, b1, w3, b3, gn_w, gn_b)

    msa = make_msa(params, x.shape, groups=groups)      # constants built once here
    out = jax.block_until_ready(msa(x))
    ref = jax.block_until_ready(msa_reference(x, params, groups=groups))

    assert out.shape == (b, c, h, w)
    if not jnp.allclose(out, ref, atol=2e-3, rtol=2e-3):
        raise AssertionError(
            f"mismatch: max abs diff {float(jnp.max(jnp.abs(out - ref)))}")
    print("KERNEL_OK")
</pallas_src>

<mosaic_0001>
module attributes {stable_mosaic.version = 11 : i64} {
  func.func @_msa_kernel(%arg0: i32, %arg1: memref<64x256xf32, #tpu.memory_space<vmem>>, %arg2: memref<256x32xf32, #tpu.memory_space<vmem>>, %arg3: memref<32x512xf32, #tpu.memory_space<vmem>>, %arg4: memref<64x64xf32, #tpu.memory_space<vmem>>, %arg5: memref<64x1xf32, #tpu.memory_space<vmem>>, %arg6: memref<64x576xf32, #tpu.memory_space<vmem>>, %arg7: memref<64x1xf32, #tpu.memory_space<vmem>>, %arg8: memref<9x1x256xf32, #tpu.memory_space<vmem>>, %arg9: memref<64x1xf32, #tpu.memory_space<vmem>>, %arg10: memref<64x1xf32, #tpu.memory_space<vmem>>, %arg11: memref<64x64xf32, #tpu.memory_space<vmem>>, %arg12: memref<64x256xf32, #tpu.memory_space<vmem>>) attributes {dimension_semantics = [#tpu.dimension_semantics<parallel>], iteration_bounds = array<i64: 1>, scalar_prefetch = 0 : i64, scratch_operands = 0 : i64, tpu.core_type = #tpu.core_type<tc>, window_params = [{transform_indices = @transform_0, window_bounds = array<i64: 64, 256>}, {pipeline_mode = #tpu.pipeline_mode<synchronous>, transform_indices = @transform_1, window_bounds = array<i64: 256, 32>}, {pipeline_mode = #tpu.pipeline_mode<synchronous>, transform_indices = @transform_2, window_bounds = array<i64: 32, 512>}, {pipeline_mode = #tpu.pipeline_mode<synchronous>, transform_indices = @transform_3, window_bounds = array<i64: 64, 64>}, {pipeline_mode = #tpu.pipeline_mode<synchronous>, transform_indices = @transform_4, window_bounds = array<i64: 64, 1>}, {pipeline_mode = #tpu.pipeline_mode<synchronous>, transform_indices = @transform_5, window_bounds = array<i64: 64, 576>}, {pipeline_mode = #tpu.pipeline_mode<synchronous>, transform_indices = @transform_6, window_bounds = array<i64: 64, 1>}, {pipeline_mode = #tpu.pipeline_mode<synchronous>, transform_indices = @transform_7, window_bounds = array<i64: 9, 1, 256>}, {pipeline_mode = #tpu.pipeline_mode<synchronous>, transform_indices = @transform_8, window_bounds = array<i64: 64, 1>}, {pipeline_mode = #tpu.pipeline_mode<synchronous>, transform_indices = @transform_9, window_bounds = array<i64: 64, 1>}, {pipeline_mode = #tpu.pipeline_mode<synchronous>, transform_indices = @transform_10, window_bounds = array<i64: 64, 64>}, {transform_indices = @transform_11, window_bounds = array<i64: 64, 256>}]} {
    %c0 = arith.constant 0 : index
    %c0_0 = arith.constant 0 : index
    %0 = vector.load %arg1[%c0, %c0_0] : memref<64x256xf32, #tpu.memory_space<vmem>>, vector<64x256xf32>
    %c0_1 = arith.constant 0 : index
    %c0_2 = arith.constant 0 : index
    %1 = vector.load %arg2[%c0_1, %c0_2] : memref<256x32xf32, #tpu.memory_space<vmem>>, vector<256x32xf32>
    %cst = arith.constant dense<0.000000e+00> : vector<64x32xf32>
    %2 = tpu.matmul %0, %1, %cst {dimension_numbers = #tpu.dot_dimension_numbers<[1], [0], [0], [1], [0, 0, 1, 1], [], []>} : vector<64x256xf32>, vector<256x32xf32>, vector<64x32xf32> -> vector<64x32xf32>
    %c0_3 = arith.constant 0 : index
    %c0_4 = arith.constant 0 : index
    %3 = vector.load %arg4[%c0_3, %c0_4] : memref<64x64xf32, #tpu.memory_space<vmem>>, vector<64x64xf32>
    %cst_5 = arith.constant dense<0.000000e+00> : vector<64x32xf32>
    %4 = tpu.matmul %3, %2, %cst_5 {dimension_numbers = #tpu.dot_dimension_numbers<[1], [0], [0], [1], [0, 0, 1, 1], [], []>} : vector<64x64xf32>, vector<64x32xf32>, vector<64x32xf32> -> vector<64x32xf32>
    %c0_6 = arith.constant 0 : index
    %c0_7 = arith.constant 0 : index
    %5 = vector.load %arg5[%c0_6, %c0_7] : memref<64x1xf32, #tpu.memory_space<vmem>>, vector<64x1xf32>
    %6 = vector.broadcast %5 : vector<64x1xf32> to vector<64x32xf32>
    %7 = arith.addf %4, %6 : vector<64x32xf32>
    %8 = arith.negf %7 : vector<64x32xf32>
    %9 = math.exp %8 : vector<64x32xf32>
    %cst_8 = arith.constant 1.000000e+00 : f32
    %10 = vector.broadcast %cst_8 : f32 to vector<64x32xf32>
    %11 = arith.addf %10, %9 : vector<64x32xf32>
    %12 = arith.divf %10, %11 : vector<64x32xf32>
    %c0_9 = arith.constant 0 : index
    %c0_10 = arith.constant 0 : index
    %13 = vector.load %arg3[%c0_9, %c0_10] : memref<32x512xf32, #tpu.memory_space<vmem>>, vector<32x512xf32>
    %cst_11 = arith.constant dense<0.000000e+00> : vector<64x512xf32>
    %14 = tpu.matmul %12, %13, %cst_11 {dimension_numbers = #tpu.dot_dimension_numbers<[1], [0], [0], [1], [0, 0, 1, 1], [], []>} : vector<64x32xf32>, vector<32x512xf32>, vector<64x512xf32> -> vector<64x512xf32>
    %15 = vector.extract_strided_slice %14 {offsets = [0, 0], sizes = [64, 256], strides = [1, 1]} : vector<64x512xf32> to vector<64x256xf32>
    %16 = arith.mulf %0, %15 : vector<64x256xf32>
    %17 = vector.extract_strided_slice %14 {offsets = [0, 256], sizes = [64, 256], strides = [1, 1]} : vector<64x512xf32> to vector<64x256xf32>
    %18 = arith.mulf %16, %17 : vector<64x256xf32>
    %cst_12 = arith.constant dense<0.000000e+00> : vector<64xf32>
    %19 = vector.multi_reduction <add>, %18, %cst_12 [1] : vector<64x256xf32> to vector<64xf32>
    %20 = vector.shape_cast %19 : vector<64xf32> to vector<64x1xf32>
    %21 = arith.mulf %18, %18 : vector<64x256xf32>
    %cst_13 = arith.constant dense<0.000000e+00> : vector<64xf32>
    %22 = vector.multi_reduction <add>, %21, %cst_13 [1] : vector<64x256xf32> to vector<64xf32>
    %23 = vector.shape_cast %22 : vector<64xf32> to vector<64x1xf32>
    %cst_14 = arith.constant 3.906250e-03 : f32
    %24 = vector.broadcast %cst_14 : f32 to vector<64x1xf32>
    %25 = arith.mulf %20, %24 : vector<64x1xf32>
    %cst_15 = arith.constant 3.906250e-03 : f32
    %26 = vector.broadcast %cst_15 : f32 to vector<64x1xf32>
    %27 = arith.mulf %23, %26 : vector<64x1xf32>
    %28 = arith.mulf %25, %25 : vector<64x1xf32>
    %29 = arith.subf %27, %28 : vector<64x1xf32>
    %cst_16 = arith.constant 0.000000e+00 : f32
    %30 = vector.broadcast %cst_16 : f32 to vector<64x1xf32>
    %31 = arith.maximumf %29, %30 : vector<64x1xf32>
    %cst_17 = arith.constant 9.99999974E-6 : f32
    %32 = vector.broadcast %cst_17 : f32 to vector<64x1xf32>
    %33 = arith.addf %31, %32 : vector<64x1xf32>
    %34 = math.rsqrt %33 : vector<64x1xf32>
    %c0_18 = arith.constant 0 : index
    %c0_19 = arith.constant 0 : index
    %35 = vector.load %arg9[%c0_18, %c0_19] : memref<64x1xf32, #tpu.memory_space<vmem>>, vector<64x1xf32>
    %36 = arith.mulf %34, %35 : vector<64x1xf32>
    %37 = vector.broadcast %36 : vector<64x1xf32> to vector<64x256xf32>
    %38 = arith.mulf %18, %37 : vector<64x256xf32>
    %c0_20 = arith.constant 0 : index
    %c0_21 = arith.constant 0 : index
    %39 = vector.load %arg10[%c0_20, %c0_21] : memref<64x1xf32, #tpu.memory_space<vmem>>, vector<64x1xf32>
    %40 = arith.mulf %25, %36 : vector<64x1xf32>
    %41 = arith.subf %39, %40 : vector<64x1xf32>
    %42 = vector.broadcast %41 : vector<64x1xf32> to vector<64x256xf32>
    %43 = arith.addf %38, %42 : vector<64x256xf32>
    %c17_i32 = arith.constant 17 : i32
    %44 = tpu.dynamic_rotate %0 by %c17_i32 dim 1 : vector<64x256xf32>, i32 -> vector<64x256xf32>
    %c0_22 = arith.constant 0 : index
    %c0_23 = arith.constant 0 : index
    %c0_24 = arith.constant 0 : index
    %45 = vector.load %arg8[%c0_22, %c0_23, %c0_24] : memref<9x1x256xf32, #tpu.memory_space<vmem>>, vector<1x1x256xf32>
    %46 = vector.shape_cast %45 : vector<1x1x256xf32> to vector<1x256xf32>
    %47 = vector.broadcast %46 : vector<1x256xf32> to vector<64x256xf32>
    %48 = arith.mulf %44, %47 : vector<64x256xf32>
    %c16_i32 = arith.constant 16 : i32
    %49 = tpu.dynamic_rotate %0 by %c16_i32 dim 1 : vector<64x256xf32>, i32 -> vector<64x256xf32>
    %c1 = arith.constant 1 : index
    %c0_25 = arith.constant 0 : index
    %c0_26 = arith.constant 0 : index
    %50 = vector.load %arg8[%c1, %c0_25, %c0_26] : memref<9x1x256xf32, #tpu.memory_space<vmem>>, vector<1x1x256xf32>
    %51 = vector.shape_cast %50 : vector<1x1x256xf32> to vector<1x256xf32>
    %52 = vector.broadcast %51 : vector<1x256xf32> to vector<64x256xf32>
    %53 = arith.mulf %49, %52 : vector<64x256xf32>
    %c15_i32 = arith.constant 15 : i32
    %54 = tpu.dynamic_rotate %0 by %c15_i32 dim 1 : vector<64x256xf32>, i32 -> vector<64x256xf32>
    %c2 = arith.constant 2 : index
    %c0_27 = arith.constant 0 : index
    %c0_28 = arith.constant 0 : index
    %55 = vector.load %arg8[%c2, %c0_27, %c0_28] : memref<9x1x256xf32, #tpu.memory_space<vmem>>, vector<1x1x256xf32>
    %56 = vector.shape_cast %55 : vector<1x1x256xf32> to vector<1x256xf32>
    %57 = vector.broadcast %56 : vector<1x256xf32> to vector<64x256xf32>
    %58 = arith.mulf %54, %57 : vector<64x256xf32>
    %c1_i32 = arith.constant 1 : i32
    %59 = tpu.dynamic_rotate %0 by %c1_i32 dim 1 : vector<64x256xf32>, i32 -> vector<64x256xf32>
    %c3 = arith.constant 3 : index
    %c0_29 = arith.constant 0 : index
    %c0_30 = arith.constant 0 : index
    %60 = vector.load %arg8[%c3, %c0_29, %c0_30] : memref<9x1x256xf32, #tpu.memory_space<vmem>>, vector<1x1x256xf32>
    %61 = vector.shape_cast %60 : vector<1x1x256xf32> to vector<1x256xf32>
    %62 = vector.broadcast %61 : vector<1x256xf32> to vector<64x256xf32>
    %63 = arith.mulf %59, %62 : vector<64x256xf32>
    %c255_i32 = arith.constant 255 : i32
    %64 = tpu.dynamic_rotate %0 by %c255_i32 dim 1 : vector<64x256xf32>, i32 -> vector<64x256xf32>
    %c5 = arith.constant 5 : index
    %c0_31 = arith.constant 0 : index
    %c0_32 = arith.constant 0 : index
    %65 = vector.load %arg8[%c5, %c0_31, %c0_32] : memref<9x1x256xf32, #tpu.memory_space<vmem>>, vector<1x1x256xf32>
    %66 = vector.shape_cast %65 : vector<1x1x256xf32> to vector<1x256xf32>
    %67 = vector.broadcast %66 : vector<1x256xf32> to vector<64x256xf32>
    %68 = arith.mulf %64, %67 : vector<64x256xf32>
    %c241_i32 = arith.constant 241 : i32
    %69 = tpu.dynamic_rotate %0 by %c241_i32 dim 1 : vector<64x256xf32>, i32 -> vector<64x256xf32>
    %c6 = arith.constant 6 : index
    %c0_33 = arith.constant 0 : index
    %c0_34 = arith.constant 0 : index
    %70 = vector.load %arg8[%c6, %c0_33, %c0_34] : memref<9x1x256xf32, #tpu.memory_space<vmem>>, vector<1x1x256xf32>
    %71 = vector.shape_cast %70 : vector<1x1x256xf32> to vector<1x256xf32>
    %72 = vector.broadcast %71 : vector<1x256xf32> to vector<64x256xf32>
    %73 = arith.mulf %69, %72 : vector<64x256xf32>
    %c240_i32 = arith.constant 240 : i32
    %74 = tpu.dynamic_rotate %0 by %c240_i32 dim 1 : vector<64x256xf32>, i32 -> vector<64x256xf32>
    %c7 = arith.constant 7 : index
    %c0_35 = arith.constant 0 : index
    %c0_36 = arith.constant 0 : index
    %75 = vector.load %arg8[%c7, %c0_35, %c0_36] : memref<9x1x256xf32, #tpu.memory_space<vmem>>, vector<1x1x256xf32>
    %76 = vector.shape_cast %75 : vector<1x1x256xf32> to vector<1x256xf32>
    %77 = vector.broadcast %76 : vector<1x256xf32> to vector<64x256xf32>
    %78 = arith.mulf %74, %77 : vector<64x256xf32>
    %c239_i32 = arith.constant 239 : i32
    %79 = tpu.dynamic_rotate %0 by %c239_i32 dim 1 : vector<64x256xf32>, i32 -> vector<64x256xf32>
    %c8 = arith.constant 8 : index
    %c0_37 = arith.constant 0 : index
    %c0_38 = arith.constant 0 : index
    %80 = vector.load %arg8[%c8, %c0_37, %c0_38] : memref<9x1x256xf32, #tpu.memory_space<vmem>>, vector<1x1x256xf32>
    %81 = vector.shape_cast %80 : vector<1x1x256xf32> to vector<1x256xf32>
    %82 = vector.broadcast %81 : vector<1x256xf32> to vector<64x256xf32>
    %83 = arith.mulf %79, %82 : vector<64x256xf32>
    %84 = tpu.concatenate %48, %53, %58, %63, %0, %68, %73, %78, %83 in 0 : vector<64x256xf32>, vector<64x256xf32>, vector<64x256xf32>, vector<64x256xf32>, vector<64x256xf32>, vector<64x256xf32>, vector<64x256xf32>, vector<64x256xf32>, vector<64x256xf32> -> vector<576x256xf32>
    %c0_39 = arith.constant 0 : index
    %c0_40 = arith.constant 0 : index
    %85 = vector.load %arg6[%c0_39, %c0_40] : memref<64x576xf32, #tpu.memory_space<vmem>>, vector<64x576xf32>
    %cst_41 = arith.constant dense<0.000000e+00> : vector<64x256xf32>
    %86 = tpu.matmul %85, %84, %cst_41 {dimension_numbers = #tpu.dot_dimension_numbers<[1], [0], [0], [1], [0, 0, 1, 1], [], []>} : vector<64x576xf32>, vector<576x256xf32>, vector<64x256xf32> -> vector<64x256xf32>
    %c0_42 = arith.constant 0 : index
    %c0_43 = arith.constant 0 : index
    %87 = vector.load %arg7[%c0_42, %c0_43] : memref<64x1xf32, #tpu.memory_space<vmem>>, vector<64x1xf32>
    %88 = vector.broadcast %87 : vector<64x1xf32> to vector<64x256xf32>
    %89 = arith.addf %86, %88 : vector<64x256xf32>
    %c0_44 = arith.constant 0 : index
    %c0_45 = arith.constant 0 : index
    %90 = vector.load %arg11[%c0_44, %c0_45] : memref<64x64xf32, #tpu.memory_space<vmem>>, vector<64x64xf32>
    %cst_46 = arith.constant dense<0.000000e+00> : vector<64xf32>
    %91 = vector.multi_reduction <add>, %43, %cst_46 [1] : vector<64x256xf32> to vector<64xf32>
    %92 = vector.shape_cast %91 : vector<64xf32> to vector<64x1xf32>
    %cst_47 = arith.constant 3.906250e-03 : f32
    %93 = vector.broadcast %cst_47 : f32 to vector<64x1xf32>
    %94 = arith.mulf %92, %93 : vector<64x1xf32>
    %cst_48 = arith.constant dense<0.000000e+00> : vector<64xf32>
    %95 = vector.multi_reduction <add>, %89, %cst_48 [1] : vector<64x256xf32> to vector<64xf32>
    %96 = vector.shape_cast %95 : vector<64xf32> to vector<64x1xf32>
    %cst_49 = arith.constant 3.906250e-03 : f32
    %97 = vector.broadcast %cst_49 : f32 to vector<64x1xf32>
    %98 = arith.mulf %96, %97 : vector<64x1xf32>
    %cst_50 = arith.constant dense<0.000000e+00> : vector<64x1xf32>
    %99 = tpu.matmul %90, %94, %cst_50 {dimension_numbers = #tpu.dot_dimension_numbers<[1], [0], [0], [1], [0, 0, 1, 1], [], []>} : vector<64x64xf32>, vector<64x1xf32>, vector<64x1xf32> -> vector<64x1xf32>
    %cst_51 = arith.constant 2.500000e-01 : f32
    %100 = vector.broadcast %cst_51 : f32 to vector<64x1xf32>
    %101 = arith.mulf %99, %100 : vector<64x1xf32>
    %cst_52 = arith.constant dense<0.000000e+00> : vector<64x1xf32>
    %102 = tpu.matmul %90, %98, %cst_52 {dimension_numbers = #tpu.dot_dimension_numbers<[1], [0], [0], [1], [0, 0, 1, 1], [], []>} : vector<64x64xf32>, vector<64x1xf32>, vector<64x1xf32> -> vector<64x1xf32>
    %cst_53 = arith.constant 2.500000e-01 : f32
    %103 = vector.broadcast %cst_53 : f32 to vector<64x1xf32>
    %104 = arith.mulf %102, %103 : vector<64x1xf32>
    %105 = arith.subf %94, %101 : vector<64x1xf32>
    %106 = math.exp %105 : vector<64x1xf32>
    %107 = arith.subf %98, %104 : vector<64x1xf32>
    %108 = math.exp %107 : vector<64x1xf32>
    %cst_54 = arith.constant dense<0.000000e+00> : vector<64x1xf32>
    %109 = tpu.matmul %90, %106, %cst_54 {dimension_numbers = #tpu.dot_dimension_numbers<[1], [0], [0], [1], [0, 0, 1, 1], [], []>} : vector<64x64xf32>, vector<64x1xf32>, vector<64x1xf32> -> vector<64x1xf32>
    %110 = arith.divf %106, %109 : vector<64x1xf32>
    %cst_55 = arith.constant dense<0.000000e+00> : vector<64x1xf32>
    %111 = tpu.matmul %90, %108, %cst_55 {dimension_numbers = #tpu.dot_dimension_numbers<[1], [0], [0], [1], [0, 0, 1, 1], [], []>} : vector<64x64xf32>, vector<64x1xf32>, vector<64x1xf32> -> vector<64x1xf32>
    %112 = arith.divf %108, %111 : vector<64x1xf32>
    %113 = vector.broadcast %110 : vector<64x1xf32> to vector<64x256xf32>
    %114 = arith.mulf %113, %89 : vector<64x256xf32>
    %115 = vector.broadcast %112 : vector<64x1xf32> to vector<64x256xf32>
    %116 = arith.mulf %115, %43 : vector<64x256xf32>
    %117 = arith.addf %114, %116 : vector<64x256xf32>
    %cst_56 = arith.constant dense<0.000000e+00> : vector<64x256xf32>
    %118 = tpu.matmul %90, %117, %cst_56 {dimension_numbers = #tpu.dot_dimension_numbers<[1], [0], [0], [1], [0, 0, 1, 1], [], []>} : vector<64x64xf32>, vector<64x256xf32>, vector<64x256xf32> -> vector<64x256xf32>
    %119 = arith.negf %118 : vector<64x256xf32>
    %120 = math.exp %119 : vector<64x256xf32>
    %cst_57 = arith.constant 1.000000e+00 : f32
    %121 = vector.broadcast %cst_57 : f32 to vector<64x256xf32>
    %122 = arith.addf %121, %120 : vector<64x256xf32>
    %123 = arith.divf %121, %122 : vector<64x256xf32>
    %124 = arith.mulf %0, %123 : vector<64x256xf32>
    %c0_58 = arith.constant 0 : index
    %c0_59 = arith.constant 0 : index
    %125 = vector.load %arg12[%c0_58, %c0_59] : memref<64x256xf32, #tpu.memory_space<vmem>>, vector<64x256xf32>
    tpu.vector_store %arg12[%c0_58, %c0_59], %124 {strides = array<i32>} : memref<64x256xf32, #tpu.memory_space<vmem>>, vector<64x256xf32>,
    return
  }
  func.func @transform_0(%arg0: i32) -> (i32, i32) {
    %c0_i32 = arith.constant 0 : i32
    %c0_i32_0 = arith.constant 0 : i32
    return %arg0, %c0_i32 : i32, i32
  }
  func.func @transform_1(%arg0: i32) -> (i32, i32) {
    %c0_i32 = arith.constant 0 : i32
    %c0_i32_0 = arith.constant 0 : i32
    %c0_i32_1 = arith.constant 0 : i32
    return %c0_i32, %c0_i32_0 : i32, i32
  }
  func.func @transform_2(%arg0: i32) -> (i32, i32) {
    %c0_i32 = arith.constant 0 : i32
    %c0_i32_0 = arith.constant 0 : i32
    %c0_i32_1 = arith.constant 0 : i32
    return %c0_i32, %c0_i32_0 : i32, i32
  }
  func.func @transform_3(%arg0: i32) -> (i32, i32) {
    %c0_i32 = arith.constant 0 : i32
    %c0_i32_0 = arith.constant 0 : i32
    %c0_i32_1 = arith.constant 0 : i32
    return %c0_i32, %c0_i32_0 : i32, i32
  }
  func.func @transform_4(%arg0: i32) -> (i32, i32) {
    %c0_i32 = arith.constant 0 : i32
    %c0_i32_0 = arith.constant 0 : i32
    %c0_i32_1 = arith.constant 0 : i32
    return %c0_i32, %c0_i32_0 : i32, i32
  }
  func.func @transform_5(%arg0: i32) -> (i32, i32) {
    %c0_i32 = arith.constant 0 : i32
    %c0_i32_0 = arith.constant 0 : i32
    %c0_i32_1 = arith.constant 0 : i32
    return %c0_i32, %c0_i32_0 : i32, i32
  }
  func.func @transform_6(%arg0: i32) -> (i32, i32) {
    %c0_i32 = arith.constant 0 : i32
    %c0_i32_0 = arith.constant 0 : i32
    %c0_i32_1 = arith.constant 0 : i32
    return %c0_i32, %c0_i32_0 : i32, i32
  }
  func.func @transform_7(%arg0: i32) -> (i32, i32, i32) {
    %c0_i32 = arith.constant 0 : i32
    %c0_i32_0 = arith.constant 0 : i32
    %c0_i32_1 = arith.constant 0 : i32
    %c0_i32_2 = arith.constant 0 : i32
    return %c0_i32, %c0_i32_0, %c0_i32_1 : i32, i32, i32
  }
  func.func @transform_8(%arg0: i32) -> (i32, i32) {
    %c0_i32 = arith.constant 0 : i32
    %c0_i32_0 = arith.constant 0 : i32
    %c0_i32_1 = arith.constant 0 : i32
    return %c0_i32, %c0_i32_0 : i32, i32
  }
  func.func @transform_9(%arg0: i32) -> (i32, i32) {
    %c0_i32 = arith.constant 0 : i32
    %c0_i32_0 = arith.constant 0 : i32
    %c0_i32_1 = arith.constant 0 : i32
    return %c0_i32, %c0_i32_0 : i32, i32
  }
  func.func @transform_10(%arg0: i32) -> (i32, i32) {
    %c0_i32 = arith.constant 0 : i32
    %c0_i32_0 = arith.constant 0 : i32
    %c0_i32_1 = arith.constant 0 : i32
    return %c0_i32, %c0_i32_0 : i32, i32
  }
  func.func @transform_11(%arg0: i32) -> (i32, i32) {
    %c0_i32 = arith.constant 0 : i32
    %c0_i32_0 = arith.constant 0 : i32
    return %arg0, %c0_i32 : i32, i32
  }
}

</mosaic_0001>

<bundles_post_ra>
// kernel: run.1
= control target key start
LH: loop header
LB: loop body
LE: loop exit
PB: predicated region body
PF: predicated region fallthrough
CT: control target
= control target key end

     0   :  { %v3620_v0 = vmov 0   ;;  %s3621_s17 = smov 1   ;;  %s3623_s15 = smov 15   ;;  %vm224_vm0 = vcmask 523264   ;;  %vm458_vm10 = vcmask 261120   ;;  %s7258_s4 = inlined_call_operand.vmem [shape: f32[64,1], index: 4, kind: input, shape index: {}]   ;;  %s7259_s1 = inlined_call_operand.vmem [shape: f32[256,32], index: 1, kind: input, shape index: {}]   ;;  %s7260_s0 = inlined_call_operand.vmem [shape: f32[64,256], index: 0, kind: input, shape index: {}]   ;;  %s7261_s3 = inlined_call_operand.vmem [shape: f32[64,64], index: 3, kind: input, shape index: {}]   ;;  %s7262_s7 = inlined_call_operand.vmem [shape: f32[9,1,256], index: 7, kind: input, shape index: {}]   ;;  %s7263_s2 = inlined_call_operand.vmem [shape: f32[32,512], index: 2, kind: input, shape index: {}]   ;;  %s7264_s6 = inlined_call_operand.vmem [shape: f32[64,1], index: 6, kind: input, shape index: {}]   ;;  %s7265_s5 = inlined_call_operand.vmem [shape: f32[64,576], index: 5, kind: input, shape index: {}]   ;;  %s7266_s8 = inlined_call_operand.vmem [shape: f32[64,1], index: 8, kind: input, shape index: {}]   ;;  %s7267_s9 = inlined_call_operand.vmem [shape: f32[64,1], index: 9, kind: input, shape index: {}]   ;;  %s7268_s10 = inlined_call_operand.vmem [shape: f32[64,64], index: 10, kind: input, shape index: {}]   ;;  %s7269_s11 = inlined_call_operand.vmem [shape: f32[64,256], index: 11, kind: output, shape index: {}]  }
   0x1   :  { %3394 = vset.pattern.permute.xlu2 %v3620_v0  ;;  %3393 = vset.pattern.permute.xlu1 %v3620_v0  ;;  %v180_v1 = vld [vmem:[%s7258_s4 + $0x20] sm:$0xff]  ;;  %v178_v2 = vld [vmem:[%s7258_s4 + $0x10] sm:$0xff]  ;;  %v69_v4 = vld [vmem:[%s7259_s1 + $0x78] sm:$0xff]  ;;  %s3627_s14 = smov 113  }
   0x2   :  { %v176_v3 = vld [vmem:[%s7258_s4] sm:$0xff]  ;;  %3392 = vset.pattern.permute.xlu0 %v3620_v0  ;;  %206 = vperm.xlu2 %3394, %v180_v1   ;;  %v85_v5 = vld [vmem:[%s7259_s1 + $0xf8] sm:$0xff]  ;;  %v68_v6 = vld [vmem:[%s7259_s1 + $0x70] sm:$0xff] }
   0x3   :  { %196 = vperm.xlu1 %3393, %v178_v2   ;;  %186 = vperm.xlu0 %3392, %v176_v3   ;;  %v84_v7 = vld [vmem:[%s7259_s1 + $0xf0] sm:$0xff]  ;;  %v67_v8 = vld [vmem:[%s7259_s1 + $0x68] sm:$0xff]  ;;  %v66_v10 = vld [vmem:[%s7259_s1 + $0x60] sm:$0xff] }
   0x4   :  { %86 = vmatpush.msra.mxu0 %v69_v4  ;;  %127 = vmatpush.msra.mxu1 %v85_v5  ;;  %v83_v9 = vld [vmem:[%s7259_s1 + $0xe8] sm:$0xff]  ;;  %v82_v11 = vld [vmem:[%s7259_s1 + $0xe0] sm:$0xff]  ;;  %v179_v13 = vld [vmem:[%s7258_s4 + $0x18] sm:$0xff] }
   0x5   :  { %v181_v12 = vld [vmem:[%s7258_s4 + $0x28] sm:$0xff]  ;;  %v65_v15 = vld [vmem:[%s7259_s1 + $0x58] sm:$0xff]  ;;  %v64_v17 = vld [vmem:[%s7259_s1 + $0x50] sm:$0xff] }
   0x6   :  { %87 = vmatpush.msra.mxu0 %v68_v6  ;;  %128 = vmatpush.msra.mxu1 %v84_v7  ;;  %v177_v14 = vld [vmem:[%s7258_s4 + $0x8] sm:$0xff]  ;;  %v81_v16 = vld [vmem:[%s7259_s1 + $0xd8] sm:$0xff]  ;;  %v80_v18 = vld [vmem:[%s7259_s1 + $0xd0] sm:$0xff] }
   0x7   :  { %v63_v19 = vld [vmem:[%s7259_s1 + $0x48] sm:$0xff]  ;;  %v62_v21 = vld [vmem:[%s7259_s1 + $0x40] sm:$0xff]  ;;  %v183_v23 = vld [vmem:[%s7258_s4 + $0x38] sm:$0xff] }
   0x8   :  { %88 = vmatpush.msra.mxu0 %v67_v8  ;;  %129 = vmatpush.msra.mxu1 %v83_v9  ;;  %v79_v20 = vld [vmem:[%s7259_s1 + $0xc8] sm:$0xff]  ;;  %v78_v22 = vld [vmem:[%s7259_s1 + $0xc0] sm:$0xff]  ;;  %v182_v24 = vld [vmem:[%s7258_s4 + $0x30] sm:$0xff]  ;;  %s3626_s4 = smov 112  }
   0x9   :  { %v61_v25 = vld [vmem:[%s7259_s1 + $0x38] sm:$0xff]  ;;  %v3770_v27 = vld [vmem:[%s7260_s0 + $0x70] sm:$0xff]  ;;  %v59_v30 = vld [vmem:[%s7259_s1 + $0x28] sm:$0xff] }
   0xa   :  { %89 = vmatpush.msra.mxu0 %v66_v10  ;;  %130 = vmatpush.msra.mxu1 %v82_v11  ;;  %v77_v26 = vld [vmem:[%s7259_s1 + $0xb8] sm:$0xff]  ;;  %v60_v28 = vld [vmem:[%s7259_s1 + $0x30] sm:$0xff]  ;;  %v75_v31 = vld [vmem:[%s7259_s1 + $0xa8] sm:$0xff] }
   0xb   :  { %211 = vperm.xlu2 %3394, %v181_v12   ;;  %201 = vperm.xlu1 %3393, %v179_v13   ;;  %v76_v29 = vld [vmem:[%s7259_s1 + $0xb0] sm:$0xff]  ;;  %v58_v32 = vld [vmem:[%s7259_s1 + $0x20] sm:$0xff]  ;;  %v57_v35 = vld [vmem:[%s7259_s1 + $0x18] sm:$0xff] }
   0xc   :  { %191 = vperm.xlu0 %3392, %v177_v14   ;;  %90 = vmatpush.msra.mxu0 %v65_v15  ;;  %v74_v33 = vld [vmem:[%s7259_s1 + $0xa0] sm:$0xff]  ;;  %v3803_v36 = vld [vmem:[%s7260_s0 + $0x78] sm:$0xff]  ;;  %v3811_v38 = vld [vmem:[%s7260_s0 + $0x68] sm:$0xff] }
   0xd   :  { %131 = vmatpush.msra.mxu1 %v81_v16  ;;  %v3795_v34 = vld [vmem:[%s7260_s0 + $0x60] sm:$0xff]  ;;  %v73_v37 = vld [vmem:[%s7259_s1 + $0x98] sm:$0xff]  ;;  %v56_v39 = vld [vmem:[%s7259_s1 + $0x10] sm:$0xff] }
   0xe   :  { %91 = vmatpush.msra.mxu0 %v64_v17  ;;  %v72_v40 = vld [vmem:[%s7259_s1 + $0x90] sm:$0xff]  ;;  %v55_v41 = vld [vmem:[%s7259_s1 + $0x8] sm:$0xff]  ;;  %v54_v43 = vld [vmem:[%s7259_s1] sm:$0xff] }
   0xf   :  { %132 = vmatpush.msra.mxu1 %v80_v18  ;;  %v71_v42 = vld [vmem:[%s7259_s1 + $0x88] sm:$0xff]  ;;  %v70_v44 = vld [vmem:[%s7259_s1 + $0x80] sm:$0xff]  ;;  %v3850_v47 = vld [vmem:[%s7260_s0 + $0x50] sm:$0xff]  ;;  %s3622_s1 = smov 16  }
  0x10   :  { %92 = vmatpush.msra.mxu0 %v63_v19  ;;  %v3840_v45 = vld [vmem:[%s7260_s0] sm:$0xff]  ;;  %v3845_v46 = vld [vmem:[%s7260_s0 + $0x8] sm:$0xff]  ;;  %v3863_v48 = vld [vmem:[%s7260_s0 + $0x10] sm:$0xff] }
  0x11   :  { %133 = vmatpush.msra.mxu1 %v79_v20  ;;  %v3868_v49 = vld [vmem:[%s7260_s0 + $0x18] sm:$0xff]  ;;  %v3886_v51 = vld [vmem:[%s7260_s0 + $0x20] sm:$0xff]  ;;  %v3891_v52 = vld [vmem:[%s7260_s0 + $0x28] sm:$0xff] }
  0x12   :  { %93 = vmatpush.msra.mxu0 %v62_v21  ;;  %v3873_v50 = vld [vmem:[%s7260_s0 + $0x58] sm:$0xff]  ;;  %v3896_v53 = vld [vmem:[%s7260_s0 + $0x40] sm:$0xff]  ;;  %v3901_v54 = vld [vmem:[%s7260_s0 + $0x48] sm:$0xff] }
  0x13   :  { %134 = vmatpush.msra.mxu1 %v78_v22  ;;  %221 = vperm.xlu1 %3393, %v183_v23   ;;  %v3914_v55 = vld [vmem:[%s7260_s0 + $0x30] sm:$0xff]  ;;  %v3919_v56 = vld [vmem:[%s7260_s0 + $0x38] sm:$0xff] }
  0x14   :  { %216 = vperm.xlu0 %3392, %v182_v24   ;;  %94 = vmatpush.msra.mxu0 %v61_v25 }
  0x15   :  { %135 = vmatpush.msra.mxu1 %v77_v26  ;;  %1254 = vrot.lane.b32.xlu2 %v3770_v27, %s3621_s17 }
  0x16   :  { %95 = vmatpush.msra.mxu0 %v60_v28 }
  0x17   :  { %136 = vmatpush.msra.mxu1 %v76_v29 }
  0x18   :  { %96 = vmatpush.msra.mxu0 %v59_v30 }
  0x19   :  { %137 = vmatpush.msra.mxu1 %v75_v31 }
  0x1a   :  { %97 = vmatpush.msra.mxu0 %v58_v32 }
  0x1b   :  { %138 = vmatpush.msra.mxu1 %v74_v33  ;;  %1252 = vrot.lane.b32.xlu1 %v3795_v34, %s3621_s17 }
  0x1c   :  { %98 = vmatpush.msra.mxu0 %v57_v35  ;;  %1270 = vrot.lane.b32.xlu0 %v3803_v36, %s3621_s17 }
  0x1d   :  { %139 = vmatpush.msra.mxu1 %v73_v37  ;;  %1268 = vrot.lane.b32.xlu2 %v3811_v38, %s3621_s17 }
  0x1e   :  { %99 = vmatpush.msra.mxu0 %v56_v39 }
  0x1f   :  { %140 = vmatpush.msra.mxu1 %v72_v40 }
  0x20   :  { %100 = vmatpush.msra.mxu0 %v55_v41 }
  0x21   :  { %141 = vmatpush.msra.mxu1 %v71_v42 }
  0x22   :  { %101 = vmatpush.msra.mxu0 %v54_v43 }
  0x23   :  { %142 = vmatpush.msra.mxu1 %v70_v44  ;;  %102 = vmatmul.f32.vlgmr.msra.gmra.mxu0 %v3840_v45 }
  0x24   :  { %143 = vmatmul.f32.vlgmr.msra.gmra.mxu1 %v3845_v46  ;;  %1110 = vrot.lane.b32.xlu0 %v3770_v27, %s3622_s1 }
  0x25   :  { %1126 = vrot.lane.b32.xlu1 %v3803_v36, %s3622_s1  ;;  %1250 = vrot.lane.b32.xlu2 %v3850_v47, %s3621_s17 }
  0x2b   :  { %105 = vmatmul.f32.gmra.mxu0 %v3863_v48 }
  0x2c   :  { %146 = vmatmul.f32.gmra.mxu1 %v3868_v49  ;;  %1266 = vrot.lane.b32.xlu0 %v3873_v50, %s3621_s17 }
  0x2d   :  { %1108 = vrot.lane.b32.xlu1 %v3795_v34, %s3622_s1  ;;  %1124 = vrot.lane.b32.xlu2 %v3811_v38, %s3622_s1 }
  0x33   :  { %108 = vmatmul.f32.gmra.mxu0 %v3886_v51 }
  0x34   :  { %149 = vmatmul.f32.gmra.mxu1 %v3891_v52  ;;  %1248 = vrot.lane.b32.xlu0 %v3896_v53, %s3621_s17 }
  0x35   :  { %1106 = vrot.lane.b32.xlu2 %v3850_v47, %s3622_s1  ;;  %1264 = vrot.lane.b32.xlu1 %v3901_v54, %s3621_s17 }
  0x3b   :  { %111 = vmatmul.f32.gmra.mxu0 %v3914_v55 }
  0x3c   :  { %152 = vmatmul.f32.gmra.mxu1 %v3919_v56  ;;  %1122 = vrot.lane.b32.xlu0 %v3873_v50, %s3622_s1 }
  0x3d   :  { %1262 = vrot.lane.b32.xlu2 %v3919_v56, %s3621_s17  ;;  %1246 = vrot.lane.b32.xlu1 %v3914_v55, %s3621_s17 }
  0x43   :  { %114 = vmatmul.f32.gmra.mxu0 %v3896_v53 }
  0x44   :  { %155 = vmatmul.f32.gmra.mxu1 %v3901_v54  ;;  %1104 = vrot.lane.b32.xlu0 %v3896_v53, %s3622_s1 }
  0x45   :  { %1120 = vrot.lane.b32.xlu1 %v3901_v54, %s3622_s1  ;;  %1244 = vrot.lane.b32.xlu2 %v3886_v51, %s3621_s17 }
  0x4b   :  { %117 = vmatmul.f32.gmra.mxu0 %v3850_v47 }
  0x4c   :  { %158 = vmatmul.f32.gmra.mxu1 %v3873_v50  ;;  %1260 = vrot.lane.b32.xlu0 %v3891_v52, %s3621_s17 }
  0x4d   :  { %1102 = vrot.lane.b32.xlu1 %v3914_v55, %s3622_s1  ;;  %1118 = vrot.lane.b32.xlu2 %v3919_v56, %s3622_s1 }
  0x53   :  { %120 = vmatmul.f32.gmra.mxu0 %v3795_v34 }
  0x54   :  { %161 = vmatmul.f32.gmra.mxu1 %v3811_v38  ;;  %1242 = vrot.lane.b32.xlu0 %v3863_v48, %s3621_s17 }
  0x55   :  { %1100 = vrot.lane.b32.xlu2 %v3886_v51, %s3622_s1  ;;  %1258 = vrot.lane.b32.xlu1 %v3868_v49, %s3621_s17 }
  0x5b   :  { %123 = vmatmul.f32.gmra.mxu0 %v3770_v27 }
  0x5c   :  { %164 = vmatmul.f32.gmra.mxu1 %v3803_v36  ;;  %1116 = vrot.lane.b32.xlu0 %v3891_v52, %s3622_s1  ;;  %v3957_v57 = vpop.permute.xlu2 %206 }
  0x5d   :  { %7349 = vst [vmem:[#allocation2_spill] sm:$0xff] %v3957_v57  ;;  %1256 = vrot.lane.b32.xlu2 %v3845_v46, %s3621_s17  ;;  %1240 = vrot.lane.b32.xlu1 %v3840_v45, %s3621_s17  ;;  %s3624_s17 = smov 17  }
  0x64   :  { %1098 = vrot.lane.b32.xlu0 %v3863_v48, %s3622_s1 }
  0x65   :  { %1182 = vrot.lane.b32.xlu2 %v3770_v27, %s3623_s15  ;;  %1114 = vrot.lane.b32.xlu1 %v3868_v49, %s3622_s1  ;;  %v3969_v58 = vpop.permute.xlu2 %211 }
  0x66   :  { %7350 = vst [vmem:[#allocation3_spill] sm:$0xff] %v3969_v58 }
  0x6c   :  { %1198 = vrot.lane.b32.xlu0 %v3803_v36, %s3623_s15 }
  0x6d   :  { %1112 = vrot.lane.b32.xlu2 %v3845_v46, %s3622_s1  ;;  %1096 = vrot.lane.b32.xlu1 %v3840_v45, %s3622_s1  ;;  %s3625_s1 = smov 127  }
  0x6f   :  { %v3977_v59 = vpop.permute.xlu2 %1254 }
  0x74   :  { %1180 = vrot.lane.b32.xlu0 %v3795_v34, %s3623_s15 }
  0x75   :  { %1037 = vrot.lane.b32.xlu2 %v3770_v27, %s3624_s17  ;;  %1196 = vrot.lane.b32.xlu1 %v3811_v38, %s3623_s15  ;;  %v3985_v60 = vpop.permute.xlu1 %196  ;;  %v3987_v61 = vpop.permute.xlu0 %186 }
  0x76   :  { %7351 = vst [vmem:[#allocation4_spill] sm:$0xff] %v3985_v60 }
  0x77   :  { %v3989_v62 = vpop.permute.xlu2 %1268 }
  0x7c   :  { %1053 = vrot.lane.b32.xlu0 %v3803_v36, %s3624_s17 }
  0x7d   :  { %1194 = vrot.lane.b32.xlu2 %v3873_v50, %s3623_s15  ;;  %1178 = vrot.lane.b32.xlu1 %v3850_v47, %s3623_s15  ;;  %v3997_v63 = vpop.permute.xlu1 %201 }
  0x7e   :  { %7352 = vst [vmem:[#allocation5_spill] sm:$0xff] %v3997_v63  ;;  %v3999_v0 = vpop.permute.xlu0 %191 }
  0x7f   :  { %v4001_v1 = vpop.permute.xlu2 %1250 }
  0x84   :  { %1035 = vrot.lane.b32.xlu0 %v3795_v34, %s3624_s17 }
  0x85   :  { %1176 = vrot.lane.b32.xlu2 %v3896_v53, %s3623_s15  ;;  %1051 = vrot.lane.b32.xlu1 %v3811_v38, %s3624_s17  ;;  %v4009_v2 = vpop.permute.xlu1 %221 }
  0x86   :  { %7353 = vst [vmem:[#allocation6_spill] sm:$0xff] %v4009_v2  ;;  %v4011_v3 = vpop.permute.xlu0 %216 }
  0x87   :  { %7354 = vst [vmem:[#allocation7_spill] sm:$0xff] %v4011_v3  ;;  %v4013_v4 = vpop.permute.xlu2 %1124 }
  0x88   :  { %7355 = vst [vmem:[#allocation8_spill] sm:$0xff] %v4013_v4 }
  0x8c   :  { %1192 = vrot.lane.b32.xlu0 %v3901_v54, %s3623_s15 }
  0x8d   :  { %1049 = vrot.lane.b32.xlu2 %v3873_v50, %s3624_s17  ;;  %1033 = vrot.lane.b32.xlu1 %v3850_v47, %s3624_s17  ;;  %v4021_v5 = vpop.permute.xlu1 %1252 }
  0x8e   :  { %v4023_v6 = vpop.permute.xlu0 %1270 }
  0x8f   :  { %v4025_v7 = vpop.permute.xlu2 %1106 }
  0x90   :  { %7356 = vst [vmem:[#allocation9_spill] sm:$0xff] %v4025_v7 }
  0x94   :  { %1174 = vrot.lane.b32.xlu0 %v3914_v55, %s3623_s15 }
  0x95   :  { %1031 = vrot.lane.b32.xlu2 %v3896_v53, %s3624_s17  ;;  %1190 = vrot.lane.b32.xlu1 %v3919_v56, %s3623_s15 }
  0x96   :  { %v4033_v8 = vpop.permute.xlu0 %1110 }
  0x97   :  { %7357 = vst [vmem:[#allocation10_spill] sm:$0xff] %v4033_v8  ;;  %v4035_v9 = vpop.permute.xlu1 %1126  ;;  %v4037_v10 = vpop.permute.xlu2 %1262 }
  0x98   :  { %7358 = vst [vmem:[#allocation11_spill] sm:$0xff] %v4035_v9 }
  0x9c   :  { %1047 = vrot.lane.b32.xlu0 %v3901_v54, %s3624_s17 }
  0x9d   :  { %1188 = vrot.lane.b32.xlu2 %v3891_v52, %s3623_s15  ;;  %1172 = vrot.lane.b32.xlu1 %v3886_v51, %s3623_s15 }
  0x9e   :  { %v4045_v11 = vpop.permute.xlu0 %1266 }
  0x9f   :  { %v4047_v12 = vpop.permute.xlu1 %1108  ;;  %v4049_v13 = vpop.permute.xlu2 %1244 }
  0xa0   :  { %7359 = vst [vmem:[#allocation12_spill] sm:$0xff] %v4047_v12  ;;  %v4051_v14 = vpop.f32.mrf.mxu0 }
  0xa1   :  { %v4053_v15 = vpop.f32.mrf.mxu1 }
  0xa4   :  { %1029 = vrot.lane.b32.xlu0 %v3914_v55, %s3624_s17 }
  0xa5   :  { %1170 = vrot.lane.b32.xlu2 %v3863_v48, %s3623_s15  ;;  %1045 = vrot.lane.b32.xlu1 %v3919_v56, %s3624_s17 }
  0xa6   :  { %v4061_v16 = vpop.permute.xlu0 %1248 }
  0xa7   :  { %v4063_v17 = vpop.permute.xlu1 %1264  ;;  %v4065_v18 = vpop.permute.xlu2 %1118 }
  0xa8   :  { %7360 = vst [vmem:[#allocation13_spill] sm:$0xff] %v4065_v18  ;;  %v4067_v19 = vpop.f32.mrf.mxu0 }
  0xa9   :  { %v4069_v20 = vpop.f32.mrf.mxu1 }
  0xac   :  { %1186 = vrot.lane.b32.xlu0 %v3868_v49, %s3623_s15 }
  0xad   :  { %1043 = vrot.lane.b32.xlu2 %v3891_v52, %s3624_s17  ;;  %1027 = vrot.lane.b32.xlu1 %v3886_v51, %s3624_s17 }
  0xae   :  { %v4077_v21 = vpop.permute.xlu0 %1122 }
  0xaf   :  { %7361 = vst [vmem:[#allocation14_spill] sm:$0xff] %v4077_v21  ;;  %v4079_v22 = vpop.permute.xlu1 %1246  ;;  %v4081_v23 = vpop.permute.xlu2 %1100 }
  0xb0   :  { %7362 = vst [vmem:[#allocation15_spill] sm:$0xff] %v4081_v23  ;;  %v4083_v24 = vpop.f32.mrf.mxu0 }
  0xb1   :  { %v4085_v25 = vpop.f32.mrf.mxu1 }
  0xb4   :  { %1168 = vrot.lane.b32.xlu0 %v3840_v45, %s3623_s15 }
  0xb5   :  { %1025 = vrot.lane.b32.xlu2 %v3863_v48, %s3624_s17  ;;  %1184 = vrot.lane.b32.xlu1 %v3845_v46, %s3623_s15 }
  0xb6   :  { %v4093_v26 = vpop.permute.xlu0 %1104 }
  0xb7   :  { %7363 = vst [vmem:[#allocation16_spill] sm:$0xff] %v4093_v26  ;;  %v4095_v28 = vpop.permute.xlu1 %1120  ;;  %v4097_v29 = vpop.permute.xlu2 %1256 }
  0xb8   :  { %7364 = vst [vmem:[#allocation17_spill] sm:$0xff] %v4095_v28  ;;  %v112_v30 = vpop.f32.mrf.mxu0 }
  0xb9   :  { %7365 = vst [vmem:[#allocation18_spill] sm:$0xff] %v4097_v29  ;;  %v153_v31 = vpop.f32.mrf.mxu1 }
  0xbc   :  { %1041 = vrot.lane.b32.xlu0 %v3868_v49, %s3624_s17 }
  0xbd   :  { %1039 = vrot.lane.b32.xlu2 %v3845_v46, %s3624_s17  ;;  %1023 = vrot.lane.b32.xlu1 %v3840_v45, %s3624_s17 }
  0xbe   :  { %v4105_v32 = vpop.permute.xlu0 %1260 }
  0xbf   :  { %v4107_v33 = vpop.permute.xlu1 %1102  ;;  %v4109_v35 = vpop.permute.xlu2 %1182 }
  0xc0   :  { %7366 = vst [vmem:[#allocation19_spill] sm:$0xff] %v4107_v33  ;;  %v115_v37 = vpop.f32.mrf.mxu0 }
  0xc1   :  { %7367 = vst [vmem:[#allocation20_spill] sm:$0xff] %v4109_v35  ;;  %v156_v39 = vpop.f32.mrf.mxu1 }
  0xc4   :  { %1326 = vrot.lane.b32.xlu0 %v3770_v27, %s3625_s1 }
  0xc5   :  { %1324 = vrot.lane.b32.xlu2 %v3795_v34, %s3625_s1  ;;  %1342 = vrot.lane.b32.xlu1 %v3803_v36, %s3625_s1 }
  0xc6   :  { %v4117_v40 = vpop.permute.xlu0 %1242 }
  0xc7   :  { %7368 = vst [vmem:[#allocation21_spill] sm:$0xff] %v4117_v40  ;;  %v4119_v41 = vpop.permute.xlu1 %1258  ;;  %v4121_v42 = vpop.permute.xlu2 %1112 }
  0xc8   :  { %7369 = vst [vmem:[#allocation22_spill] sm:$0xff] %v4119_v41  ;;  %v118_v43 = vpop.f32.mrf.mxu0 }
  0xc9   :  { %7370 = vst [vmem:[#allocation23_spill] sm:$0xff] %v4121_v42  ;;  %v159_v44 = vpop.f32.mrf.mxu1 }
  0xca   :  { %v160_v41 = vadd.f32 %v159_v44, %v118_v43  ;;  %v171_v44 = vld [vmem:[%s7261_s3 + $0x18] sm:$0xff] }
  0xcc   :  { %1340 = vrot.lane.b32.xlu0 %v3811_v38, %s3625_s1 }
  0xcd   :  { %1338 = vrot.lane.b32.xlu2 %v3873_v50, %s3625_s1  ;;  %1322 = vrot.lane.b32.xlu1 %v3850_v47, %s3625_s1 }
  0xce   :  { %v4129_v2 = vpop.permute.xlu0 %1116 }
  0xcf   :  { %7371 = vst [vmem:[#allocation24_spill] sm:$0xff] %v4129_v2  ;;  %v4131_v3 = vpop.permute.xlu2 %1037  ;;  %v4133_v58 = vpop.permute.xlu1 %1240 }
  0xd0   :  { %7372 = vst [vmem:[#allocation25_spill] sm:$0xff] %v4131_v3  ;;  %v121_v57 = vpop.f32.mrf.mxu0 }
  0xd1   :  { %7373 = vst [vmem:[#allocation26_spill] sm:$0xff] %v4133_v58  ;;  %v162_v63 = vpop.f32.mrf.mxu1 }
  0xd2   :  { %v163_v40 = vadd.f32 %v162_v63, %v121_v57  ;;  %v157_v57 = vadd.f32 %v156_v39, %v115_v37  ;;  %v151_v63 = vadd.f32 %v4085_v25, %v4083_v24  ;;  %v148_v37 = vadd.f32 %v4069_v20, %v4067_v19  ;;  %v168_v25 = vld [vmem:[%s7261_s3] sm:$0xff]  ;;  %v169_v39 = vld [vmem:[%s7261_s3 + $0x8] sm:$0xff]  ;;  %v170_v20 = vld [vmem:[%s7261_s3 + $0x10] sm:$0xff] }
  0xd3   :  { %v145_v24 = vadd.f32 %v4053_v15, %v4051_v14 }
  0xd4   :  { %1320 = vrot.lane.b32.xlu0 %v3896_v53, %s3625_s1 }
  0xd5   :  { %1318 = vrot.lane.b32.xlu2 %v3914_v55, %s3625_s1  ;;  %1336 = vrot.lane.b32.xlu1 %v3901_v54, %s3625_s1 }
  0xd6   :  { %v4141_v60 = vpop.permute.xlu0 %1098 }
  0xd7   :  { %7374 = vst [vmem:[#allocation27_spill] sm:$0xff] %v4141_v60  ;;  %v4143_v42 = vpop.permute.xlu2 %1194  ;;  %v4145_v35 = vpop.permute.xlu1 %1114 }
  0xd8   :  { %7375 = vst [vmem:[#allocation28_spill] sm:$0xff] %v4143_v42  ;;  %v124_v3 = vpop.f32.mrf.mxu0 }
  0xd9   :  { %7376 = vst [vmem:[#allocation29_spill] sm:$0xff] %v4145_v35  ;;  %v165_v29 = vpop.f32.mrf.mxu1 }
  0xda   :  { %v166_v58 = vadd.f32 %v165_v29, %v124_v3 }
  0xdc   :  { %257 = vmatpush.msrb.mxu0 %v166_v58  ;;  %3371 = vmatpush.msra.mxu2 %v166_v58  ;;  %v154_v58 = vadd.f32 %v153_v31, %v112_v30 }
  0xdd   :  { %1486 = vrot.lane.b32.xlu2 %v3803_v36, %s3626_s4  ;;  %1334 = vrot.lane.b32.xlu0 %v3919_v56, %s3625_s1 }
  0xde   :  { %1470 = vrot.lane.b32.xlu1 %v3770_v27, %s3626_s4  ;;  %258 = vmatpush.msrb.mxu0 %v163_v40  ;;  %v4153_v42 = vpop.permute.xlu0 %1198 }
  0xdf   :  { %3372 = vmatpush.msra.mxu2 %v163_v40  ;;  %v4155_v35 = vpop.permute.xlu2 %1176  ;;  %v4157_v3 = vpop.permute.xlu1 %1096 }
  0xe0   :  { %7377 = vst [vmem:[#allocation30_spill] sm:$0xff] %v4155_v35  ;;  %259 = vmatpush.msrb.mxu0 %v160_v41  ;;  %v175_v35 = vld [vmem:[%s7261_s3 + $0x38] sm:$0xff] }
  0xe1   :  { %7378 = vst [vmem:[#allocation31_spill] sm:$0xff] %v4157_v3  ;;  %3373 = vmatpush.msra.mxu2 %v160_v41 }
  0xe2   :  { %260 = vmatpush.msrb.mxu0 %v157_v57 }
  0xe3   :  { %3374 = vmatpush.msra.mxu2 %v157_v57 }
  0xe4   :  { %261 = vmatpush.msrb.mxu0 %v154_v58 }
  0xe5   :  { %3375 = vmatpush.msra.mxu2 %v154_v58  ;;  %1468 = vrot.lane.b32.xlu2 %v3795_v34, %s3626_s4 }
  0xe6   :  { %1316 = vrot.lane.b32.xlu0 %v3886_v51, %s3625_s1  ;;  %1332 = vrot.lane.b32.xlu1 %v3891_v52, %s3625_s1  ;;  %v4167_v29 = vpop.permute.xlu0 %1180 }
  0xe7   :  { %262 = vmatpush.msrb.mxu0 %v151_v63  ;;  %3376 = vmatpush.msra.mxu2 %v151_v63  ;;  %v4169_v30 = vpop.permute.xlu2 %1049  ;;  %v4171_v31 = vpop.permute.xlu1 %1196 }
  0xe8   :  { %7379 = vst [vmem:[#allocation32_spill] sm:$0xff] %v4169_v30 }
  0xe9   :  { %263 = vmatpush.msrb.mxu0 %v148_v37  ;;  %3377 = vmatpush.msra.mxu2 %v148_v37  ;;  %v172_v37 = vld [vmem:[%s7261_s3 + $0x20] sm:$0xff] }
  0xeb   :  { %264 = vmatpush.msrb.mxu0 %v145_v24  ;;  %3378 = vmatpush.msra.mxu2 %v145_v24 }
  0xec   :  { %3236 = vmatmul.msk.f32.vlgmr.msrb.gmra.mxu0 %vm224_vm0, %v168_v25  ;;  %3237 = vmatmul.msk.f32.vlgmr.msra.gmra.mxu2 %vm224_vm0, %v169_v39 }
  0xed   :  { %1330 = vrot.lane.b32.xlu2 %v3868_v49, %s3625_s1 }
  0xee   :  { %1484 = vrot.lane.b32.xlu0 %v3811_v38, %s3626_s4  ;;  %1314 = vrot.lane.b32.xlu1 %v3863_v48, %s3625_s1  ;;  %v4191_v14 = vpop.permute.xlu0 %1053 }
  0xef   :  { %7380 = vst [vmem:[#allocation33_spill] sm:$0xff] %v4191_v14  ;;  %v4193_v15 = vpop.permute.xlu2 %1031  ;;  %v4195_v19 = vpop.permute.xlu1 %1178 }
  0xf0   :  { %7381 = vst [vmem:[#allocation34_spill] sm:$0xff] %v4193_v15  ;;  %v1055_v15 = vlaneseq }
  0xf4   :  { %3238 = vmatmul.msk.f32.gmra.mxu2 %vm224_vm0, %v170_v20  ;;  %v173_v20 = vld [vmem:[%s7261_s3 + $0x28] sm:$0xff] }
  0xf5   :  { %1312 = vrot.lane.b32.xlu2 %v3840_v45, %s3625_s1 }
  0xf6   :  { %1466 = vrot.lane.b32.xlu0 %v3850_v47, %s3626_s4  ;;  %1482 = vrot.lane.b32.xlu1 %v3873_v50, %s3626_s4  ;;  %v4207_v40 = vpop.permute.xlu0 %1035 }
  0xf7   :  { %7382 = vst [vmem:[#allocation35_spill] sm:$0xff] %v4207_v40  ;;  %v4209_v41 = vpop.permute.xlu2 %1188  ;;  %v4211_v43 = vpop.permute.xlu1 %1051 }
  0xf8   :  { %7383 = vst [vmem:[#allocation36_spill] sm:$0xff] %v4209_v41 }
  0xf9   :  { %7384 = vst [vmem:[#allocation37_spill] sm:$0xff] %v4211_v43 }
  0xfc   :  { %3239 = vmatmul.msk.f32.gmra.mxu2 %vm224_vm0, %v171_v44 }
  0xfd   :  { %1480 = vrot.lane.b32.xlu2 %v3901_v54, %s3626_s4 }
  0xfe   :  { %1328 = vrot.lane.b32.xlu0 %v3845_v46, %s3625_s1  ;;  %1464 = vrot.lane.b32.xlu1 %v3896_v53, %s3626_s4  ;;  %v4223_v57 = vpop.permute.xlu0 %1192 }
  0xff   :  { %7385 = vst [vmem:[#allocation38_spill] sm:$0xff] %v4223_v57  ;;  %v1171_v58 = vpop.permute.xlu2 %1170  ;;  %v4225_v63 = vpop.permute.xlu1 %1033 }
 0x100   :  { %7386 = vst [vmem:[#allocation39_spill] sm:$0xff] %v4225_v63 }
 0x104   :  { %3240 = vmatmul.msk.f32.gmra.mxu2 %vm224_vm0, %v172_v37 }
 0x105   :  { %1460 = vrot.lane.b32.xlu2 %v3886_v51, %s3626_s4 }
 0x106   :  { %1462 = vrot.lane.b32.xlu0 %v3914_v55, %s3626_s4  ;;  %1478 = vrot.lane.b32.xlu1 %v3919_v56, %s3626_s4  ;;  %v4237_v24 = vpop.permute.xlu0 %1174 }
 0x107   :  { %7387 = vst [vmem:[#allocation40_spill] sm:$0xff] %v4237_v24  ;;  %v1044_v25 = vpop.permute.xlu2 %1043  ;;  %v4239_v39 = vpop.permute.xlu1 %1190  ;;  %v174_v24 = vld [vmem:[%s7261_s3 + $0x30] sm:$0xff]  ;;  %s3628_s3 = smov 111  }
 0x108   :  { %7388 = vst [vmem:[#allocation41_spill] sm:$0xff] %v4239_v39  ;;  %v4264_v39 = vand.u32 127, %v1055_v15 }
 0x10a   :  { %vm1057_vm1 = vcmp.lt.s32.totalorder %v4264_v39, 17  ;;  %vm1200_vm2 = vcmp.lt.s32.totalorder %v4264_v39, 15  ;;  %vm1128_vm3 = vcmp.lt.s32.totalorder %v4264_v39, 16  ;;  %vm1344_vm4 = vcmp.lt.s32.totalorder %v4264_v39, 127 }
 0x10b   :  { %vm1488_vm5 = vcmp.lt.s32.totalorder %v4264_v39, 112  ;;  %vm1272_vm6 = vcmp.lt.s32.totalorder %v4264_v39, 1  ;;  %vm1416_vm15 = vcmp.lt.s32.totalorder %v4264_v39, 113 }
 0x10c   :  { %3241 = vmatmul.msk.f32.gmra.mxu2 %vm224_vm0, %v173_v20  ;;  %v4262_v20 = vld [vmem:[%s7262_s7] sm:$0x3] }
 0x10d   :  { %1474 = vrot.lane.b32.xlu2 %v3868_v49, %s3626_s4  ;;  %7391 = vst [vmem:[#allocation44_spill] sm:$0xff] %v4262_v20 }
 0x10e   :  { %1476 = vrot.lane.b32.xlu0 %v3891_v52, %s3626_s4  ;;  %1458 = vrot.lane.b32.xlu1 %v3863_v48, %s3626_s4  ;;  %v4251_v44 = vpop.permute.xlu0 %1047 }
 0x10f   :  { %7389 = vst [vmem:[#allocation42_spill] sm:$0xff] %v4251_v44  ;;  %v1026_v37 = vpop.permute.xlu2 %1025  ;;  %v4253_v41 = vpop.permute.xlu1 %1172  ;;  %v4276_v44 = vperm.slane %v4262_v20, 1 }
 0x110   :  { %7390 = vst [vmem:[#allocation43_spill] sm:$0xff] %v4253_v41 }
 0x111   :  { %7393 = vst [vmem:[#allocation46_spill] sm:$0xff] %v4276_v44 }
 0x114   :  { %3242 = vmatmul.msk.f32.gmra.mxu2 %vm224_vm0, %v174_v24 }
 0x115   :  { %1398 = vrot.lane.b32.xlu2 %v3770_v27, %s3627_s14 }
 0x116   :  { %1456 = vrot.lane.b32.xlu0 %v3840_v45, %s3626_s4  ;;  %1472 = vrot.lane.b32.xlu1 %v3845_v46, %s3626_s4  ;;  %v4272_v41 = vpop.permute.xlu0 %1029 }
 0x117   :  { %7392 = vst [vmem:[#allocation45_spill] sm:$0xff] %v4272_v41  ;;  %v1040_v24 = vpop.permute.xlu2 %1039  ;;  %v4278_v15 = vpop.permute.xlu1 %1045 }
 0x118   :  { %7394 = vst [vmem:[#allocation47_spill] sm:$0xff] %v4278_v15  ;;  %v1061_v30 = vsel %vm1057_vm1, %v4272_v41, %v4278_v15 }
 0x119   :  { %v4285_v63 = vmul.f32 %v4276_v44, %v1061_v30 }
 0x11b   :  { %7395 = vst [vmem:[#allocation48_spill] sm:$0xff] %v4285_v63 }
 0x11c   :  { %3243 = vmatmul.msk.f32.gmra.mxu2 %vm224_vm0, %v175_v35 }
 0x11d   :  { %1412 = vrot.lane.b32.xlu2 %v3811_v38, %s3627_s14 }
 0x11e   :  { %1414 = vrot.lane.b32.xlu0 %v3803_v36, %s3627_s14  ;;  %1396 = vrot.lane.b32.xlu1 %v3795_v34, %s3627_s14  ;;  %v1187_v15 = vpop.permute.xlu0 %1186 }
 0x11f   :  { %v4300_v30 = vsel %vm1200_vm2, %v1171_v58, %v1187_v15  ;;  %v4304_v63 = vsel %vm1200_vm2, %v1187_v15, %v1171_v58  ;;  %v4306_v35 = vpop.permute.xlu2 %1324  ;;  %v1028_v41 = vpop.permute.xlu1 %1027 }
 0x120   :  { %7396 = vst [vmem:[#allocation49_spill] sm:$0xff] %v4300_v30  ;;  %v1060_v20 = vsel %vm1057_vm1, %v1028_v41, %v1044_v25  ;;  %v4312_v57 = vsel %vm1057_vm1, %v1044_v25, %v1028_v41 }
 0x121   :  { %7397 = vst [vmem:[#allocation50_spill] sm:$0xff] %v4304_v63  ;;  %v4315_v43 = vmul.f32 %v4276_v44, %v1060_v20  ;;  %v457_v20 = vld [vmem:[%s7263_s2 + $0x78] sm:$0xff] }
 0x122   :  { %3379 = vmatpush.msrb.mxu1 %v457_v20  ;;  %618 = vmatpush.msra.mxu0 %v457_v20  ;;  %v453_v20 = vld [vmem:[%s7263_s2 + $0x58] sm:$0xff] }
 0x123   :  { %7398 = vst [vmem:[#allocation51_spill] sm:$0xff] %v4315_v43 }
 0x124   :  { %3380 = vmatpush.msrb.mxu1 %v453_v20  ;;  %619 = vmatpush.msra.mxu0 %v453_v20 }
 0x125   :  { %1394 = vrot.lane.b32.xlu2 %v3850_v47, %s3627_s14 }
 0x126   :  { %1542 = vrot.lane.b32.xlu0 %v3770_v27, %s3628_s3  ;;  %1558 = vrot.lane.b32.xlu1 %v3803_v36, %s3628_s3  ;;  %v1169_v58 = vpop.permute.xlu0 %1168  ;;  %v3284_v27 = vld [vmem:[%s7262_s7 + $0x2] sm:$0x3] }
 0x127   :  { %v4323_v15 = vpop.permute.xlu2 %1338  ;;  %v1185_v30 = vpop.permute.xlu1 %1184  ;;  %v4340_v36 = vperm.slane %v3284_v27, 0 }
 0x128   :  { %v4327_v41 = vsel %vm1200_vm2, %v1169_v58, %v1185_v30  ;;  %v4331_v25 = vsel %vm1200_vm2, %v1185_v30, %v1169_v58  ;;  %v1144_v30 = vsel %vm1128_vm3, %v4035_v9, %v4033_v8 }
 0x129   :  { %7399 = vst [vmem:[#allocation52_spill] sm:$0xff] %v4327_v41 }
 0x12a   :  { %7400 = vst [vmem:[#allocation53_spill] sm:$0xff] %v4331_v25  ;;  %v1166_v25 = vmul.f32 %v4340_v36, %v1144_v30 }
 0x12d   :  { %1556 = vrot.lane.b32.xlu2 %v3811_v38, %s3628_s3 }
 0x12e   :  { %1410 = vrot.lane.b32.xlu0 %v3873_v50, %s3627_s14  ;;  %1540 = vrot.lane.b32.xlu1 %v3795_v34, %s3628_s3  ;;  %v1042_v58 = vpop.permute.xlu0 %1041 }
 0x12f   :  { %v4355_v27 = vpop.permute.xlu2 %1318  ;;  %v1059_v38 = vsel %vm1057_vm1, %v1026_v37, %v1042_v58  ;;  %v4361_v43 = vsel %vm1057_vm1, %v1042_v58, %v1026_v37  ;;  %v1024_v8 = vpop.permute.xlu1 %1023  ;;  %v449_v37 = vld [vmem:[%s7263_s2 + $0x38] sm:$0xff]  ;;  %v1143_v58 = vsel %vm1128_vm3, %v4013_v4, %v4047_v12 }
 0x130   :  { %v4364_v9 = vmul.f32 %v4276_v44, %v1059_v38  ;;  %v1058_v34 = vsel %vm1057_vm1, %v1024_v8, %v1040_v24  ;;  %v4370_v41 = vsel %vm1057_vm1, %v1040_v24, %v1024_v8  ;;  %3381 = vmatpush.msrb.mxu1 %v449_v37  ;;  %v445_v8 = vld [vmem:[%s7263_s2 + $0x18] sm:$0xff]  ;;  %620 = vmatpush.msra.mxu0 %v449_v37  ;;  %v3287_v24 = vld [vmem:[%s7262_s7 + $0xa] sm:$0x3] }
 0x131   :  { %v4374_v63 = vmul.f32 %v4276_v44, %v1058_v34  ;;  %v4391_v30 = vperm.slane %v3287_v24, 1  ;;  %v1164_v20 = vmul.f32 %v4340_v36, %v1143_v58  ;;  %v1142_v58 = vsel %vm1128_vm3, %v4077_v21, %v4025_v7 }
 0x132   :  { %7401 = vst [vmem:[#allocation54_spill] sm:$0xff] %v4364_v9  ;;  %3382 = vmatpush.msrb.mxu1 %v445_v8  ;;  %621 = vmatpush.msra.mxu0 %v445_v8  ;;  %v1162_v8 = vmul.f32 %v4340_v36, %v1142_v58  ;;  %v4434_v7 = vperm.slane %v3287_v24, 0  ;;  %v448_v24 = vld [vmem:[%s7263_s2 + $0x30] sm:$0xff] }
 0x133   :  { %7402 = vst [vmem:[#allocation55_spill] sm:$0xff] %v4374_v63 }
 0x134   :  { %1712 = vmatpush.msra.mxu1 %v1166_v25 }
 0x135   :  { %1538 = vrot.lane.b32.xlu2 %v3850_v47, %s3628_s3 }
 0x136   :  { %1392 = vrot.lane.b32.xlu0 %v3896_v53, %s3627_s14  ;;  %1408 = vrot.lane.b32.xlu1 %v3901_v54, %s3627_s14  ;;  %v1327_v38 = vpop.permute.xlu0 %1326 }
 0x137   :  { %v4398_v34 = vpop.permute.xlu2 %1486  ;;  %v1343_v37 = vpop.permute.xlu1 %1342  ;;  %1713 = vmatpush.msra.mxu1 %v1164_v20 }
 0x138   :  { %v1360_v47 = vsel %vm1344_vm4, %v1343_v37, %v1327_v38 }
 0x139   :  { %v4404_v25 = vmul.f32 %v4391_v30, %v1360_v47  ;;  %1714 = vmatpush.msra.mxu1 %v1162_v8  ;;  %v452_v8 = vld [vmem:[%s7263_s2 + $0x50] sm:$0xff] }
 0x13b   :  { %7403 = vst [vmem:[#allocation56_spill] sm:$0xff] %v4404_v25  ;;  %v456_v25 = vld [vmem:[%s7263_s2 + $0x70] sm:$0xff] }
 0x13c   :  { %577 = vmatpush.msrb.mxu2 %v456_v25 }
 0x13d   :  { %1406 = vrot.lane.b32.xlu2 %v3919_v56, %s3627_s14 }
 0x13e   :  { %1554 = vrot.lane.b32.xlu0 %v3873_v50, %s3628_s3  ;;  %1390 = vrot.lane.b32.xlu1 %v3914_v55, %s3627_s14  ;;  %v1341_v20 = vpop.permute.xlu0 %1340 }
 0x13f   :  { %v4417_v63 = vpop.permute.xlu2 %1468  ;;  %v1359_v47 = vsel %vm1344_vm4, %v1341_v20, %v4306_v35  ;;  %v1323_v9 = vpop.permute.xlu1 %1322  ;;  %578 = vmatpush.msrb.mxu2 %v452_v8 }
 0x140   :  { %v4423_v44 = vmul.f32 %v4391_v30, %v1359_v47  ;;  %v1358_v58 = vsel %vm1344_vm4, %v4323_v15, %v1323_v9  ;;  %v1352_v47 = vsel %vm1344_vm4, %v1327_v38, %v1343_v37 }
 0x141   :  { %v4429_v50 = vmul.f32 %v4391_v30, %v1358_v58  ;;  %v1351_v58 = vsel %vm1344_vm4, %v4306_v35, %v1341_v20  ;;  %v1382_v25 = vmul.f32 %v4434_v7, %v1352_v47  ;;  %579 = vmatpush.msrb.mxu2 %v448_v24  ;;  %v444_v35 = vld [vmem:[%s7263_s2 + $0x10] sm:$0xff]  ;;  %v1350_v47 = vsel %vm1344_vm4, %v1323_v9, %v4323_v15 }
 0x142   :  { %7404 = vst [vmem:[#allocation57_spill] sm:$0xff] %v4423_v44  ;;  %v1380_v20 = vmul.f32 %v4434_v7, %v1351_v58  ;;  %v3289_v58 = vld [vmem:[%s7262_s7 + $0xe] sm:$0x3]  ;;  %v3573_v44 = vld [vmem:[%s7260_s0 + $0x50] sm:$0xff] }
 0x143   :  { %7405 = vst [vmem:[#allocation58_spill] sm:$0xff] %v4429_v50  ;;  %580 = vmatpush.msrb.mxu2 %v444_v35  ;;  %v1378_v50 = vmul.f32 %v4434_v7, %v1350_v47  ;;  %v4482_v15 = vperm.slane %v3289_v58, 0 }
 0x145   :  { %1388 = vrot.lane.b32.xlu2 %v3886_v51, %s3627_s14  ;;  %1794 = vmatpush.msra.mxu2 %v1382_v25  ;;  %v4484_v25 = vperm.slane %v3289_v58, 1 }
 0x146   :  { %1536 = vrot.lane.b32.xlu0 %v3896_v53, %s3628_s3  ;;  %1552 = vrot.lane.b32.xlu1 %v3901_v54, %s3628_s3  ;;  %v1321_v38 = vpop.permute.xlu0 %1320 }
 0x147   :  { %v4454_v37 = vpop.permute.xlu2 %1330  ;;  %v1337_v8 = vpop.permute.xlu1 %1336  ;;  %1795 = vmatpush.msra.mxu2 %v1380_v20 }
 0x148   :  { %v1357_v53 = vsel %vm1344_vm4, %v1337_v8, %v1321_v38  ;;  %v1349_v24 = vsel %vm1344_vm4, %v1321_v38, %v1337_v8 }
 0x149   :  { %v4466_v54 = vmul.f32 %v4391_v30, %v1357_v53  ;;  %v1376_v9 = vmul.f32 %v4434_v7, %v1349_v24  ;;  %1796 = vmatpush.msra.mxu2 %v1378_v50 }
 0x14b   :  { %7406 = vst [vmem:[#allocation59_spill] sm:$0xff] %v4466_v54  ;;  %1797 = vmatpush.msra.mxu2 %v1376_v9 }
 0x14d   :  { %1550 = vrot.lane.b32.xlu2 %v3919_v56, %s3628_s3  ;;  %v1141_v56 = vsel %vm1128_vm3, %v4095_v28, %v4093_v26  ;;  %v3576_v28 = vld [vmem:[%s7260_s0 + $0x20] sm:$0xff] }
 0x14e   :  { %1404 = vrot.lane.b32.xlu0 %v3891_v52, %s3627_s14  ;;  %1534 = vrot.lane.b32.xlu1 %v3914_v55, %s3628_s3 }
 0x14f   :  { %v4486_v38 = vpop.permute.xlu2 %1312  ;;  %v1335_v8 = vpop.permute.xlu0 %1334 }
 0x150   :  { %v1348_v35 = vsel %vm1344_vm4, %v4355_v27, %v1335_v8  ;;  %v1356_v55 = vsel %vm1344_vm4, %v1335_v8, %v4355_v27  ;;  %v1471_v20 = vpop.permute.xlu1 %1470  ;;  %v1140_v27 = vsel %vm1128_vm3, %v4065_v18, %v4107_v33 }
 0x151   :  { %v1374_v47 = vmul.f32 %v4434_v7, %v1348_v35  ;;  %v4500_v53 = vmul.f32 %v4391_v30, %v1356_v55  ;;  %v1496_v50 = vsel %vm1488_vm5, %v1471_v20, %v4398_v34  ;;  %v1504_v24 = vsel %vm1488_vm5, %v4398_v34, %v1471_v20 }
 0x152   :  { %v1526_v58 = vmul.f32 %v4482_v15, %v1496_v50  ;;  %v4514_v8 = vmul.f32 %v4484_v25, %v1504_v24  ;;  %v1160_v35 = vmul.f32 %v4340_v36, %v1141_v56  ;;  %v1158_v34 = vmul.f32 %v4340_v36, %v1140_v27 }
 0x153   :  { %7407 = vst [vmem:[#allocation60_spill] sm:$0xff] %v4500_v53  ;;  %1798 = vmatpush.msra.mxu2 %v1374_v47  ;;  %v454_v47 = vld [vmem:[%s7263_s2 + $0x60] sm:$0xff]  ;;  %v1139_v50 = vsel %vm1128_vm3, %v4129_v2, %v4081_v23  ;;  %v7439_v2 = vld [vmem:[#allocation36_spill] sm:$0xff] }
 0x154   :  { %7408 = vst [vmem:[#allocation61_spill] sm:$0xff] %v4514_v8  ;;  %1835 = vmatpush.msrb.mxu0 %v1526_v58  ;;  %1715 = vmatpush.msra.mxu1 %v1160_v35  ;;  %v450_v58 = vld [vmem:[%s7263_s2 + $0x40] sm:$0xff] }
 0x155   :  { %1532 = vrot.lane.b32.xlu2 %v3886_v51, %s3628_s3  ;;  %495 = vmatpush.msra.mxu3 %v454_v47  ;;  %v446_v35 = vld [vmem:[%s7263_s2 + $0x20] sm:$0xff] }
 0x156   :  { %1386 = vrot.lane.b32.xlu0 %v3863_v48, %s3627_s14  ;;  %1402 = vrot.lane.b32.xlu1 %v3868_v49, %s3627_s14 }
 0x157   :  { %v4524_v9 = vpop.permute.xlu2 %1480  ;;  %1716 = vmatpush.msra.mxu1 %v1158_v34  ;;  %496 = vmatpush.msra.mxu3 %v450_v58  ;;  %v1156_v34 = vmul.f32 %v4340_v36, %v1139_v50 }
 0x158   :  { %v1317_v55 = vpop.permute.xlu0 %1316  ;;  %v1333_v20 = vpop.permute.xlu1 %1332 }
 0x159   :  { %v1347_v56 = vsel %vm1344_vm4, %v1317_v55, %v1333_v20  ;;  %v1355_v51 = vsel %vm1344_vm4, %v1333_v20, %v1317_v55  ;;  %497 = vmatpush.msra.mxu3 %v446_v35  ;;  %1717 = vmatpush.msra.mxu1 %v1156_v34  ;;  %v442_v55 = vld [vmem:[%s7263_s2] sm:$0xff] }
 0x15a   :  { %v1372_v24 = vmul.f32 %v4434_v7, %v1347_v56  ;;  %v4539_v27 = vmul.f32 %v4391_v30, %v1355_v51  ;;  %v455_v51 = vld [vmem:[%s7263_s2 + $0x68] sm:$0xff] }
 0x15b   :  { %498 = vmatpush.msra.mxu3 %v442_v55  ;;  %v443_v55 = vld [vmem:[%s7263_s2 + $0x8] sm:$0xff] }
 0x15c   :  { %7409 = vst [vmem:[#allocation62_spill] sm:$0xff] %v4539_v27  ;;  %1799 = vmatpush.msra.mxu2 %v1372_v24 }
 0x15d   :  { %1400 = vrot.lane.b32.xlu2 %v3845_v46, %s3627_s14  ;;  %536 = vmatpush.msrb.mxu3 %v455_v51 }
 0x15e   :  { %1548 = vrot.lane.b32.xlu0 %v3891_v52, %s3628_s3  ;;  %1384 = vrot.lane.b32.xlu1 %v3840_v45, %s3627_s14 }
 0x15f   :  { %v4560_v47 = vpop.permute.xlu2 %1460 }
 0x160   :  { %v1485_v20 = vpop.permute.xlu0 %1484  ;;  %v1315_v56 = vpop.permute.xlu1 %1314 }
 0x161   :  { %v1495_v52 = vsel %vm1488_vm5, %v4417_v63, %v1485_v20  ;;  %v1503_v50 = vsel %vm1488_vm5, %v1485_v20, %v4417_v63  ;;  %v1346_v24 = vsel %vm1344_vm4, %v1315_v56, %v4454_v37  ;;  %v1354_v58 = vsel %vm1344_vm4, %v4454_v37, %v1315_v56  ;;  %v451_v63 = vld [vmem:[%s7263_s2 + $0x48] sm:$0xff]  ;;  %v3286_v56 = vld [vmem:[%s7262_s7 + $0x6] sm:$0x3] }
 0x162   :  { %v1524_v35 = vmul.f32 %v4482_v15, %v1495_v52  ;;  %v4576_v34 = vmul.f32 %v4484_v25, %v1503_v50  ;;  %v1370_v8 = vmul.f32 %v4434_v7, %v1346_v24  ;;  %v4580_v27 = vmul.f32 %v4391_v30, %v1354_v58  ;;  %537 = vmatpush.msrb.mxu3 %v451_v63  ;;  %v447_v37 = vld [vmem:[%s7263_s2 + $0x28] sm:$0xff]  ;;  %v1646_v24 = vld [vmem:[%s7264_s6 + $0x30] sm:$0xff] }
 0x163   :  { %v4618_v63 = vperm.slane %v3286_v56, 0 }
 0x164   :  { %7410 = vst [vmem:[#allocation63_spill] sm:$0xff] %v4576_v34  ;;  %1800 = vmatpush.msra.mxu2 %v1370_v8  ;;  %1836 = vmatpush.msrb.mxu0 %v1524_v35  ;;  %v1647_v35 = vld [vmem:[%s7264_s6 + $0x38] sm:$0xff] }
 0x165   :  { %7411 = vst [vmem:[#allocation64_spill] sm:$0xff] %v4580_v27  ;;  %1528 = vrot.lane.b32.xlu2 %v3840_v45, %s3628_s3  ;;  %538 = vmatpush.msrb.mxu3 %v447_v37  ;;  %v4620_v37 = vperm.slane %v3286_v56, 1 }
 0x166   :  { %1530 = vrot.lane.b32.xlu0 %v3863_v48, %s3628_s3  ;;  %1546 = vrot.lane.b32.xlu1 %v3868_v49, %s3628_s3 }
 0x167   :  { %539 = vmatpush.msrb.mxu3 %v443_v55  ;;  %v4613_v58 = vpop.permute.xlu2 %1474 }
 0x168   :  { %v1467_v8 = vpop.permute.xlu0 %1466  ;;  %v1483_v20 = vpop.permute.xlu1 %1482 }
 0x169   :  { %v1494_v45 = vsel %vm1488_vm5, %v1467_v8, %v1483_v20  ;;  %v1502_v48 = vsel %vm1488_vm5, %v1483_v20, %v1467_v8  ;;  %v266_v51 = vpop.f32.mrf.mxu0  ;;  %v1288_v8 = vsel %vm1272_vm6, %v4023_v6, %v3977_v59  ;;  %v4636_v20 = vsel %vm1272_vm6, %v4021_v5, %v3989_v62 }
 0x16a   :  { %v1522_v49 = vmul.f32 %v4482_v15, %v1494_v45  ;;  %v4607_v52 = vmul.f32 %v4484_v25, %v1502_v48  ;;  %v267_v50 = vadd.f32 %v266_v51, %v3987_v61  ;;  %v1280_v61 = vsel %vm1272_vm6, %v3977_v59, %v4023_v6 }
 0x16b   :  { %v4639_v45 = vmul.f32 %v4618_v63, %v1288_v8  ;;  %v4642_v48 = vmul.f32 %v4620_v37, %v1280_v61  ;;  %v4648_v59 = vsel %vm1272_vm6, %v3989_v62, %v4021_v5  ;;  %v4678_v61 = vsel %vm1272_vm6, %v4045_v11, %v4001_v1 }
 0x16c   :  { %7412 = vst [vmem:[#allocation65_spill] sm:$0xff] %v4607_v52  ;;  %v3244_v55 = vmul.f32 -1.442695, %v267_v50  ;;  %1837 = vmatpush.msrb.mxu0 %v1522_v49 }
 0x16d   :  { %1680 = vperm.xlu2 %3394, %v1646_v24  }
 0x16e   :  { %3395 = vpow2.f32 %v3244_v55  ;;  %1544 = vrot.lane.b32.xlu0 %v3845_v46, %s3628_s3  ;;  %1685 = vperm.xlu1 %3393, %v1647_v35  }
 0x16f   :  { %v269_v56 = vpop.f32.mrf.mxu2 }
 0x170   :  { %v270_v46 = vadd.f32 %v269_v56, %v3999_v0  ;;  %v1329_v6 = vpop.permute.xlu0 %1328  ;;  %v1465_v51 = vpop.permute.xlu1 %1464  ;;  %v4708_v56 = vsel %vm1272_vm6, %v4037_v10, %v4079_v22 }
 0x171   :  { %v1345_v49 = vsel %vm1344_vm4, %v4486_v38, %v1329_v6  ;;  %v1353_v50 = vsel %vm1344_vm4, %v1329_v6, %v4486_v38  ;;  %v1493_v24 = vsel %vm1488_vm5, %v1465_v51, %v4524_v9  ;;  %v1501_v62 = vsel %vm1488_vm5, %v4524_v9, %v1465_v51  ;;  %v1645_v9 = vld [vmem:[%s7264_s6 + $0x28] sm:$0xff]  ;;  %v4728_v6 = vpop.permute.xlu2 %1398  ;;  %v7416_v51 = vld [vmem:[#allocation22_spill] sm:$0xff] }
 0x172   :  { %v3245_v5 = vmul.f32 -1.442695, %v270_v46  ;;  %v1368_v0 = vmul.f32 %v4434_v7, %v1345_v49  ;;  %v4665_v35 = vmul.f32 %v4391_v30, %v1353_v50  ;;  %v1520_v55 = vmul.f32 %v4482_v15, %v1493_v24  ;;  %v7415_v46 = vld [vmem:[#allocation29_spill] sm:$0xff]  ;;  %v7419_v24 = vld [vmem:[#allocation26_spill] sm:$0xff] }
 0x173   :  { %v4672_v38 = vsel %vm1272_vm6, %v4001_v1, %v4045_v11  ;;  %v4684_v7 = vsel %vm1272_vm6, %v4061_v16, %v4063_v17  ;;  %v4687_v30 = vmul.f32 %v4484_v25, %v1501_v62  ;;  %v4696_v1 = vsel %vm1272_vm6, %v4063_v17, %v4061_v16  ;;  %v7417_v49 = vld [vmem:[#allocation21_spill] sm:$0xff] }
 0x174   :  { %7413 = vst [vmem:[#allocation66_spill] sm:$0xff] %v4665_v35  ;;  %v3396_v8 = vpop.eup %3395  ;;  %v4702_v11 = vsel %vm1272_vm6, %v4079_v22, %v4037_v10  ;;  %3397 = vpow2.f32 %v3245_v5  ;;  %1801 = vmatpush.msra.mxu2 %v1368_v0  ;;  %1838 = vmatpush.msrb.mxu0 %v1520_v55  ;;  %v4714_v16 = vsel %vm1272_vm6, %v4049_v13, %v4105_v32  ;;  %v3571_v5 = vld [vmem:[%s7260_s0 + $0x70] sm:$0xff]  ;;  %v3572_v35 = vld [vmem:[%s7260_s0 + $0x60] sm:$0xff] }
 0x175   :  { %7414 = vst [vmem:[#allocation67_spill] sm:$0xff] %v4687_v30  ;;  %v4720_v17 = vsel %vm1272_vm6, %v4105_v32, %v4049_v13  ;;  %v1138_v10 = vsel %vm1128_vm3, %v7415_v46, %v4141_v60  ;;  %v4726_v22 = vadd.f32 1.0, %v3396_v8  ;;  %v4734_v50 = vsel %vm1272_vm6, %v7417_v49, %v7416_v51  ;;  %v7418_v32 = vld [vmem:[#allocation18_spill] sm:$0xff]  ;;  %v7420_v55 = vld [vmem:[#allocation20_spill] sm:$0xff] }
 0x176   :  { %v4740_v13 = vsel %vm1272_vm6, %v7416_v51, %v7417_v49  ;;  %v4746_v62 = vsel %vm1272_vm6, %v7419_v24, %v7418_v32  ;;  %1675 = vperm.xlu0 %3392, %v1645_v9   ;;  %1802 = vmatpush.msra.mxu2 %v3571_v5  ;;  %v4755_v0 = vsel %vm1272_vm6, %v7418_v32, %v7419_v24  ;;  %v7421_v51 = vld [vmem:[#allocation23_spill] sm:$0xff]  ;;  %v7422_v5 = vld [vmem:[#allocation4_spill] sm:$0xff]  ;;  %v7438_v46 = vld [vmem:[#allocation42_spill] sm:$0xff] }
 0x177   :  { %v4761_v8 = vsel %vm1200_vm2, %v7420_v55, %v4153_v42  ;;  %v1137_v9 = vsel %vm1128_vm3, %v7421_v51, %v4157_v3  ;;  %3399 = vrcp.f32 %v4726_v22  ;;  %v272_v49 = vpop.f32.mrf.mxu2  ;;  %v4772_v32 = vsel %vm1200_vm2, %v4153_v42, %v7420_v55  ;;  %v7423_v55 = vld [vmem:[#allocation25_spill] sm:$0xff]  ;;  %v7431_v3 = vld [vmem:[#allocation47_spill] sm:$0xff]  ;;  %v7433_v60 = vld [vmem:[#allocation32_spill] sm:$0xff] }
 0x178   :  { %v4778_v24 = vsel %vm1200_vm2, %v4167_v29, %v4171_v31  ;;  %v273_v30 = vadd.f32 %v272_v49, %v7422_v5  ;;  %v1463_v52 = vpop.permute.xlu0 %1462  ;;  %v1479_v34 = vpop.permute.xlu1 %1478  ;;  %1803 = vmatpush.msra.mxu2 %v3572_v35  ;;  %v1154_v27 = vmul.f32 %v4340_v36, %v1138_v10  ;;  %v4789_v42 = vsel %vm1200_vm2, %v4171_v31, %v4167_v29  ;;  %v3285_v10 = vld [vmem:[%s7262_s7 + $0x4] sm:$0x3]  ;;  %v7432_v51 = vld [vmem:[#allocation39_spill] sm:$0xff] }
 0x179   :  { %v4795_v49 = vsel %vm1057_vm1, %v4191_v14, %v7423_v55  ;;  %v1492_v5 = vsel %vm1488_vm5, %v1463_v52, %v1479_v34  ;;  %v1500_v35 = vsel %vm1488_vm5, %v1479_v34, %v1463_v52  ;;  %v1152_v55 = vmul.f32 %v4340_v36, %v1137_v9  ;;  %v7425_v34 = vld [vmem:[#allocation28_spill] sm:$0xff]  ;;  %v1644_v36 = vld [vmem:[%s7264_s6 + $0x20] sm:$0xff]  ;;  %v7430_v14 = vld [vmem:[#allocation45_spill] sm:$0xff] }
 0x17a   :  { %v3398_v53 = vpop.eup %3397  ;;  %v3246_v54 = vmul.f32 -1.442695, %v273_v30  ;;  %v1518_v29 = vmul.f32 %v4482_v15, %v1492_v5  ;;  %v4806_v31 = vmul.f32 %v4484_v25, %v1500_v35  ;;  %1804 = vmatpush.msra.mxu2 %v3573_v44  ;;  %1718 = vmatpush.msra.mxu1 %v1154_v27  ;;  %v4816_v52 = vsel %vm1200_vm2, %v4195_v19, %v7425_v34  ;;  %v7426_v5 = vld [vmem:[#allocation37_spill] sm:$0xff]  ;;  %v7427_v9 = vld [vmem:[#allocation38_spill] sm:$0xff] }
 0x17b   :  { %v4822_v30 = vsel %vm1200_vm2, %v7425_v34, %v4195_v19  ;;  %v4828_v44 = vsel %vm1057_vm1, %v7426_v5, %v4207_v40  ;;  %v4830_v27 = vadd.f32 1.0, %v3398_v53  ;;  %v7428_v35 = vld [vmem:[#allocation30_spill] sm:$0xff]  ;;  %v7429_v19 = vld [vmem:[#allocation44_spill] sm:$0xff]  ;;  %v1069_v40 = vsel %vm1057_vm1, %v7431_v3, %v7430_v14 }
 0x17c   :  { %7424 = vst [vmem:[#allocation22_spill] sm:$0xff] %v4806_v31  ;;  %v4839_v31 = vsel %vm1200_vm2, %v7428_v35, %v7427_v9  ;;  %v4842_v34 = vperm.slane %v7429_v19, 0  ;;  %3401 = vpow2.f32 %v3246_v54  ;;  %v3574_v53 = vld [vmem:[%s7260_s0 + $0x40] sm:$0xff]  ;;  %1719 = vmatpush.msra.mxu1 %v1152_v55  ;;  %v4857_v19 = vsel %vm1200_vm2, %v7427_v9, %v7428_v35  ;;  %1839 = vmatpush.msrb.mxu0 %v1518_v29  ;;  %v7434_v54 = vld [vmem:[#allocation41_spill] sm:$0xff]  ;;  %v7435_v55 = vld [vmem:[#allocation40_spill] sm:$0xff] }
 0x17d   :  { %1805 = vmatpush.msra.mxu2 %v3574_v53  ;;  %v4851_v5 = vpop.eup %3399  ;;  %v4863_v3 = vsel %vm1057_vm1, %v7433_v60, %v7432_v51  ;;  %v4865_v14 = vperm.slane %v3285_v10, 0  ;;  %3403 = vrcp.f32 %v4830_v27  ;;  %v4872_v53 = vsel %vm1200_vm2, %v7435_v55, %v7434_v54  ;;  %v3575_v51 = vld [vmem:[%s7260_s0 + $0x30] sm:$0xff]  ;;  %v7437_v60 = vld [vmem:[#allocation34_spill] sm:$0xff] }
 0x17e   :  { %7436 = vst [vmem:[#allocation21_spill] sm:$0xff] %v4872_v53  ;;  %v4878_v9 = vsel %vm1200_vm2, %v7434_v54, %v7435_v55  ;;  %v4880_v35 = vperm.slane %v3285_v10, 1  ;;  %1670 = vperm.xlu0 %3392, %v1644_v36   ;;  %v323_v29 = vmul.f32 %v4851_v5, %v4726_v22  ;;  %v4891_v23 = vsel %vm1057_vm1, %v7438_v46, %v7437_v60  ;;  %v7440_v54 = vld [vmem:[#allocation43_spill] sm:$0xff]  ;;  %v4908_v55 = vpop.permute.xlu2 %1412  ;;  %v7443_v60 = vld [vmem:[#allocation5_spill] sm:$0xff] }
 0x17f   :  { %1806 = vmatpush.msra.mxu2 %v3575_v51  ;;  %v4897_v10 = vsel %vm1200_vm2, %v7440_v54, %v7439_v2  ;;  %v4903_v51 = vsel %vm1200_vm2, %v7439_v2, %v7440_v54  ;;  %v4906_v36 = vmul.f32 %v4842_v34, %v1069_v40  ;;  %v275_v33 = vpop.f32.mrf.mxu2  ;;  %v331_v12 = vand.u32 2147483647, %v4726_v22 }
 0x180   :  { %7441 = vst [vmem:[#allocation18_spill] sm:$0xff] %v4897_v10  ;;  %v276_v46 = vadd.f32 %v275_v33, %v7443_v60  ;;  %v1477_v18 = vpop.permute.xlu0 %1476  ;;  %v1459_v26 = vpop.permute.xlu1 %1458  ;;  %v324_v21 = vsub.f32 1.0, %v323_v29  ;;  %v333_v2 = vand.u32 2147483648, %v4726_v22  ;;  %vm328_vm7 = vweird.f32 %v4851_v5 }
 0x181   :  { %7442 = vst [vmem:[#allocation26_spill] sm:$0xff] %v4903_v51  ;;  %1807 = vmatpush.msra.mxu2 %v3576_v28  ;;  %v1491_v40 = vsel %vm1488_vm5, %v4560_v47, %v1477_v18  ;;  %v1499_v60 = vsel %vm1488_vm5, %v1477_v18, %v4560_v47  ;;  %v1490_v33 = vsel %vm1488_vm5, %v1459_v26, %v4613_v58  ;;  %v3577_v18 = vld [vmem:[%s7260_s0 + $0x10] sm:$0xff]  ;;  %vm327_vm8 = vweird.f32 %v4726_v22 }
 0x182   :  { %v1498_v28 = vsel %vm1488_vm5, %v4613_v58, %v1459_v26  ;;  %v3402_v29 = vpop.eup %3401  ;;  %v3247_v54 = vmul.f32 -1.442695, %v276_v46  ;;  %v1516_v4 = vmul.f32 %v4482_v15, %v1491_v40  ;;  %v4930_v10 = vmul.f32 %v4484_v25, %v1499_v60  ;;  %v3578_v40 = vld [vmem:[%s7260_s0] sm:$0xff]  ;;  %vm4961_vm9 = vmor %vm327_vm8, %vm328_vm7 }
 0x183   :  { %v1514_v53 = vmul.f32 %v4482_v15, %v1490_v33  ;;  %1808 = vmatpush.msra.mxu2 %v3577_v18  ;;  %v4936_v47 = vpop.eup %3403  ;;  %v4938_v51 = vadd.f32 1.0, %v3402_v29  ;;  %v4941_v26 = vmul.f32 %v4484_v25, %v1498_v28  ;;  %v325_v58 = vmul.f32 %v4851_v5, %v324_v21 }
 0x184   :  { %v4947_v46 = vmul.f32 %v4842_v34, %v4312_v57  ;;  %3405 = vpow2.f32 %v3247_v54  ;;  %v338_v60 = vmul.f32 %v4936_v47, %v4830_v27  ;;  %v1094_v33 = vmul.f32 %v4842_v34, %v4795_v49  ;;  %1840 = vmatpush.msrb.mxu0 %v1516_v4 }
 0x185   :  { %7444 = vst [vmem:[#allocation20_spill] sm:$0xff] %v4941_v26  ;;  %1809 = vmatpush.msra.mxu2 %v3578_v40  ;;  %3407 = vrcp.f32 %v4938_v51  ;;  %v326_v21 = vadd.f32 %v4851_v5, %v325_v58  ;;  %v1308_v57 = vmul.f32 %v4618_v63, %v4648_v59  ;;  %v334_v29 = vor.u32 1.1754944e-38, %v333_v2  ;;  %v7447_v2 = vld [vmem:[#allocation2_spill] sm:$0xff] }
 0x186   :  { %v1309_v54 = vmul.f32 %v4620_v37, %v4636_v20  ;;  %v339_v49 = vsub.f32 1.0, %v338_v60  ;;  %1720 = vmatpush.msra.mxu1 %v1094_v33  ;;  %1841 = vmatpush.msrb.mxu0 %v1514_v53  ;;  %vm332_vm11 = vcmp.eq.f32.partialorder %v331_v12, 8.507059e+37  ;;  %v1306_v59 = vmul.f32 %v4618_v63, %v4678_v61  ;;  %v4980_v33 = vpop.permute.xlu2 %1394 }
 0x187   :  { %v278_v4 = vpop.f32.mrf.mxu2  ;;  %v330_v22 = vsel %vm4961_vm9, %v4851_v5, %v326_v21  ;;  %v1307_v18 = vmul.f32 %v4620_v37, %v4672_v38  ;;  %v1304_v53 = vmul.f32 %v4618_v63, %v4696_v1  ;;  %vm343_vm12 = vweird.f32 %v4936_v47 }
 0x188   :  { %v279_v58 = vadd.f32 %v278_v4, %v7447_v2  ;;  %v1457_v40 = vpop.permute.xlu0 %1456  ;;  %v1473_v26 = vpop.permute.xlu1 %1472  ;;  %v4975_v20 = vsel %vm332_vm11, %v334_v29, %v330_v22  ;;  %v340_v60 = vmul.f32 %v4936_v47, %v339_v49  ;;  %v348_v38 = vand.u32 2147483648, %v4830_v27 }
 0x189   :  { %v1489_v12 = vsel %vm1488_vm5, %v1457_v40, %v1473_v26  ;;  %v1497_v61 = vsel %vm1488_vm5, %v1473_v26, %v1457_v40  ;;  %3252 = vmatmul.msk.f32.vlgmr.msra.gmra.mxu3 %vm458_vm10, %v4975_v20  ;;  %3268 = vmatmul.msk.f32.vlgmr.msrb.gmra.mxu2 %vm458_vm10, %v4975_v20  ;;  %v1305_v4 = vmul.f32 %v4620_v37, %v4684_v7  ;;  %vm342_vm13 = vweird.f32 %v4830_v27 }
 0x18a   :  { %v3406_v1 = vpop.eup %3405  ;;  %v3248_v5 = vmul.f32 -1.442695, %v279_v58  ;;  %v1512_v21 = vmul.f32 %v4482_v15, %v1489_v12  ;;  %v4994_v28 = vmul.f32 %v4484_v25, %v1497_v61  ;;  %3276 = vmatmul.msk.f32.vlgmr.msra.gmra.mxu0 %vm458_vm10, %v4975_v20  ;;  %1753 = vmatpush.msra.mxu3 %v4639_v45  ;;  %v341_v26 = vadd.f32 %v4936_v47, %v340_v60  ;;  %v3288_v15 = vld [vmem:[%s7262_s7 + $0xc] sm:$0x3]  ;;  %vm5014_vm14 = vmor %vm342_vm13, %vm343_vm12 }
 0x18b   :  { %v5000_v29 = vpop.eup %3407  ;;  %v5002_v49 = vadd.f32 1.0, %v3406_v1  ;;  %1958 = vmatpush.msrb.mxu2 %v4642_v48  ;;  %v346_v25 = vand.u32 2147483647, %v4830_v27  ;;  %v1302_v48 = vmul.f32 %v4618_v63, %v4708_v56  ;;  %v1303_v7 = vmul.f32 %v4620_v37, %v4702_v11 }
 0x18c   :  { %3409 = vpow2.f32 %v3248_v5  ;;  %1754 = vmatpush.msra.mxu3 %v1308_v57  ;;  %v353_v22 = vmul.f32 %v5000_v29, %v4938_v51  ;;  %1842 = vmatpush.msrb.mxu0 %v1512_v21  ;;  %v345_v27 = vsel %vm5014_vm14, %v4936_v47, %v341_v26  ;;  %v1300_v57 = vmul.f32 %v4618_v63, %v4720_v17  ;;  %v7450_v17 = vld [vmem:[#allocation3_spill] sm:$0xff] }
 0x18d   :  { %3411 = vrcp.f32 %v5002_v49  ;;  %1959 = vmatpush.msrb.mxu2 %v1309_v54  ;;  %v5031_v56 = vperm.slane %v3288_v15, 0  ;;  %v5033_v11 = vperm.slane %v3288_v15, 1  ;;  %v349_v2 = vor.u32 1.1754944e-38, %v348_v38 }
 0x18e   :  { %1755 = vmatpush.msra.mxu3 %v1306_v59  ;;  %v354_v58 = vsub.f32 1.0, %v353_v22  ;;  %vm347_vm2 = vcmp.eq.f32.partialorder %v346_v25, 8.507059e+37  ;;  %v1301_v54 = vmul.f32 %v4620_v37, %v4714_v16  ;;  %v1296_v60 = vmul.f32 %v4618_v63, %v4755_v0 }
 0x18f   :  { %1960 = vmatpush.msrb.mxu2 %v1307_v18  ;;  %v281_v40 = vpop.f32.mrf.mxu2  ;;  %v363_v47 = vand.u32 2147483648, %v4938_v51  ;;  %v5041_v1 = vsel %vm347_vm2, %v349_v2, %v345_v27  ;;  %vm358_vm4 = vweird.f32 %v5000_v29  ;;  %v1092_v27 = vmul.f32 %v4842_v34, %v4828_v44 }
 0x190   :  { %1756 = vmatpush.msra.mxu3 %v1304_v53  ;;  %v282_v59 = vadd.f32 %v281_v40, %v7450_v17  ;;  %v1415_v12 = vpop.permute.xlu0 %1414  ;;  %v1397_v61 = vpop.permute.xlu1 %1396  ;;  %v355_v38 = vmul.f32 %v5000_v29, %v354_v58  ;;  %vm357_vm5 = vweird.f32 %v4938_v51  ;;  %v361_v2 = vand.u32 2147483647, %v4938_v51  ;;  %v3290_v51 = vld [vmem:[%s7262_s7 + $0x10] sm:$0x3] }
 0x191   :  { %1961 = vmatpush.msrb.mxu2 %v1305_v4  ;;  %v1424_v16 = vsel %vm1416_vm15, %v4728_v6, %v1415_v12  ;;  %v1432_v0 = vsel %vm1416_vm15, %v1415_v12, %v4728_v6  ;;  %v1423_v18 = vsel %vm1416_vm15, %v1397_v61, %v4908_v55  ;;  %v1431_v53 = vsel %vm1416_vm15, %v4908_v55, %v1397_v61  ;;  %v5070_v55 = vpop.permute.xlu2 %1556  ;;  %vm5096_vm6 = vmor %vm357_vm5, %vm358_vm4 }
 0x192   :  { %v3410_v5 = vpop.eup %3409  ;;  %v3249_v21 = vmul.f32 -1.442695, %v282_v59  ;;  %v1454_v26 = vmul.f32 %v5031_v56, %v1424_v16  ;;  %v5059_v4 = vmul.f32 %v5033_v11, %v1432_v0  ;;  %v1452_v15 = vmul.f32 %v5031_v56, %v1423_v18  ;;  %3253 = vmatmul.msk.f32.gmra.mxu3 %vm458_vm10, %v5041_v1  ;;  %3269 = vmatmul.msk.f32.gmra.mxu2 %vm458_vm10, %v5041_v1  ;;  %v7453_v59 = vld [vmem:[#allocation7_spill] sm:$0xff] }
 0x193   :  { %v5066_v6 = vpop.eup %3411  ;;  %v5068_v25 = vadd.f32 1.0, %v3410_v5  ;;  %v5073_v45 = vmul.f32 %v5033_v11, %v1431_v53  ;;  %3277 = vmatmul.msk.f32.gmra.mxu0 %vm458_vm10, %v5041_v1  ;;  %1757 = vmatpush.msra.mxu3 %v1302_v48  ;;  %v356_v22 = vadd.f32 %v5000_v29, %v355_v38  ;;  %v1298_v48 = vmul.f32 %v4618_v63, %v4740_v13 }
 0x194   :  { %3413 = vpow2.f32 %v3249_v21  ;;  %1962 = vmatpush.msrb.mxu2 %v1303_v7  ;;  %v368_v58 = vmul.f32 %v5066_v6, %v5002_v49  ;;  %1843 = vmatpush.msrb.mxu0 %v1454_v26  ;;  %v1299_v40 = vmul.f32 %v4620_v37, %v4734_v50  ;;  %v1297_v44 = vmul.f32 %v4620_v37, %v4746_v62 }
 0x195   :  { %3415 = vrcp.f32 %v5068_v25  ;;  %1758 = vmatpush.msra.mxu3 %v1300_v57  ;;  %1721 = vmatpush.msra.mxu1 %v1092_v27  ;;  %v5100_v57 = vperm.slane %v3290_v51, 1  ;;  %v360_v63 = vsel %vm5096_vm6, %v5000_v29, %v356_v22  ;;  %v1238_v37 = vmul.f32 %v4865_v14, %v4772_v32 }
 0x196   :  { %1963 = vmatpush.msrb.mxu2 %v1301_v54  ;;  %v369_v50 = vsub.f32 1.0, %v368_v58  ;;  %1844 = vmatpush.msrb.mxu0 %v1452_v15  ;;  %vm1560_vm7 = vcmp.lt.s32.totalorder %v4264_v39, 111  ;;  %v364_v62 = vor.u32 1.1754944e-38, %v363_v47  ;;  %v1239_v17 = vmul.f32 %v4880_v35, %v4761_v8  ;;  %v5710_v39 = vld [vmem:[%s7265_s5 + $0xe0] sm:$0xff] }
 0x197   :  { %1759 = vmatpush.msra.mxu3 %v1298_v48  ;;  %v284_v13 = vpop.f32.mrf.mxu2  ;;  %v1090_v54 = vmul.f32 %v4842_v34, %v4863_v3  ;;  %vm362_vm8 = vcmp.eq.f32.partialorder %v361_v2, 8.507059e+37  ;;  %v1236_v38 = vmul.f32 %v4865_v14, %v4789_v42  ;;  %v376_v47 = vand.u32 2147483647, %v5002_v49 }
 0x198   :  { %1964 = vmatpush.msrb.mxu2 %v1299_v40  ;;  %v285_v12 = vadd.f32 %v284_v13, %v7453_v59  ;;  %v5113_v29 = vpop.permute.xlu0 %1542  ;;  %v5115_v61 = vpop.permute.xlu1 %1558  ;;  %v370_v32 = vmul.f32 %v5066_v6, %v369_v50  ;;  %v5124_v3 = vsel %vm362_vm8, %v364_v62, %v360_v63  ;;  %v1237_v16 = vmul.f32 %v4880_v35, %v4778_v24 }
 0x199   :  { %1760 = vmatpush.msra.mxu3 %v1296_v60  ;;  %v1576_v8 = vsel %vm1560_vm7, %v5115_v61, %v5113_v29  ;;  %1722 = vmatpush.msra.mxu1 %v1090_v54  ;;  %vm373_vm9 = vweird.f32 %v5066_v6  ;;  %v378_v24 = vand.u32 2147483648, %v5002_v49  ;;  %v1234_v21 = vmul.f32 %v4865_v14, %v4822_v30 }
 0x19a   :  { %v3414_v0 = vpop.eup %3413  ;;  %1965 = vmatpush.msrb.mxu2 %v1297_v44  ;;  %v3250_v18 = vmul.f32 -1.442695, %v285_v12  ;;  %v5130_v53 = vmul.f32 %v5100_v57, %v1576_v8  ;;  %3254 = vmatmul.msk.f32.gmra.mxu3 %vm458_vm10, %v5124_v3  ;;  %v371_v42 = vadd.f32 %v5066_v6, %v370_v32  ;;  %v1088_v26 = vmul.f32 %v4842_v34, %v4891_v23  ;;  %v5159_v23 = vpop.permute.xlu2 %1538 }
 0x19b   :  { %v5136_v60 = vpop.eup %3415  ;;  %v5138_v5 = vadd.f32 1.0, %v3414_v0  ;;  %3270 = vmatmul.msk.f32.gmra.mxu2 %vm458_vm10, %v5124_v3  ;;  %3278 = vmatmul.msk.f32.gmra.mxu0 %vm458_vm10, %v5124_v3  ;;  %vm372_vm11 = vweird.f32 %v5002_v49  ;;  %v1235_v22 = vmul.f32 %v4880_v35, %v4816_v52  ;;  %v1082_v27 = vmul.f32 %v4842_v34, %v4361_v43  ;;  %v7463_v49 = vld [vmem:[#allocation18_spill] sm:$0xff]  ;;  %v7464_v52 = vld [vmem:[#allocation53_spill] sm:$0xff] }
 0x19c   :  { %3417 = vpow2.f32 %v3250_v18  ;;  %1761 = vmatpush.msra.mxu3 %v1238_v37  ;;  %1966 = vmatpush.msrb.mxu2 %v1239_v17  ;;  %v383_v15 = vmul.f32 %v5136_v60, %v5068_v25  ;;  %v1080_v30 = vmul.f32 %v4842_v34, %v4370_v41  ;;  %v5161_v2 = vperm.slane %v3290_v51, 0  ;;  %vm5165_vm12 = vmor %vm372_vm11, %vm373_vm9 }
 0x19d   :  { %3419 = vrcp.f32 %v5138_v5  ;;  %1723 = vmatpush.msra.mxu1 %v1088_v26  ;;  %v375_v43 = vsel %vm5165_vm12, %v5066_v6, %v371_v42  ;;  %vm5172_vm13 = vcmp.eq.f32.partialorder %v376_v47, 8.507059e+37  ;;  %v1233_v34 = vmul.f32 %v4880_v35, %v4839_v31  ;;  %v7458_v6 = vld [vmem:[#allocation6_spill] sm:$0xff] }
 0x19e   :  { %1762 = vmatpush.msra.mxu3 %v1236_v38  ;;  %1967 = vmatpush.msrb.mxu2 %v1237_v16  ;;  %v384_v41 = vsub.f32 1.0, %v383_v15  ;;  %v379_v48 = vor.u32 1.1754944e-38, %v378_v24  ;;  %vm387_vm14 = vweird.f32 %v5068_v25  ;;  %v391_v40 = vand.u32 2147483647, %v5068_v25  ;;  %v7459_v47 = vld [vmem:[#allocation26_spill] sm:$0xff]  ;;  %v7460_v24 = vld [vmem:[#allocation21_spill] sm:$0xff] }
 0x19f   :  { %v287_v58 = vpop.f32.mrf.mxu2  ;;  %v1232_v44 = vmul.f32 %v4865_v14, %v4857_v19  ;;  %1724 = vmatpush.msra.mxu1 %v4906_v36  ;;  %vm388_vm2 = vweird.f32 %v5136_v60  ;;  %v393_v31 = vand.u32 2147483648, %v5068_v25  ;;  %v1568_v17 = vsel %vm1560_vm7, %v5113_v29, %v5115_v61  ;;  %v7461_v26 = vld [vmem:[#allocation50_spill] sm:$0xff] }
 0x1a0   :  { %v288_v51 = vadd.f32 %v287_v58, %v7458_v6  ;;  %v1411_v7 = vpop.permute.xlu0 %1410  ;;  %v1541_v63 = vpop.permute.xlu1 %1540  ;;  %v385_v37 = vmul.f32 %v5136_v60, %v384_v41  ;;  %1763 = vmatpush.msra.mxu3 %v1234_v21  ;;  %1968 = vmatpush.msrb.mxu2 %v1235_v22  ;;  %v5198_v13 = vsel %vm5172_vm13, %v379_v48, %v375_v43  ;;  %vm389_vm4 = vmor %vm387_vm14, %vm388_vm2  ;;  %vm392_vm5 = vcmp.eq.f32.partialorder %v391_v40, 8.507059e+37  ;;  %v7462_v22 = vld [vmem:[#allocation49_spill] sm:$0xff]  ;;  %v7465_v40 = vld [vmem:[#allocation52_spill] sm:$0xff] }
 0x1a1   :  { %v1422_v50 = vsel %vm1416_vm15, %v4980_v33, %v1411_v7  ;;  %v1430_v19 = vsel %vm1416_vm15, %v1411_v7, %v4980_v33  ;;  %v1575_v36 = vsel %vm1560_vm7, %v5070_v55, %v1541_v63  ;;  %1725 = vmatpush.msra.mxu1 %v4947_v46  ;;  %v1230_v61 = vmul.f32 %v4865_v14, %v4878_v9 }
 0x1a2   :  { %v3418_v62 = vpop.eup %3417  ;;  %v3251_v54 = vmul.f32 -1.442695, %v288_v51  ;;  %v1450_v59 = vmul.f32 %v5031_v56, %v1422_v50  ;;  %v5207_v33 = vmul.f32 %v5033_v11, %v1430_v19  ;;  %3255 = vmatmul.msk.f32.gmra.mxu3 %vm458_vm10, %v5198_v13  ;;  %1969 = vmatpush.msrb.mxu2 %v1233_v34  ;;  %v5216_v46 = vmul.f32 %v5100_v57, %v1575_v36 }
 0x1a3   :  { %v5211_v12 = vpop.eup %3419  ;;  %v5213_v32 = vadd.f32 1.0, %v3418_v62  ;;  %3271 = vmatmul.msk.f32.gmra.mxu2 %vm458_vm10, %v5198_v13  ;;  %3279 = vmatmul.msk.f32.gmra.mxu0 %vm458_vm10, %v5198_v13  ;;  %v386_v29 = vadd.f32 %v5136_v60, %v385_v37  ;;  %v394_v38 = vor.u32 1.1754944e-38, %v393_v31  ;;  %v1228_v16 = vmul.f32 %v4865_v14, %v7459_v47 }
 0x1a4   :  { %3421 = vpow2.f32 %v3251_v54  ;;  %v398_v8 = vmul.f32 %v5211_v12, %v5138_v5  ;;  %1764 = vmatpush.msra.mxu3 %v1232_v44  ;;  %1726 = vmatpush.msra.mxu1 %v1082_v27  ;;  %v1598_v0 = vmul.f32 %v5161_v2, %v1568_v17  ;;  %v1567_v25 = vsel %vm1560_vm7, %v1541_v63, %v5070_v55  ;;  %v1407_v27 = vpop.permute.xlu2 %1406 }
 0x1a5   :  { %3423 = vrcp.f32 %v5213_v32  ;;  %v390_v9 = vsel %vm389_vm4, %v5136_v60, %v386_v29  ;;  %1845 = vmatpush.msrb.mxu0 %v1450_v59  ;;  %v1231_v21 = vmul.f32 %v4880_v35, %v7460_v24  ;;  %v1226_v15 = vmul.f32 %v4865_v14, %v7461_v26 }
 0x1a6   :  { %v5239_v18 = vsel %vm392_vm5, %v394_v38, %v390_v9  ;;  %v399_v42 = vsub.f32 1.0, %v398_v8  ;;  %1765 = vmatpush.msra.mxu3 %v1230_v61  ;;  %1727 = vmatpush.msra.mxu1 %v1080_v30  ;;  %v1227_v60 = vmul.f32 %v4880_v35, %v7462_v22  ;;  %v408_v55 = vand.u32 2147483648, %v5138_v5 }
 0x1a7   :  { %3280 = vmatmul.msk.f32.vlgmr.msrb.gmra.mxu1 %vm458_vm10, %v5239_v18  ;;  %v1229_v43 = vmul.f32 %v4880_v35, %v7463_v49  ;;  %v1224_v30 = vmul.f32 %v4865_v14, %v7464_v52  ;;  %vm403_vm6 = vweird.f32 %v5211_v12  ;;  %v406_v48 = vand.u32 2147483647, %v5138_v5  ;;  %1970 = vmatpush.msrb.mxu2 %v1231_v21 }
 0x1a8   :  { %v1393_v41 = vpop.permute.xlu0 %1392  ;;  %v1409_v34 = vpop.permute.xlu1 %1408  ;;  %v400_v58 = vmul.f32 %v5211_v12, %v399_v42  ;;  %1766 = vmatpush.msra.mxu3 %v1228_v16  ;;  %v1225_v44 = vmul.f32 %v4880_v35, %v7465_v40  ;;  %v1596_v6 = vmul.f32 %v5161_v2, %v1567_v25  ;;  %1884 = vmatpush.msrb.mxu1 %v1598_v0  ;;  %vm402_vm8 = vweird.f32 %v5138_v5 }
 0x1a9   :  { %v1421_v51 = vsel %vm1416_vm15, %v1393_v41, %v1409_v34  ;;  %v1429_v14 = vsel %vm1416_vm15, %v1409_v34, %v1393_v41  ;;  %1971 = vmatpush.msrb.mxu2 %v1229_v43  ;;  %vm404_vm9 = vmor %vm402_vm8, %vm403_vm6  ;;  %v409_v19 = vor.u32 1.1754944e-38, %v408_v55  ;;  %vm407_vm11 = vcmp.eq.f32.partialorder %v406_v48, 8.507059e+37 }
 0x1aa   :  { %v3422_v7 = vpop.eup %3421  ;;  %v1448_v63 = vmul.f32 %v5031_v56, %v1421_v51  ;;  %v5266_v37 = vmul.f32 %v5033_v11, %v1429_v14  ;;  %3256 = vmatmul.msk.f32.gmra.mxu3 %vm458_vm10, %v5239_v18  ;;  %v401_v35 = vadd.f32 %v5211_v12, %v400_v58  ;;  %1885 = vmatpush.msrb.mxu1 %v1596_v6  ;;  %v423_v61 = vand.u32 2147483648, %v5213_v32 }
 0x1ab   :  { %v3424_v31 = vpop.eup %3423  ;;  %v5272_v50 = vadd.f32 1.0, %v3422_v7  ;;  %3272 = vmatmul.msk.f32.gmra.mxu2 %vm458_vm10, %v5239_v18  ;;  %1767 = vmatpush.msra.mxu3 %v1226_v15  ;;  %vm417_vm13 = vweird.f32 %v5213_v32 }
 0x1ac   :  { %v405_v36 = vsel %vm404_vm9, %v5211_v12, %v401_v35  ;;  %v413_v62 = vmul.f32 %v3424_v31, %v5213_v32  ;;  %1972 = vmatpush.msrb.mxu2 %v1227_v60  ;;  %1846 = vmatpush.msrb.mxu0 %v1448_v63  ;;  %vm418_vm12 = vweird.f32 %v3424_v31  ;;  %v421_v12 = vand.u32 2147483647, %v5213_v32  ;;  %v1389_v38 = vpop.permute.xlu2 %1388 }
 0x1ad   :  { %3425 = vrcp.f32 %v5272_v50  ;;  %v5281_v5 = vsel %vm407_vm11, %v409_v19, %v405_v36  ;;  %1768 = vmatpush.msra.mxu3 %v1224_v30  ;;  %vm419_vm14 = vmor %vm417_vm13, %vm418_vm12  ;;  %v424_v26 = vor.u32 1.1754944e-38, %v423_v61  ;;  %v438_v55 = vand.u32 2147483648, %v5272_v50  ;;  %v7466_v61 = vld [vmem:[#allocation11_spill] sm:$0xff] }
 0x1ae   :  { %v414_v17 = vsub.f32 1.0, %v413_v62  ;;  %1973 = vmatpush.msrb.mxu2 %v1225_v44  ;;  %vm422_vm2 = vcmp.eq.f32.partialorder %v421_v12, 8.507059e+37  ;;  %v436_v52 = vand.u32 2147483647, %v5272_v50  ;;  %vm432_vm5 = vweird.f32 %v5272_v50 }
 0x1af   :  { %3281 = vmatmul.msk.f32.gmra.mxu1 %vm458_vm10, %v5281_v5  ;;  %v439_v44 = vor.u32 1.1754944e-38, %v438_v55 }
 0x1b0   :  { %v1555_v54 = vpop.permute.xlu0 %1554  ;;  %v1391_v59 = vpop.permute.xlu1 %1390  ;;  %v415_v29 = vmul.f32 %v3424_v31, %v414_v17  ;;  %vm437_vm8 = vcmp.eq.f32.partialorder %v436_v52, 8.507059e+37  ;;  %v7473_v52 = vld [vmem:[#allocation16_spill] sm:$0xff] }
 0x1b1   :  { %v1566_v8 = vsel %vm1560_vm7, %v5159_v23, %v1555_v54  ;;  %v1574_v47 = vsel %vm1560_vm7, %v1555_v54, %v5159_v23  ;;  %v1420_v16 = vsel %vm1416_vm15, %v1391_v59, %v1407_v27  ;;  %v1428_v0 = vsel %vm1416_vm15, %v1407_v27, %v1391_v59  ;;  %v5358_v54 = vld [vmem:[%s7265_s5] sm:$0xff] }
 0x1b2   :  { %v1594_v9 = vmul.f32 %v5161_v2, %v1566_v8  ;;  %v5299_v25 = vmul.f32 %v5100_v57, %v1574_v47  ;;  %v1446_v42 = vmul.f32 %v5031_v56, %v1420_v16  ;;  %v5303_v24 = vmul.f32 %v5033_v11, %v1428_v0  ;;  %3257 = vmatmul.msk.f32.gmra.mxu3 %vm458_vm10, %v5281_v5  ;;  %v3579_v59 = vld [vmem:[%s7262_s7 + $0x2] sm:$0x3]  ;;  %v7468_v47 = vld [vmem:[#allocation8_spill] sm:$0xff] }
 0x1b3   :  { %v3426_v23 = vpop.eup %3425  ;;  %3273 = vmatmul.msk.f32.gmra.mxu2 %vm458_vm10, %v5281_v5  ;;  %v416_v21 = vadd.f32 %v3424_v31, %v415_v29  ;;  %v1149_v29 = vperm.slane %v3579_v59, 1  ;;  %v7469_v16 = vld [vmem:[#allocation12_spill] sm:$0xff] }
 0x1b4   :  { %v428_v15 = vmul.f32 %v3426_v23, %v5272_v50  ;;  %1847 = vmatpush.msrb.mxu0 %v1446_v42  ;;  %1886 = vmatpush.msrb.mxu1 %v1594_v9  ;;  %vm433_vm4 = vweird.f32 %v3426_v23  ;;  %v1551_v40 = vpop.permute.xlu2 %1550  ;;  %v1135_v0 = vsel %vm1128_vm3, %v7469_v16, %v7468_v47 }
 0x1b5   :  { %v420_v22 = vsel %vm419_vm14, %v3424_v31, %v416_v21  ;;  %vm434_vm6 = vmor %vm432_vm5, %vm433_vm4 }
 0x1b6   :  { %v5312_v60 = vsel %vm422_vm2, %v424_v26, %v420_v22  ;;  %v429_v27 = vsub.f32 1.0, %v428_v15  ;;  %v7470_v15 = vld [vmem:[#allocation14_spill] sm:$0xff]  ;;  %v7471_v22 = vld [vmem:[#allocation9_spill] sm:$0xff] }
 0x1b7   :  { %3282 = vmatmul.msk.f32.gmra.mxu1 %vm458_vm10, %v5312_v60 }
 0x1b8   :  { %v1537_v49 = vpop.permute.xlu0 %1536  ;;  %v1553_v43 = vpop.permute.xlu1 %1552  ;;  %v430_v32 = vmul.f32 %v3426_v23, %v429_v27  ;;  %v1134_v27 = vsel %vm1128_vm3, %v7471_v22, %v7470_v15  ;;  %v5433_v15 = vld [vmem:[%s7265_s5 + $0x50] sm:$0xff]  ;;  %v7483_v22 = vld [vmem:[#allocation33_spill] sm:$0xff] }
 0x1b9   :  { %v1565_v30 = vsel %vm1560_vm7, %v1537_v49, %v1553_v43  ;;  %v1573_v41 = vsel %vm1560_vm7, %v1553_v43, %v1537_v49  ;;  %v1165_v43 = vmul.f32 %v1149_v29, %v1135_v0 }
 0x1ba   :  { %v1592_v34 = vmul.f32 %v5161_v2, %v1565_v30  ;;  %v5324_v58 = vmul.f32 %v5100_v57, %v1573_v41  ;;  %3258 = vmatmul.msk.f32.gmra.mxu3 %vm458_vm10, %v5312_v60  ;;  %v431_v48 = vadd.f32 %v3426_v23, %v430_v32  ;;  %v7472_v32 = vld [vmem:[#allocation17_spill] sm:$0xff]  ;;  %v5393_v41 = vld [vmem:[%s7265_s5 + $0x28] sm:$0xff] }
 0x1bb   :  { %3274 = vmatmul.msk.f32.gmra.mxu2 %vm458_vm10, %v5312_v60  ;;  %v1133_v30 = vsel %vm1128_vm3, %v7473_v52, %v7472_v32  ;;  %v7486_v32 = vld [vmem:[#allocation35_spill] sm:$0xff] }
 0x1bc   :  { %v435_v6 = vsel %vm434_vm6, %v3426_v23, %v431_v48  ;;  %1887 = vmatpush.msrb.mxu1 %v1592_v34  ;;  %v1533_v12 = vpop.permute.xlu2 %1532  ;;  %v7474_v34 = vld [vmem:[#allocation13_spill] sm:$0xff]  ;;  %v7475_v48 = vld [vmem:[#allocation19_spill] sm:$0xff] }
 0x1bd   :  { %v5331_v51 = vsel %vm437_vm8, %v439_v44, %v435_v6  ;;  %v1161_v6 = vmul.f32 %v1149_v29, %v1133_v30 }
 0x1bf   :  { %3283 = vmatmul.msk.f32.gmra.mxu1 %vm458_vm10, %v5331_v51 }
 0x1c0   :  { %v1405_v14 = vpop.permute.xlu0 %1404  ;;  %v1535_v7 = vpop.permute.xlu1 %1534 }
 0x1c1   :  { %v1419_v63 = vsel %vm1416_vm15, %v1389_v38, %v1405_v14  ;;  %v1427_v35 = vsel %vm1416_vm15, %v1405_v14, %v1389_v38  ;;  %v1564_v31 = vsel %vm1560_vm7, %v1535_v7, %v1551_v40  ;;  %v1572_v50 = vsel %vm1560_vm7, %v1551_v40, %v1535_v7  ;;  %v7467_v38 = vld [vmem:[#allocation10_spill] sm:$0xff]  ;;  %v7476_v14 = vld [vmem:[#allocation24_spill] sm:$0xff]  ;;  %v7477_v7 = vld [vmem:[#allocation15_spill] sm:$0xff] }
 0x1c2   :  { %v1444_v19 = vmul.f32 %v5031_v56, %v1419_v63  ;;  %v5345_v36 = vmul.f32 %v5033_v11, %v1427_v35  ;;  %v1590_v62 = vmul.f32 %v5161_v2, %v1564_v31  ;;  %v5349_v17 = vmul.f32 %v5100_v57, %v1572_v50  ;;  %3259 = vmatmul.msk.f32.gmra.mxu3 %vm458_vm10, %v5331_v51  ;;  %v7478_v35 = vld [vmem:[#allocation29_spill] sm:$0xff]  ;;  %v7479_v31 = vld [vmem:[#allocation27_spill] sm:$0xff] }
 0x1c3   :  { %3275 = vmatmul.msk.f32.gmra.mxu2 %vm458_vm10, %v5331_v51  ;;  %v1136_v8 = vsel %vm1128_vm3, %v7467_v38, %v7466_v61  ;;  %v1132_v40 = vsel %vm1128_vm3, %v7475_v48, %v7474_v34  ;;  %v1131_v63 = vsel %vm1128_vm3, %v7477_v7, %v7476_v14  ;;  %v1130_v50 = vsel %vm1128_vm3, %v7479_v31, %v7478_v35  ;;  %v7487_v48 = vld [vmem:[#allocation57_spill] sm:$0xff]  ;;  %v7489_v14 = vld [vmem:[#allocation32_spill] sm:$0xff]  ;;  %v7491_v31 = vld [vmem:[#allocation58_spill] sm:$0xff] }
 0x1c4   :  { %1848 = vmatpush.msrb.mxu0 %v1444_v19  ;;  %1888 = vmatpush.msrb.mxu1 %v1590_v62  ;;  %v1167_v23 = vmul.f32 %v1149_v29, %v1136_v8  ;;  %v1401_v44 = vpop.permute.xlu2 %1400  ;;  %v1159_v59 = vmul.f32 %v1149_v29, %v1132_v40 }
 0x1c7   :  { %1728 = vmatmul.f32.vlgmr.msra.gmra.mxu1 %v5358_v54 }
 0x1c8   :  { %v1387_v9 = vpop.permute.xlu0 %1386  ;;  %v1403_v42 = vpop.permute.xlu1 %1402 }
 0x1c9   :  { %v1418_v21 = vsel %vm1416_vm15, %v1387_v9, %v1403_v42  ;;  %v1426_v26 = vsel %vm1416_vm15, %v1403_v42, %v1387_v9 }
 0x1ca   :  { %v1442_v55 = vmul.f32 %v5031_v56, %v1418_v21  ;;  %v5382_v49 = vmul.f32 %v5033_v11, %v1426_v26  ;;  %3260 = vmatmul.msk.f32.vlgmr.msrb.gmra.mxu3 %vm458_vm10, %v4975_v20  ;;  %v1163_v20 = vmul.f32 %v1149_v29, %v1134_v27  ;;  %v7481_v21 = vld [vmem:[#allocation31_spill] sm:$0xff] }
 0x1cb   :  { %1917 = vmatpush.msrb.mxu3 %v1167_v23  ;;  %v7480_v23 = vld [vmem:[#allocation23_spill] sm:$0xff] }
 0x1cc   :  { %1849 = vmatpush.msrb.mxu0 %v1442_v55  ;;  %v1129_v26 = vsel %vm1128_vm3, %v7481_v21, %v7480_v23 }
 0x1cd   :  { %1918 = vmatpush.msrb.mxu3 %v1165_v43  ;;  %v1153_v55 = vmul.f32 %v1149_v29, %v1129_v26  ;;  %v7485_v43 = vld [vmem:[#allocation37_spill] sm:$0xff]  ;;  %v7497_v26 = vld [vmem:[#allocation64_spill] sm:$0xff] }
 0x1ce   :  { %v1064_v52 = vsel %vm1057_vm1, %v7486_v32, %v7485_v43  ;;  %v5511_v43 = vld [vmem:[%s7260_s0 + $0x68] sm:$0xff] }
 0x1cf   :  { %1919 = vmatpush.msrb.mxu3 %v1163_v20  ;;  %1731 = vmatmul.f32.gmra.mxu1 %v5393_v41  ;;  %v7504_v32 = vld [vmem:[#allocation55_spill] sm:$0xff] }
 0x1d0   :  { %v1549_v19 = vpop.permute.xlu0 %1548  ;;  %v1385_v62 = vpop.permute.xlu1 %1384 }
 0x1d1   :  { %1920 = vmatpush.msrb.mxu3 %v1161_v6  ;;  %v1563_v61 = vsel %vm1560_vm7, %v1533_v12, %v1549_v19  ;;  %v1571_v38 = vsel %vm1560_vm7, %v1549_v19, %v1533_v12  ;;  %v1417_v8 = vsel %vm1416_vm15, %v1385_v62, %v1401_v44  ;;  %v1425_v47 = vsel %vm1416_vm15, %v1401_v44, %v1385_v62  ;;  %v7488_v44 = vld [vmem:[#allocation46_spill] sm:$0xff] }
 0x1d2   :  { %v1588_v16 = vmul.f32 %v5161_v2, %v1563_v61  ;;  %v5418_v0 = vmul.f32 %v5100_v57, %v1571_v38  ;;  %v1440_v9 = vmul.f32 %v5031_v56, %v1417_v8  ;;  %v5422_v42 = vmul.f32 %v5033_v11, %v1425_v47  ;;  %3261 = vmatmul.msk.f32.gmra.mxu3 %vm458_vm10, %v5041_v1  ;;  %v7482_v11 = vld [vmem:[#allocation56_spill] sm:$0xff]  ;;  %v7484_v1 = vld [vmem:[#allocation25_spill] sm:$0xff]  ;;  %v7492_v19 = vld [vmem:[#allocation42_spill] sm:$0xff] }
 0x1d3   :  { %1921 = vmatpush.msrb.mxu3 %v1159_v59  ;;  %v1157_v12 = vmul.f32 %v1149_v29, %v1131_v63  ;;  %v1155_v56 = vmul.f32 %v1149_v29, %v1130_v50  ;;  %v1065_v27 = vsel %vm1057_vm1, %v7484_v1, %v7483_v22  ;;  %v7490_v29 = vld [vmem:[#allocation39_spill] sm:$0xff]  ;;  %v1093_v50 = vmul.f32 %v7488_v44, %v1064_v52  ;;  %v7493_v62 = vld [vmem:[#allocation34_spill] sm:$0xff]  ;;  %v5470_v61 = vld [vmem:[%s7265_s5 + $0x78] sm:$0xff] }
 0x1d4   :  { %1850 = vmatpush.msrb.mxu0 %v1440_v9  ;;  %1889 = vmatpush.msrb.mxu1 %v1588_v16  ;;  %v1095_v6 = vmul.f32 %v7488_v44, %v1065_v27  ;;  %v1063_v7 = vsel %vm1057_vm1, %v7490_v29, %v7489_v14  ;;  %v1062_v59 = vsel %vm1057_vm1, %v7493_v62, %v7492_v19  ;;  %v7494_v38 = vld [vmem:[#allocation59_spill] sm:$0xff]  ;;  %v7495_v8 = vld [vmem:[#allocation60_spill] sm:$0xff]  ;;  %v5477_v16 = vpop.permute.xlu2 %1528  ;;  %v7499_v22 = vld [vmem:[#allocation66_spill] sm:$0xff] }
 0x1d5   :  { %1922 = vmatpush.msrb.mxu3 %v1157_v12  ;;  %v1089_v47 = vmul.f32 %v7488_v44, %v1062_v59  ;;  %v7496_v12 = vld [vmem:[#allocation62_spill] sm:$0xff]  ;;  %v7500_v1 = vld [vmem:[#allocation51_spill] sm:$0xff]  ;;  %v7501_v27 = vld [vmem:[#allocation61_spill] sm:$0xff] }
 0x1d6   :  { %1999 = vmatpush.msra.mxu0 %v7482_v11  ;;  %v5494_v11 = vld [vmem:[%s7265_s5 + $0xa0] sm:$0xff]  ;;  %v5520_v52 = vld [vmem:[%s7265_s5 + $0x10] sm:$0xff]  ;;  %v5562_v14 = vld [vmem:[%s7265_s5 + $0x38] sm:$0xff] }
 0x1d7   :  { %1923 = vmatpush.msrb.mxu3 %v1155_v56  ;;  %1734 = vmatmul.f32.gmra.mxu1 %v5433_v15  ;;  %v7498_v56 = vld [vmem:[#allocation48_spill] sm:$0xff]  ;;  %v5567_v29 = vld [vmem:[%s7265_s5 + $0x18] sm:$0xff]  ;;  %v1616_v59 = vld [vmem:[%s7265_s5 + $0x80] sm:$0xff] }
 0x1d8   :  { %v1531_v30 = vpop.permute.xlu0 %1530  ;;  %v1547_v34 = vpop.permute.xlu1 %1546  ;;  %2000 = vmatpush.msra.mxu0 %v7487_v48  ;;  %1810 = vmatmul.f32.vlgmr.msra.gmra.mxu2 %v5520_v52  ;;  %v7506_v48 = vld [vmem:[#allocation67_spill] sm:$0xff]  ;;  %v1611_v62 = vld [vmem:[%s7265_s5 + $0x58] sm:$0xff] }
 0x1d9   :  { %1924 = vmatpush.msrb.mxu3 %v1153_v55  ;;  %v1562_v40 = vsel %vm1560_vm7, %v1531_v30, %v1547_v34  ;;  %v1570_v20 = vsel %vm1560_vm7, %v1547_v34, %v1531_v30  ;;  %v7503_v55 = vld [vmem:[#allocation63_spill] sm:$0xff]  ;;  %v7505_v30 = vld [vmem:[#allocation65_spill] sm:$0xff]  ;;  %1851 = vmatmul.f32.vlgmr.msrb.gmra.mxu0 %v5567_v29 }
 0x1da   :  { %v1586_v63 = vmul.f32 %v5161_v2, %v1562_v40  ;;  %v5457_v35 = vmul.f32 %v5100_v57, %v1570_v20  ;;  %3262 = vmatmul.msk.f32.gmra.mxu3 %vm458_vm10, %v5124_v3  ;;  %2001 = vmatpush.msra.mxu0 %v7491_v31  ;;  %v1091_v3 = vmul.f32 %v7488_v44, %v1063_v7  ;;  %v5527_v34 = vld [vmem:[%s7260_s0 + $0x58] sm:$0xff]  ;;  %v5539_v40 = vld [vmem:[%s7260_s0 + $0x48] sm:$0xff]  ;;  %v7507_v20 = vld [vmem:[#allocation22_spill] sm:$0xff] }
 0x1db   :  { %1925 = vmatpush.msrb.mxu3 %v1095_v6  ;;  %v5547_v44 = vld [vmem:[%s7260_s0 + $0x38] sm:$0xff]  ;;  %v5554_v6 = vld [vmem:[%s7260_s0 + $0x28] sm:$0xff]  ;;  %v1606_v31 = vld [vmem:[%s7265_s5 + $0x30] sm:$0xff] }
 0x1dc   :  { %2002 = vmatpush.msra.mxu0 %v7494_v38  ;;  %1890 = vmatpush.msrb.mxu1 %v1586_v63  ;;  %v5581_v7 = vld [vmem:[%s7260_s0 + $0x18] sm:$0xff]  ;;  %v5588_v63 = vld [vmem:[%s7260_s0 + $0x8] sm:$0xff] }
 0x1dd   :  { %1926 = vmatpush.msrb.mxu3 %v1093_v50  ;;  %v5673_v50 = vld [vmem:[%s7265_s5 + $0xd8] sm:$0xff]  ;;  %v5730_v38 = vld [vmem:[%s7265_s5 + $0x128] sm:$0xff] }
 0x1de   :  { %2003 = vmatpush.msra.mxu0 %v7495_v8 }
 0x1df   :  { %1927 = vmatpush.msrb.mxu3 %v1091_v3  ;;  %1737 = vmatmul.f32.gmra.mxu1 %v5470_v61  ;;  %v5742_v3 = vld [vmem:[%s7265_s5 + $0xc0] sm:$0xff] }
 0x1e0   :  { %v5479_v9 = vpop.permute.xlu0 %1544  ;;  %2004 = vmatpush.msra.mxu0 %v7496_v12  ;;  %1813 = vmatmul.f32.gmra.mxu2 %v5562_v14 }
 0x1e1   :  { %1928 = vmatpush.msrb.mxu3 %v1089_v47  ;;  %v1561_v23 = vsel %vm1560_vm7, %v5477_v16, %v5479_v9  ;;  %v1569_v19 = vsel %vm1560_vm7, %v5479_v9, %v5477_v16  ;;  %v1621_v47 = vld [vmem:[%s7265_s5 + $0xa8] sm:$0xff]  ;;  %v5754_v16 = vld [vmem:[%s7265_s5 + $0x130] sm:$0xff] }
 0x1e2   :  { %v1584_v21 = vmul.f32 %v5161_v2, %v1561_v23  ;;  %3263 = vmatmul.msk.f32.gmra.mxu3 %vm458_vm10, %v5198_v13  ;;  %2005 = vmatpush.msra.mxu0 %v7497_v26  ;;  %v5502_v2 = vld [vmem:[%s7260_s0 + $0x78] sm:$0xff]  ;;  %v7502_v13 = vld [vmem:[#allocation54_spill] sm:$0xff]  ;;  %v5760_v9 = vld [vmem:[%s7265_s5 + $0xe8] sm:$0xff] }
 0x1e3   :  { %1929 = vmatpush.msrb.mxu3 %v7498_v56  ;;  %v1626_v23 = vld [vmem:[%s7265_s5 + $0xd0] sm:$0xff] }
 0x1e4   :  { %1891 = vmatpush.msrb.mxu1 %v1584_v21  ;;  %2006 = vmatpush.msra.mxu0 %v7499_v22  ;;  %v5775_v26 = vld [vmem:[%s7265_s5 + $0x110] sm:$0xff]  ;;  %v1631_v22 = vld [vmem:[%s7265_s5 + $0xf8] sm:$0xff] }
 0x1e5   :  { %1930 = vmatpush.msrb.mxu3 %v7500_v1  ;;  %v5788_v1 = vld [vmem:[%s7265_s5 + $0x138] sm:$0xff] }
 0x1e6   :  { %2040 = vmatpush.msra.mxu1 %v7501_v27  ;;  %2007 = vmatpush.msra.mxu0 %v5502_v2 }
 0x1e7   :  { %1931 = vmatpush.msrb.mxu3 %v7502_v13  ;;  %1740 = vmatmul.f32.gmra.mxu1 %v5494_v11 }
 0x1e8   :  { %2041 = vmatpush.msra.mxu1 %v7503_v55  ;;  %2008 = vmatpush.msra.mxu0 %v5511_v43 }
 0x1e9   :  { %1932 = vmatpush.msrb.mxu3 %v7504_v32  ;;  %v1636_v32 = vld [vmem:[%s7265_s5 + $0x120] sm:$0xff] }
 0x1ea   :  { %3264 = vmatmul.msk.f32.gmra.mxu3 %vm458_vm10, %v5239_v18  ;;  %2042 = vmatpush.msra.mxu1 %v7505_v30  ;;  %v5533_v18 = vld [vmem:[%s7265_s5 + $0xc8] sm:$0xff] }
 0x1eb   :  { %2009 = vmatpush.msra.mxu0 %v5527_v34 }
 0x1ec   :  { %2043 = vmatpush.msra.mxu1 %v7506_v48 }
 0x1ed   :  { %2010 = vmatpush.msra.mxu0 %v5539_v40 }
 0x1ee   :  { %2044 = vmatpush.msra.mxu1 %v7507_v20 }
 0x1ef   :  { %1743 = vmatmul.f32.gmra.mxu1 %v5533_v18  ;;  %2011 = vmatpush.msra.mxu0 %v5547_v44 }
 0x1f0   :  { %2045 = vmatpush.msra.mxu1 %v4930_v10  ;;  %v7508_v10 = vld [vmem:[#allocation20_spill] sm:$0xff] }
 0x1f1   :  { %2012 = vmatpush.msra.mxu0 %v5554_v6 }
 0x1f2   :  { %3265 = vmatmul.msk.f32.gmra.mxu3 %vm458_vm10, %v5281_v5  ;;  %2046 = vmatpush.msra.mxu1 %v7508_v10  ;;  %v5575_v5 = vld [vmem:[%s7265_s5 + $0xf0] sm:$0xff] }
 0x1f3   :  { %2013 = vmatpush.msra.mxu0 %v5581_v7 }
 0x1f4   :  { %2047 = vmatpush.msra.mxu1 %v4994_v28  ;;  %v5598_v28 = vld [vmem:[%s7265_s5 + $0x60] sm:$0xff] }
 0x1f5   :  { %2014 = vmatpush.msra.mxu0 %v5588_v63  ;;  %1816 = vmatmul.f32.gmra.mxu2 %v5598_v28 }
 0x1f6   :  { %2048 = vmatpush.msra.mxu1 %v5059_v4  ;;  %v5603_v4 = vld [vmem:[%s7265_s5 + $0x40] sm:$0xff] }
 0x1f7   :  { %1746 = vmatmul.f32.gmra.mxu1 %v5575_v5  ;;  %1854 = vmatmul.f32.gmra.mxu0 %v5603_v4 }
 0x1f8   :  { %2049 = vmatpush.msra.mxu1 %v5073_v45  ;;  %v5611_v45 = vld [vmem:[%s7265_s5 + $0x118] sm:$0xff] }
 0x1fa   :  { %3266 = vmatmul.msk.f32.gmra.mxu3 %vm458_vm10, %v5312_v60  ;;  %2050 = vmatpush.msra.mxu1 %v5207_v33  ;;  %v5622_v33 = vld [vmem:[%s7265_s5 + $0x88] sm:$0xff] }
 0x1fb   :  { %v5627_v60 = vld [vmem:[%s7265_s5 + $0x68] sm:$0xff] }
 0x1fc   :  { %2051 = vmatpush.msra.mxu1 %v5266_v37  ;;  %v5635_v37 = vld [vmem:[%s7265_s5 + $0x20] sm:$0xff] }
 0x1fd   :  { %1819 = vmatmul.f32.gmra.mxu2 %v5622_v33 }
 0x1fe   :  { %2052 = vmatpush.msra.mxu1 %v5303_v24  ;;  %v1601_v24 = vld [vmem:[%s7265_s5 + $0x8] sm:$0xff] }
 0x1ff   :  { %1749 = vmatmul.f32.gmra.mxu1 %v5611_v45  ;;  %1857 = vmatmul.f32.gmra.mxu0 %v5627_v60 }
 0x200   :  { %2053 = vmatpush.msra.mxu1 %v5345_v36  ;;  %v5651_v36 = vld [vmem:[%s7265_s5 + $0x90] sm:$0xff] }
 0x202   :  { %3267 = vmatmul.msk.f32.gmra.mxu3 %vm458_vm10, %v5331_v51  ;;  %2054 = vmatpush.msra.mxu1 %v5382_v49  ;;  %v5646_v51 = vld [vmem:[%s7265_s5 + $0xb0] sm:$0xff] }
 0x204   :  { %2055 = vmatpush.msra.mxu1 %v5422_v42  ;;  %v5660_v42 = vld [vmem:[%s7265_s5 + $0x48] sm:$0xff] }
 0x205   :  { %1822 = vmatmul.f32.gmra.mxu2 %v5646_v51 }
 0x207   :  { %3291 = vmatmul.msk.f32.vlgmr.msrb.gmra.mxu1 %vm224_vm0, %v5635_v37  ;;  %1860 = vmatmul.f32.gmra.mxu0 %v5651_v36  ;;  %v623_v30 = vpop.f32.mrf.mxu0 }
 0x20a   :  { %1769 = vmatmul.f32.vlgmr.msra.gmra.mxu3 %v1601_v24 }
 0x20b   :  { %2089 = vmatpush.msra.mxu3 %v5130_v53  ;;  %v5678_v53 = vld [vmem:[%s7265_s5 + $0xb8] sm:$0xff] }
 0x20c   :  { %v5655_v49 = vpop.f32.mrf.mxu3  ;;  %v582_v55 = vpop.f32.mrf.mxu2 }
 0x20d   :  { %2090 = vmatpush.msra.mxu3 %v5216_v46  ;;  %1825 = vmatmul.f32.gmra.mxu2 %v5673_v50  ;;  %v5685_v46 = vld [vmem:[%s7265_s5 + $0x70] sm:$0xff] }
 0x20f   :  { %3292 = vmatmul.msk.f32.gmra.mxu1 %vm224_vm0, %v5660_v42  ;;  %2091 = vmatpush.msra.mxu3 %v5299_v25 }
 0x210   :  { %1863 = vmatmul.f32.gmra.mxu0 %v5678_v53 }
 0x211   :  { %2092 = vmatpush.msra.mxu3 %v5324_v58  ;;  %v1585_v58 = vmul.f32 %v5100_v57, %v1569_v19  ;;  %v626_v19 = vpop.f32.mrf.mxu0 }
 0x212   :  { %1772 = vmatmul.f32.gmra.mxu3 %v1606_v31 }
 0x213   :  { %2093 = vmatpush.msra.mxu3 %v5349_v17  ;;  %v5705_v17 = vld [vmem:[%s7265_s5 + $0x100] sm:$0xff] }
 0x215   :  { %v5688_v25 = vpop.f32.mrf.mxu3  ;;  %2094 = vmatpush.msra.mxu3 %v5418_v0  ;;  %1828 = vmatmul.f32.gmra.mxu2 %v5705_v17  ;;  %v5717_v0 = vld [vmem:[%s7265_s5 + $0x98] sm:$0xff]  ;;  %v585_v20 = vpop.f32.mrf.mxu2 }
 0x217   :  { %3293 = vmatmul.msk.f32.gmra.mxu1 %vm224_vm0, %v5685_v46  ;;  %2095 = vmatpush.msra.mxu3 %v5457_v35  ;;  %v5735_v35 = vld [vmem:[%s7265_s5 + $0x108] sm:$0xff] }
 0x218   :  { %1866 = vmatmul.f32.gmra.mxu0 %v5710_v39 }
 0x219   :  { %2096 = vmatpush.msra.mxu3 %v1585_v58 }
 0x21a   :  { %1775 = vmatmul.f32.gmra.mxu3 %v1611_v62 }
 0x21d   :  { %v5720_v57 = vpop.f32.mrf.mxu3  ;;  %1831 = vmatmul.f32.gmra.mxu2 %v5730_v38 }
 0x21e   :  { %v588_v58 = vpop.f32.mrf.mxu2 }
 0x21f   :  { %3294 = vmatmul.msk.f32.gmra.mxu1 %vm224_vm0, %v5717_v0 }
 0x220   :  { %1869 = vmatmul.f32.gmra.mxu0 %v5735_v35 }
 0x222   :  { %1778 = vmatmul.f32.gmra.mxu3 %v1616_v59 }
 0x224   :  { %v5770_v21 = vpop.f32.mrf.mxu1 }
 0x225   :  { %v5744_v8 = vpop.f32.mrf.mxu3  ;;  %1974 = vmatmul.f32.vlgmr.msrb.gmra.mxu2 %v1601_v24 }
 0x227   :  { %3295 = vmatmul.msk.f32.gmra.mxu1 %vm224_vm0, %v5742_v3 }
 0x228   :  { %1872 = vmatmul.f32.gmra.mxu0 %v5754_v16 }
 0x22a   :  { %1781 = vmatmul.f32.gmra.mxu3 %v1621_v47 }
 0x22c   :  { %v5792_v13 = vpop.f32.mrf.mxu1 }
 0x22d   :  { %v5762_v12 = vpop.f32.mrf.mxu3  ;;  %1977 = vmatmul.f32.gmra.mxu2 %v1606_v31 }
 0x22f   :  { %3296 = vmatmul.msk.f32.gmra.mxu1 %vm224_vm0, %v5760_v9 }
 0x230   :  { %2015 = vmatmul.f32.vlgmr.msra.gmra.mxu0 %v5520_v52 }
 0x232   :  { %1784 = vmatmul.f32.gmra.mxu3 %v1626_v23 }
 0x234   :  { %v5803_v48 = vpop.f32.mrf.mxu1 }
 0x235   :  { %v5777_v56 = vpop.f32.mrf.mxu3  ;;  %1980 = vmatmul.f32.gmra.mxu2 %v1611_v62 }
 0x237   :  { %3297 = vmatmul.msk.f32.gmra.mxu1 %vm224_vm0, %v5775_v26 }
 0x238   :  { %2018 = vmatmul.f32.gmra.mxu0 %v5562_v14  ;;  %v3588_v14 = vld [vmem:[%s7260_s0] sm:$0xff] }
 0x239   :  { %v647_v10 = vmul.f32 %v3588_v14, %v5655_v49 }
 0x23a   :  { %1787 = vmatmul.f32.gmra.mxu3 %v1631_v22 }
 0x23b   :  { %v5811_v24 = vmul.f32 %v647_v10, %v582_v55 }
 0x23c   :  { %v5817_v62 = vpop.f32.mrf.mxu1 }
 0x23d   :  { %v5790_v27 = vpop.f32.mrf.mxu3  ;;  %1983 = vmatmul.f32.gmra.mxu2 %v1616_v59  ;;  %7509 = vst [vmem:[#allocation4_spill] sm:$0xff] %v5811_v24 }
 0x23f   :  { %3298 = vmatmul.msk.f32.gmra.mxu1 %vm224_vm0, %v5788_v1 }
 0x240   :  { %2021 = vmatmul.f32.gmra.mxu0 %v5598_v28 }
 0x242   :  { %1790 = vmatmul.f32.gmra.mxu3 %v1636_v32 }
 0x245   :  { %v5800_v52 = vpop.f32.mrf.mxu3  ;;  %1986 = vmatmul.f32.gmra.mxu2 %v1621_v47 }
 0x247   :  { %2056 = vmatmul.f32.vlgmr.msra.gmra.mxu1 %v5567_v29 }
 0x248   :  { %2024 = vmatmul.f32.gmra.mxu0 %v5622_v33  ;;  %v703_v33 = vmul.f32 %v5811_v24, %v5811_v24 }
 0x24a   :  { %1933 = vmatmul.f32.vlgmr.msrb.gmra.mxu3 %v5358_v54 }
 0x24d   :  { %v541_v28 = vpop.f32.mrf.mxu3  ;;  %1989 = vmatmul.f32.gmra.mxu2 %v1626_v23 }
 0x24e   :  { %v648_v29 = vmul.f32 %v5588_v63, %v541_v28  ;;  %v3589_v63 = vld [vmem:[%s7260_s0 + $0x10] sm:$0xff] }
 0x24f   :  { %2059 = vmatmul.f32.gmra.mxu1 %v5603_v4  ;;  %v649_v4 = vmul.f32 %v3589_v63, %v5688_v25  ;;  %v629_v25 = vpop.f32.mrf.mxu0 }
 0x250   :  { %v5815_v31 = vmul.f32 %v648_v29, %v623_v30  ;;  %2027 = vmatmul.f32.gmra.mxu0 %v5646_v51 }
 0x251   :  { %v5833_v55 = vmul.f32 %v649_v4, %v585_v20  ;;  %v591_v20 = vpop.f32.mrf.mxu2  ;;  %v3592_v4 = vld [vmem:[%s7260_s0 + $0x40] sm:$0xff] }
 0x252   :  { %7510 = vst [vmem:[#allocation28_spill] sm:$0xff] %v5815_v31  ;;  %1936 = vmatmul.f32.gmra.mxu3 %v5393_v41  ;;  %v679_v54 = vadd.f32 %v5815_v31, %v5811_v24  ;;  %v704_v49 = vmul.f32 %v5815_v31, %v5815_v31 }
 0x253   :  { %7511 = vst [vmem:[#allocation38_spill] sm:$0xff] %v5833_v55  ;;  %v705_v28 = vmul.f32 %v5833_v55, %v5833_v55 }
 0x254   :  { %680 = vadd.xlane.f32.xlu1 %v679_v54  ;;  %v719_v41 = vadd.f32 %v704_v49, %v703_v33 }
 0x255   :  { %v544_v59 = vpop.f32.mrf.mxu3  ;;  %1992 = vmatmul.f32.gmra.mxu2 %v1631_v22 }
 0x256   :  { %v650_v47 = vmul.f32 %v5581_v7, %v544_v59  ;;  %720 = vadd.xlane.f32.xlu0 %v719_v41  ;;  %v3590_v7 = vld [vmem:[%s7260_s0 + $0x20] sm:$0xff] }
 0x257   :  { %2062 = vmatmul.f32.gmra.mxu1 %v5627_v60  ;;  %v651_v23 = vmul.f32 %v3590_v7, %v5720_v57  ;;  %v5845_v60 = vpop.f32.mrf.mxu1  ;;  %v632_v49 = vpop.f32.mrf.mxu0 }
 0x258   :  { %v5835_v30 = vmul.f32 %v650_v47, %v626_v19  ;;  %2030 = vmatmul.f32.gmra.mxu0 %v5673_v50  ;;  %7513 = vst [vmem:[#allocation44_spill] sm:$0xff] %v5845_v60 }
 0x259   :  { %v5851_v50 = vmul.f32 %v651_v23, %v588_v58 }
 0x25a   :  { %7512 = vst [vmem:[#allocation30_spill] sm:$0xff] %v5835_v30  ;;  %1939 = vmatmul.f32.gmra.mxu3 %v5433_v15  ;;  %v682_v51 = vadd.f32 %v5835_v30, %v5833_v55  ;;  %v706_v10 = vmul.f32 %v5835_v30, %v5835_v30 }
 0x25c   :  { %683 = vadd.xlane.f32.xlu2 %v682_v51  ;;  %v722_v57 = vadd.f32 %v706_v10, %v705_v28  ;;  %v3594_v10 = vld [vmem:[%s7260_s0 + $0x60] sm:$0xff] }
 0x25d   :  { %v547_v14 = vpop.f32.mrf.mxu3  ;;  %1995 = vmatmul.f32.gmra.mxu2 %v1636_v32  ;;  %v594_v32 = vpop.f32.mrf.mxu2  ;;  %v659_v28 = vmul.f32 %v3594_v10, %v5790_v27  ;;  %v3595_v27 = vld [vmem:[%s7260_s0 + $0x70] sm:$0xff] }
 0x25e   :  { %v652_v15 = vmul.f32 %v5554_v6, %v547_v14  ;;  %v3591_v6 = vld [vmem:[%s7260_s0 + $0x30] sm:$0xff] }
 0x25f   :  { %2065 = vmatmul.f32.gmra.mxu1 %v5651_v36  ;;  %v653_v36 = vmul.f32 %v3591_v6, %v5744_v8  ;;  %v5865_v54 = vpop.f32.mrf.mxu1  ;;  %v707_v8 = vmul.f32 %v5851_v50, %v5851_v50 }
 0x260   :  { %v5853_v22 = vmul.f32 %v652_v15, %v629_v25  ;;  %2033 = vmatmul.f32.gmra.mxu0 %v5705_v17  ;;  %7515 = vst [vmem:[#allocation47_spill] sm:$0xff] %v5865_v54 }
 0x261   :  { %v5871_v17 = vmul.f32 %v653_v36, %v591_v20 }
 0x262   :  { %7514 = vst [vmem:[#allocation45_spill] sm:$0xff] %v5853_v22  ;;  %1942 = vmatmul.f32.gmra.mxu3 %v5470_v61  ;;  %v685_v29 = vadd.f32 %v5853_v22, %v5851_v50  ;;  %v708_v33 = vmul.f32 %v5853_v22, %v5853_v22 }
 0x263   :  { %7516 = vst [vmem:[#allocation41_spill] sm:$0xff] %v5871_v17 }
 0x264   :  { %723 = vadd.xlane.f32.xlu2 %v722_v57  ;;  %686 = vadd.xlane.f32.xlu0 %v685_v29  ;;  %v725_v63 = vadd.f32 %v708_v33, %v707_v8  ;;  %v661_v33 = vmul.f32 %v3595_v27, %v5800_v52 }
 0x265   :  { %v550_v19 = vpop.f32.mrf.mxu3  ;;  %v597_v25 = vpop.f32.mrf.mxu2 }
 0x266   :  { %v654_v61 = vmul.f32 %v5547_v44, %v550_v19 }
 0x267   :  { %2068 = vmatmul.f32.gmra.mxu1 %v5678_v53  ;;  %v655_v53 = vmul.f32 %v3592_v4, %v5762_v12  ;;  %v5891_v51 = vpop.f32.mrf.mxu1  ;;  %v709_v12 = vmul.f32 %v5871_v17, %v5871_v17 }
 0x268   :  { %v5873_v58 = vmul.f32 %v654_v61, %v632_v49  ;;  %2036 = vmatmul.f32.gmra.mxu0 %v5730_v38  ;;  %7519 = vst [vmem:[#allocation43_spill] sm:$0xff] %v5891_v51 }
 0x269   :  { %v5889_v47 = vmul.f32 %v655_v53, %v594_v32 }
 0x26a   :  { %7517 = vst [vmem:[#allocation40_spill] sm:$0xff] %v5873_v58  ;;  %1945 = vmatmul.f32.gmra.mxu3 %v5494_v11  ;;  %v688_v44 = vadd.f32 %v5873_v58, %v5871_v17  ;;  %v710_v11 = vmul.f32 %v5873_v58, %v5873_v58 }
 0x26b   :  { %7518 = vst [vmem:[#allocation36_spill] sm:$0xff] %v5889_v47 }
 0x26c   :  { %726 = vadd.xlane.f32.xlu0 %v725_v63  ;;  %689 = vadd.xlane.f32.xlu1 %v688_v44 }
 0x26d   :  { %v553_v41 = vpop.f32.mrf.mxu3  ;;  %v600_v29 = vpop.f32.mrf.mxu2 }
 0x26e   :  { %v656_v59 = vmul.f32 %v5539_v40, %v553_v41  ;;  %v3593_v40 = vld [vmem:[%s7260_s0 + $0x50] sm:$0xff]  ;;  %v5927_v19 = vmul.f32 %v659_v28, %v600_v29 }
 0x26f   :  { %2071 = vmatmul.f32.gmra.mxu1 %v5710_v39  ;;  %v657_v7 = vmul.f32 %v3593_v40, %v5777_v56  ;;  %v728_v39 = vadd.f32 %v710_v11, %v709_v12  ;;  %v5920_v57 = vpop.f32.mrf.mxu1  ;;  %v1643_v40 = vld [vmem:[%s7264_s6 + $0x18] sm:$0xff] }
 0x270   :  { %v5894_v38 = vmul.f32 %v656_v59, %v5770_v21  ;;  %7523 = vst [vmem:[#allocation7_spill] sm:$0xff] %v5927_v19 }
 0x271   :  { %v5905_v20 = vmul.f32 %v657_v7, %v597_v25 }
 0x272   :  { %7520 = vst [vmem:[#allocation5_spill] sm:$0xff] %v5894_v38  ;;  %1948 = vmatmul.f32.gmra.mxu3 %v5533_v18  ;;  %v691_v23 = vadd.f32 %v5894_v38, %v5889_v47  ;;  %v712_v15 = vmul.f32 %v5894_v38, %v5894_v38  ;;  %v711_v18 = vmul.f32 %v5889_v47, %v5889_v47 }
 0x273   :  { %7521 = vst [vmem:[#allocation2_spill] sm:$0xff] %v5905_v20 }
 0x274   :  { %729 = vadd.xlane.f32.xlu1 %v728_v39  ;;  %692 = vadd.xlane.f32.xlu2 %v691_v23  ;;  %v5988_v23 = vpop.f32.mrf.mxu0 }
 0x275   :  { %v556_v21 = vpop.f32.mrf.mxu3  ;;  %v603_v8 = vpop.f32.mrf.mxu2  ;;  %7531 = vst [vmem:[#allocation52_spill] sm:$0xff] %v5988_v23 }
 0x276   :  { %v658_v14 = vmul.f32 %v5527_v34, %v556_v21  ;;  %v731_v34 = vadd.f32 %v712_v15, %v711_v18  ;;  %v5947_v44 = vmul.f32 %v661_v33, %v603_v8 }
 0x277   :  { %2074 = vmatmul.f32.gmra.mxu1 %v5735_v35  ;;  %v713_v35 = vmul.f32 %v5905_v20, %v5905_v20  ;;  %v5945_v32 = vpop.f32.mrf.mxu1 }
 0x278   :  { %v5912_v56 = vmul.f32 %v658_v14, %v5792_v13  ;;  %7525 = vst [vmem:[#allocation26_spill] sm:$0xff] %v5947_v44  ;;  %v717_v53 = vmul.f32 %v5947_v44, %v5947_v44 }
 0x27a   :  { %7522 = vst [vmem:[#allocation3_spill] sm:$0xff] %v5912_v56  ;;  %1951 = vmatmul.f32.gmra.mxu3 %v5575_v5  ;;  %v714_v13 = vmul.f32 %v5912_v56, %v5912_v56  ;;  %v694_v49 = vadd.f32 %v5912_v56, %v5905_v20 }
 0x27c   :  { %732 = vadd.xlane.f32.xlu2 %v731_v34  ;;  %v734_v6 = vadd.f32 %v714_v13, %v713_v35  ;;  %v6004_v18 = vpop.f32.mrf.mxu0  ;;  %v6014_v34 = vpop.permute.xlu0 %1675  ;;  %v1640_v35 = vld [vmem:[%s7264_s6] sm:$0xff] }
 0x27d   :  { %v559_v36 = vpop.f32.mrf.mxu3  ;;  %v5982_v39 = vpop.f32.mrf.mxu2  ;;  %7534 = vst [vmem:[#allocation8_spill] sm:$0xff] %v6004_v18 }
 0x27e   :  { %v660_v61 = vmul.f32 %v5511_v43, %v559_v36  ;;  %735 = vadd.xlane.f32.xlu0 %v734_v6  ;;  %v715_v43 = vmul.f32 %v5927_v19, %v5927_v19  ;;  %7530 = vst [vmem:[#allocation53_spill] sm:$0xff] %v5982_v39  ;;  %v6027_v6 = vpop.permute.xlu1 %1685 }
 0x27f   :  { %2077 = vmatmul.f32.gmra.mxu1 %v5754_v16 }
 0x280   :  { %v5932_v5 = vmul.f32 %v660_v61, %v5803_v48 }
 0x282   :  { %7524 = vst [vmem:[#allocation6_spill] sm:$0xff] %v5932_v5  ;;  %1954 = vmatmul.f32.gmra.mxu3 %v5611_v45  ;;  %v716_v16 = vmul.f32 %v5932_v5, %v5932_v5  ;;  %v697_v4 = vadd.f32 %v5932_v5, %v5927_v19 }
 0x284   :  { %695 = vadd.xlane.f32.xlu2 %v694_v49  ;;  %v737_v48 = vadd.f32 %v716_v16, %v715_v43  ;;  %v6019_v13 = vpop.f32.mrf.mxu0  ;;  %v6031_v61 = vpop.permute.xlu0 %1670 }
 0x285   :  { %v562_v63 = vpop.f32.mrf.mxu3  ;;  %v5997_v14 = vpop.f32.mrf.mxu2  ;;  %7537 = vst [vmem:[#allocation9_spill] sm:$0xff] %v6019_v13 }
 0x286   :  { %v662_v52 = vmul.f32 %v5502_v2, %v562_v63  ;;  %738 = vadd.xlane.f32.xlu1 %v737_v48  ;;  %7533 = vst [vmem:[#allocation10_spill] sm:$0xff] %v5997_v14  ;;  %v6039_v49 = vpop.permute.xlu2 %1680 }
 0x288   :  { %v5951_v45 = vmul.f32 %v662_v52, %v5817_v62  ;;  %v5965_v62 = vpop.f32.mrf.mxu1 }
 0x28a   :  { %7526 = vst [vmem:[#allocation21_spill] sm:$0xff] %v5951_v45  ;;  %3299 = vmatmul.msk.f32.vlgmr.msra.gmra.mxu3 %vm224_vm0, %v5635_v37  ;;  %v718_v41 = vmul.f32 %v5951_v45, %v5951_v45  ;;  %v700_v2 = vadd.f32 %v5951_v45, %v5947_v44 }
 0x28c   :  { %698 = vadd.xlane.f32.xlu2 %v697_v4  ;;  %v740_v59 = vadd.f32 %v718_v41, %v717_v53  ;;  %v6035_v27 = vpop.f32.mrf.mxu0 }
 0x28d   :  { %v5963_v11 = vpop.f32.mrf.mxu3 }
 0x28e   :  { %7527 = vst [vmem:[#allocation50_spill] sm:$0xff] %v5963_v11  ;;  %741 = vadd.xlane.f32.xlu0 %v740_v59  ;;  %701 = vadd.xlane.f32.xlu1 %v700_v2 }
 0x290   :  { %v5971_v12 = vpop.f32.mrf.mxu1 }
 0x292   :  { %3300 = vmatmul.msk.f32.gmra.mxu3 %vm224_vm0, %v5660_v42 }
 0x294   :  { %v6047_v41 = vpop.f32.mrf.mxu0 }
 0x295   :  { %v5969_v37 = vpop.f32.mrf.mxu3 }
 0x296   :  { %7528 = vst [vmem:[#allocation49_spill] sm:$0xff] %v5969_v37 }
 0x298   :  { %v5980_v7 = vpop.f32.mrf.mxu1 }
 0x29a   :  { %3301 = vmatmul.msk.f32.gmra.mxu3 %vm224_vm0, %v5685_v46  ;;  %v1642_v46 = vld [vmem:[%s7264_s6 + $0x10] sm:$0xff] }
 0x29d   :  { %v5975_v25 = vpop.f32.mrf.mxu3 }
 0x29e   :  { %7529 = vst [vmem:[#allocation18_spill] sm:$0xff] %v5975_v25 }
 0x2a0   :  { %v5993_v21 = vpop.f32.mrf.mxu1 }
 0x2a1   :  { %7532 = vst [vmem:[#allocation11_spill] sm:$0xff] %v5993_v21 }
 0x2a2   :  { %3302 = vmatmul.msk.f32.gmra.mxu3 %vm224_vm0, %v5717_v0  ;;  %1665 = vperm.xlu0 %3392, %v1643_v40   ;;  %v1641_v0 = vld [vmem:[%s7264_s6 + $0x8] sm:$0xff] }
 0x2a5   :  { %v5986_v42 = vpop.f32.mrf.mxu3 }
 0x2a8   :  { %v6008_v10 = vpop.f32.mrf.mxu1 }
 0x2a9   :  { %7535 = vst [vmem:[#allocation12_spill] sm:$0xff] %v6008_v10 }
 0x2aa   :  { %3303 = vmatmul.msk.f32.gmra.mxu3 %vm224_vm0, %v5742_v3  ;;  %1660 = vperm.xlu0 %3392, %v1642_v46   ;;  %v6012_v3 = vpop.f32.mrf.mxu2 }
 0x2ab   :  { %7536 = vst [vmem:[#allocation14_spill] sm:$0xff] %v6012_v3 }
 0x2ad   :  { %v5999_v15 = vpop.f32.mrf.mxu3 }
 0x2b0   :  { %v6025_v29 = vpop.f32.mrf.mxu1 }
 0x2b1   :  { %7538 = vst [vmem:[#allocation17_spill] sm:$0xff] %v6025_v29 }
 0x2b2   :  { %3304 = vmatmul.msk.f32.gmra.mxu3 %vm224_vm0, %v5760_v9  ;;  %1655 = vperm.xlu0 %3392, %v1641_v0   ;;  %v6029_v36 = vpop.f32.mrf.mxu2 }
 0x2b5   :  { %v6010_v28 = vpop.f32.mrf.mxu3 }
 0x2b8   :  { %v6041_v43 = vpop.f32.mrf.mxu1 }
 0x2ba   :  { %3305 = vmatmul.msk.f32.gmra.mxu3 %vm224_vm0, %v5775_v26  ;;  %1650 = vperm.xlu0 %3392, %v1640_v35   ;;  %v6043_v8 = vpop.f32.mrf.mxu2 }
 0x2bd   :  { %v6023_v9 = vpop.f32.mrf.mxu3 }
 0x2c0   :  { %v6049_v40 = vpop.f32.mrf.mxu1 }
 0x2c2   :  { %3306 = vmatmul.msk.f32.gmra.mxu3 %vm224_vm0, %v5788_v1  ;;  %v6051_v46 = vpop.f32.mrf.mxu2 }
 0x2c5   :  { %v6037_v33 = vpop.f32.mrf.mxu3 }
 0x2c7   :  { %v681_v26 = vpop.xlane.xlu1 %680 }
 0x2c8   :  { %v743_v16 = vmul.f32 0.00390625, %v681_v26  ;;  %v6061_v30 = vpop.f32.mrf.mxu1 }
 0x2c9   :  { %v721_v48 = vpop.xlane.xlu0 %720 }
 0x2ca   :  { %v759_v63 = vmul.f32 %v743_v16, %v743_v16  ;;  %v751_v52 = vmul.f32 0.00390625, %v721_v48  ;;  %v6067_v44 = vpop.f32.mrf.mxu2 }
 0x2cc   :  { %v767_v4 = vsub.f32 %v751_v52, %v759_v63  ;;  %v6057_v63 = vpop.f32.mrf.mxu0 }
 0x2cd   :  { %v6045_v53 = vpop.f32.mrf.mxu3 }
 0x2ce   :  { %7539 = vst [vmem:[#allocation16_spill] sm:$0xff] %v6045_v53  ;;  %v775_v1 = vmax.f32 %v767_v4, 0.0 }
 0x2cf   :  { %v684_v59 = vpop.xlane.xlu2 %683 }
 0x2d0   :  { %v783_v2 = vadd.f32 1e-05, %v775_v1  ;;  %v6053_v0 = vmul.f32 0.00390625, %v684_v59  ;;  %v6080_v5 = vpop.f32.mrf.mxu1 }
 0x2d1   :  { %7541 = vst [vmem:[#allocation19_spill] sm:$0xff] %v6080_v5 }
 0x2d2   :  { %3427 = vrsqrt.f32 %v783_v2  ;;  %v760_v52 = vmul.f32 %v6053_v0, %v6053_v0  ;;  %vm797_vm3 = vweird.f32 %v783_v2 }
 0x2d5   :  { %v6055_v35 = vpop.f32.mrf.mxu3 }
 0x2d6   :  { %7540 = vst [vmem:[#allocation13_spill] sm:$0xff] %v6055_v35 }
 0x2d7   :  { %v724_v26 = vpop.xlane.xlu2 %723  ;;  %v687_v21 = vpop.xlane.xlu0 %686 }
 0x2d8   :  { %v3428_v48 = vpop.eup %3427  ;;  %v752_v4 = vmul.f32 0.00390625, %v724_v26  ;;  %v6063_v11 = vmul.f32 0.00390625, %v687_v21  ;;  %v6074_v21 = vpop.f32.mrf.mxu0 }
 0x2d9   :  { %v792_v23 = vmul.f32 %v3428_v48, %v783_v2  ;;  %vm798_vm1 = vweird.f32 %v3428_v48 }
 0x2da   :  { %v768_v1 = vsub.f32 %v752_v4, %v760_v52  ;;  %v761_v26 = vmul.f32 %v6063_v11, %v6063_v11  ;;  %vm799_vm10 = vmor %vm797_vm3, %vm798_vm1 }
 0x2db   :  { %v793_v39 = vmul.f32 %v3428_v48, %v792_v23 }
 0x2dc   :  { %v776_v55 = vmax.f32 %v768_v1, 0.0 }
 0x2dd   :  { %v794_v59 = vmul.f32 0.5, %v793_v39  ;;  %v6065_v45 = vpop.f32.mrf.mxu3  ;;  %v871_v39 = vld [vmem:[%s7266_s8] sm:$0xff] }
 0x2de   :  { %v784_v53 = vadd.f32 1e-05, %v776_v55 }
 0x2df   :  { %v795_v60 = vsub.f32 1.5, %v794_v59  ;;  %v727_v31 = vpop.xlane.xlu0 %726  ;;  %v690_v24 = vpop.xlane.xlu1 %689 }
 0x2e0   :  { %3429 = vrsqrt.f32 %v784_v53  ;;  %v753_v23 = vmul.f32 0.00390625, %v727_v31  ;;  %v6076_v59 = vmul.f32 0.00390625, %v690_v24  ;;  %v6086_v24 = vpop.f32.mrf.mxu2  ;;  %vm807_vm7 = vweird.f32 %v784_v53 }
 0x2e1   :  { %v796_v52 = vmul.f32 %v3428_v48, %v795_v60 }
 0x2e2   :  { %v769_v4 = vsub.f32 %v753_v23, %v761_v26 }
 0x2e3   :  { %v800_v55 = vsel %vm799_vm10, %v3428_v48, %v796_v52  ;;  %v762_v48 = vmul.f32 %v6076_v59, %v6076_v59 }
 0x2e4   :  { %v777_v1 = vmax.f32 %v769_v4, 0.0  ;;  %v879_v29 = vmul.f32 %v871_v39, %v800_v55  ;;  %v6088_v4 = vpop.f32.mrf.mxu0 }
 0x2e5   :  { %v6078_v13 = vpop.f32.mrf.mxu3 }
 0x2e6   :  { %v3430_v10 = vpop.eup %3429  ;;  %v785_v31 = vadd.f32 1e-05, %v777_v1  ;;  %889 = vperm.xlu1 %3393, %v879_v29   ;;  %v6082_v60 = vmul.f32 %v879_v29, %v743_v16 }
 0x2e7   :  { %v802_v2 = vmul.f32 %v3430_v10, %v784_v53  ;;  %v730_v19 = vpop.xlane.xlu1 %729  ;;  %v693_v3 = vpop.xlane.xlu2 %692  ;;  %vm808_vm15 = vweird.f32 %v3430_v10 }
 0x2e8   :  { %3431 = vrsqrt.f32 %v785_v31  ;;  %v754_v26 = vmul.f32 0.00390625, %v730_v19  ;;  %v6090_v1 = vmul.f32 0.00390625, %v693_v3  ;;  %vm809_vm9 = vmor %vm807_vm7, %vm808_vm15  ;;  %v6101_v53 = vpop.f32.mrf.mxu2  ;;  %vm817_vm12 = vweird.f32 %v785_v31 }
 0x2e9   :  { %v803_v23 = vmul.f32 %v3430_v10, %v802_v2  ;;  %v872_v2 = vld [vmem:[%s7266_s8 + $0x8] sm:$0xff]  ;;  %7542 = vst [vmem:[#allocation24_spill] sm:$0xff] %v6101_v53 }
 0x2ea   :  { %v770_v52 = vsub.f32 %v754_v26, %v762_v48  ;;  %v763_v3 = vmul.f32 %v6090_v1, %v6090_v1  ;;  %v6099_v26 = vpop.f32.mrf.mxu1 }
 0x2eb   :  { %v804_v39 = vmul.f32 0.5, %v803_v23 }
 0x2ec   :  { %v778_v55 = vmax.f32 %v770_v52, 0.0  ;;  %v6105_v54 = vpop.f32.mrf.mxu0 }
 0x2ed   :  { %v805_v29 = vsub.f32 1.5, %v804_v39  ;;  %v6092_v16 = vpop.f32.mrf.mxu3  ;;  %7543 = vst [vmem:[#allocation15_spill] sm:$0xff] %v6105_v54 }
 0x2ee   :  { %v3432_v18 = vpop.eup %3431  ;;  %v786_v25 = vadd.f32 1e-05, %v778_v55 }
 0x2ef   :  { %v812_v56 = vmul.f32 %v3432_v18, %v785_v31  ;;  %v733_v20 = vpop.xlane.xlu2 %732  ;;  %v806_v19 = vmul.f32 %v3430_v10, %v805_v29  ;;  %vm818_vm11 = vweird.f32 %v3432_v18 }
 0x2f0   :  { %3433 = vrsqrt.f32 %v786_v25  ;;  %v755_v48 = vmul.f32 0.00390625, %v733_v20  ;;  %vm819_vm13 = vmor %vm817_vm12, %vm818_vm11  ;;  %v6123_v47 = vpop.f32.mrf.mxu2  ;;  %vm827_vm2 = vweird.f32 %v786_v25 }
 0x2f1   :  { %v813_v23 = vmul.f32 %v3432_v18, %v812_v56  ;;  %v810_v52 = vsel %vm809_vm9, %v3430_v10, %v806_v19  ;;  %v736_v10 = vpop.xlane.xlu0 %735  ;;  %7545 = vst [vmem:[#allocation27_spill] sm:$0xff] %v6123_v47 }
 0x2f2   :  { %v771_v39 = vsub.f32 %v755_v48, %v763_v3  ;;  %v880_v55 = vmul.f32 %v872_v2, %v810_v52  ;;  %v873_v3 = vld [vmem:[%s7266_s8 + $0x10] sm:$0xff]  ;;  %v756_v52 = vmul.f32 0.00390625, %v736_v10 }
 0x2f3   :  { %v814_v14 = vmul.f32 0.5, %v813_v23 }
 0x2f4   :  { %v779_v29 = vmax.f32 %v771_v39, 0.0  ;;  %894 = vperm.xlu0 %3392, %v880_v55   ;;  %v952_v20 = vmul.f32 %v880_v55, %v6053_v0 }
 0x2f5   :  { %v815_v51 = vsub.f32 1.5, %v814_v14  ;;  %v6103_v37 = vpop.f32.mrf.mxu3  ;;  %v944_v14 = vld [vmem:[%s7267_s9 + $0x8] sm:$0xff] }
 0x2f6   :  { %v3434_v35 = vpop.eup %3433  ;;  %v6107_v38 = vadd.f32 1e-05, %v779_v29  ;;  %v960_v55 = vsub.f32 %v944_v14, %v952_v20  ;;  %v6121_v29 = vpop.f32.mrf.mxu1  ;;  %v945_v14 = vld [vmem:[%s7267_s9 + $0x10] sm:$0xff] }
 0x2f7   :  { %v822_v56 = vmul.f32 %v3434_v35, %v786_v25  ;;  %v696_v19 = vpop.xlane.xlu2 %695  ;;  %v816_v2 = vmul.f32 %v3432_v18, %v815_v51  ;;  %7544 = vst [vmem:[#allocation29_spill] sm:$0xff] %v6121_v29  ;;  %vm828_vm14 = vweird.f32 %v3434_v35 }
 0x2f8   :  { %3435 = vrsqrt.f32 %v6107_v38  ;;  %v6117_v48 = vmul.f32 0.00390625, %v696_v19  ;;  %vm829_vm4 = vmor %vm827_vm2, %vm828_vm14  ;;  %vm837_vm6 = vweird.f32 %v6107_v38 }
 0x2f9   :  { %v823_v23 = vmul.f32 %v3434_v35, %v822_v56  ;;  %v739_v0 = vpop.xlane.xlu1 %738  ;;  %v820_v31 = vsel %vm819_vm13, %v3432_v18, %v816_v2 }
 0x2fa   :  { %v764_v51 = vmul.f32 %v6117_v48, %v6117_v48  ;;  %v881_v39 = vmul.f32 %v873_v3, %v820_v31 }
 0x2fb   :  { %v824_v54 = vmul.f32 0.5, %v823_v23 }
 0x2fc   :  { %v772_v53 = vsub.f32 %v756_v52, %v764_v51  ;;  %899 = vperm.xlu2 %3394, %v881_v39   ;;  %974 = vperm.xlu0 %3392, %v960_v55   ;;  %v953_v10 = vmul.f32 %v881_v39, %v6063_v11  ;;  %v757_v52 = vmul.f32 0.00390625, %v739_v0 }
 0x2fd   :  { %v825_v58 = vsub.f32 1.5, %v824_v54  ;;  %v6125_v19 = vpop.f32.mrf.mxu3  ;;  %v874_v54 = vld [vmem:[%s7266_s8 + $0x18] sm:$0xff] }
 0x2fe   :  { %v3436_v56 = vpop.eup %3435  ;;  %v780_v18 = vmax.f32 %v772_v53, 0.0  ;;  %v6137_v53 = vpop.f32.mrf.mxu0  ;;  %v961_v55 = vsub.f32 %v945_v14, %v953_v10 }
 0x2ff   :  { %v826_v2 = vmul.f32 %v3434_v35, %v825_v58  ;;  %v832_v20 = vmul.f32 %v3436_v56, %v6107_v38  ;;  %v699_v3 = vpop.xlane.xlu2 %698  ;;  %7546 = vst [vmem:[#allocation23_spill] sm:$0xff] %v6137_v53  ;;  %vm838_vm5 = vweird.f32 %v3436_v56  ;;  %v947_v38 = vld [vmem:[%s7267_s9 + $0x20] sm:$0xff] }
 0x300   :  { %v788_v23 = vadd.f32 1e-05, %v780_v18  ;;  %v6132_v31 = vmul.f32 0.00390625, %v699_v3  ;;  %vm839_vm8 = vmor %vm837_vm6, %vm838_vm5 }
 0x301   :  { %v830_v11 = vsel %vm829_vm4, %v3434_v35, %v826_v2  ;;  %v833_v58 = vmul.f32 %v3436_v56, %v832_v20  ;;  %v702_v25 = vpop.xlane.xlu1 %701  ;;  %v742_v39 = vpop.xlane.xlu0 %741  ;;  %v946_v35 = vld [vmem:[%s7267_s9 + $0x18] sm:$0xff] }
 0x302   :  { %3437 = vrsqrt.f32 %v788_v23  ;;  %v765_v51 = vmul.f32 %v6132_v31, %v6132_v31  ;;  %v6141_v18 = vmul.f32 0.00390625, %v702_v25  ;;  %v882_v3 = vmul.f32 %v874_v54, %v830_v11  ;;  %v6146_v2 = vpop.f32.mrf.mxu1  ;;  %v6153_v54 = vpop.f32.mrf.mxu2 }
 0x303   :  { %v834_v29 = vmul.f32 0.5, %v833_v58  ;;  %7547 = vst [vmem:[#allocation31_spill] sm:$0xff] %v6146_v2  ;;  %v758_v0 = vmul.f32 0.00390625, %v742_v39  ;;  %vm847_vm3 = vweird.f32 %v788_v23 }
 0x304   :  { %v773_v47 = vsub.f32 %v757_v52, %v765_v51  ;;  %979 = vperm.xlu2 %3394, %v961_v55   ;;  %v766_v53 = vmul.f32 %v6141_v18, %v6141_v18  ;;  %v954_v10 = vmul.f32 %v882_v3, %v6076_v59 }
 0x305   :  { %v835_v20 = vsub.f32 1.5, %v834_v29  ;;  %v6150_v17 = vpop.f32.mrf.mxu3  ;;  %v875_v29 = vld [vmem:[%s7266_s8 + $0x20] sm:$0xff] }
 0x306   :  { %v781_v14 = vmax.f32 %v773_v47, 0.0  ;;  %v774_v58 = vsub.f32 %v758_v0, %v766_v53  ;;  %v962_v25 = vsub.f32 %v946_v35, %v954_v10  ;;  %v2022_v59 = vpop.f32.mrf.mxu0 }
 0x307   :  { %v836_v11 = vmul.f32 %v3436_v56, %v835_v20 }
 0x308   :  { %v3438_v52 = vpop.eup %3437  ;;  %v789_v51 = vadd.f32 1e-05, %v781_v14  ;;  %v782_v2 = vmax.f32 %v774_v58, 0.0  ;;  %984 = vperm.xlu1 %3393, %v962_v25  }
 0x309   :  { %v840_v39 = vsel %vm839_vm8, %v3436_v56, %v836_v11  ;;  %v842_v55 = vmul.f32 %v3438_v52, %v788_v23  ;;  %vm848_vm1 = vweird.f32 %v3438_v52 }
 0x30a   :  { %3439 = vrsqrt.f32 %v789_v51  ;;  %v883_v47 = vmul.f32 %v875_v29, %v840_v39  ;;  %v6160_v5 = vadd.f32 1e-05, %v782_v2  ;;  %v2063_v10 = vpop.f32.mrf.mxu1  ;;  %v6169_v58 = vpop.f32.mrf.mxu2  ;;  %v876_v2 = vld [vmem:[%s7266_s8 + $0x28] sm:$0xff]  ;;  %vm849_vm10 = vmor %vm847_vm3, %vm848_vm1  ;;  %vm857_vm7 = vweird.f32 %v789_v51 }
 0x30b   :  { %v843_v20 = vmul.f32 %v3438_v52, %v842_v55 }
 0x30c   :  { %904 = vperm.xlu2 %3394, %v882_v3   ;;  %v955_v53 = vmul.f32 %v883_v47, %v6090_v1  ;;  %3441 = vrsqrt.f32 %v6160_v5  ;;  %vm867_vm12 = vweird.f32 %v6160_v5 }
 0x30d   :  { %v844_v35 = vmul.f32 0.5, %v843_v20  ;;  %v6167_v56 = vpop.f32.mrf.mxu3 }
 0x30e   :  { %7548 = vst [vmem:[#allocation56_spill] sm:$0xff] %v6167_v56  ;;  %v963_v0 = vsub.f32 %v947_v38, %v955_v53  ;;  %v6177_v53 = vpop.f32.mrf.mxu0 }
 0x30f   :  { %v845_v14 = vsub.f32 1.5, %v844_v35  ;;  %v948_v35 = vld [vmem:[%s7267_s9 + $0x28] sm:$0xff] }
 0x310   :  { %v3440_v11 = vpop.eup %3439  ;;  %989 = vperm.xlu1 %3393, %v963_v0  }
 0x311   :  { %v846_v25 = vmul.f32 %v3438_v52, %v845_v14  ;;  %v852_v3 = vmul.f32 %v3440_v11, %v789_v51  ;;  %vm858_vm15 = vweird.f32 %v3440_v11 }
 0x312   :  { %v3442_v1 = vpop.eup %3441  ;;  %vm859_vm9 = vmor %vm857_vm7, %vm858_vm15 }
 0x313   :  { %v850_v29 = vsel %vm849_vm10, %v3438_v52, %v846_v25  ;;  %v853_v39 = vmul.f32 %v3440_v11, %v852_v3  ;;  %v862_v20 = vmul.f32 %v3442_v1, %v6160_v5  ;;  %v6185_v25 = vpop.f32.mrf.mxu1  ;;  %vm868_vm11 = vweird.f32 %v3442_v1  ;;  %v943_v5 = vld [vmem:[%s7267_s9] sm:$0xff] }
 0x314   :  { %v884_v55 = vmul.f32 %v876_v2, %v850_v29  ;;  %909 = vperm.xlu2 %3394, %v883_v47   ;;  %v6175_v38 = vpop.permute.xlu0 %1665  ;;  %v877_v47 = vld [vmem:[%s7266_s8 + $0x30] sm:$0xff]  ;;  %vm869_vm13 = vmor %vm867_vm12, %vm868_vm11 }
 0x315   :  { %v854_v14 = vmul.f32 0.5, %v853_v39  ;;  %v6182_v23 = vpop.f32.mrf.mxu3  ;;  %v863_v56 = vmul.f32 %v3442_v1, %v862_v20  ;;  %v1987_v39 = vpop.f32.mrf.mxu2  ;;  %v949_v20 = vld [vmem:[%s7267_s9 + $0x30] sm:$0xff] }
 0x316   :  { %7549 = vst [vmem:[#allocation33_spill] sm:$0xff] %v6182_v23  ;;  %v956_v0 = vmul.f32 %v884_v55, %v6117_v48 }
 0x317   :  { %v855_v52 = vsub.f32 1.5, %v854_v14  ;;  %v864_v29 = vmul.f32 0.5, %v863_v56  ;;  %v2028_v56 = vpop.f32.mrf.mxu0 }
 0x318   :  { %v964_v2 = vsub.f32 %v948_v35, %v956_v0 }
 0x319   :  { %v856_v3 = vmul.f32 %v3440_v11, %v855_v52  ;;  %v865_v35 = vsub.f32 1.5, %v864_v29 }
 0x31a   :  { %994 = vperm.xlu1 %3393, %v964_v2  }
 0x31b   :  { %v860_v22 = vsel %vm859_vm9, %v3440_v11, %v856_v3  ;;  %v1947_v11 = vadd.f32 %v6092_v16, %v6031_v61  ;;  %v866_v2 = vmul.f32 %v3442_v1, %v865_v35  ;;  %v959_v35 = vsub.f32 %v943_v5, %v6082_v60 }
 0x31c   :  { %v885_v23 = vmul.f32 %v877_v47, %v860_v22  ;;  %914 = vperm.xlu2 %3394, %v884_v55   ;;  %v6190_v48 = vpop.permute.xlu0 %1660  ;;  %v1742_v22 = vadd.f32 %v5945_v32, %v6031_v61  ;;  %v878_v32 = vld [vmem:[%s7266_s8 + $0x38] sm:$0xff] }
 0x31d   :  { %v1941_v14 = vadd.f32 %v6065_v45, %v6190_v48  ;;  %v2104_v0 = vpop.f32.mrf.mxu3  ;;  %v2069_v45 = vpop.f32.mrf.mxu1  ;;  %v1988_v29 = vadd.f32 %v1987_v39, %v1947_v11  ;;  %v870_v61 = vsel %vm869_vm13, %v3442_v1, %v866_v2  ;;  %v1751_v2 = vadd.f32 %v5980_v7, %v6027_v6 }
 0x31e   :  { %v957_v51 = vmul.f32 %v885_v23, %v6132_v31  ;;  %v1783_v3 = vadd.f32 %v5999_v15, %v1742_v22  ;;  %v1745_v7 = vadd.f32 %v5965_v62, %v6014_v34 }
 0x31f   :  { %v1982_v52 = vadd.f32 %v6153_v54, %v1941_v14  ;;  %v1990_v54 = vpop.f32.mrf.mxu2  ;;  %v2031_v39 = vpop.f32.mrf.mxu0 }
 0x320   :  { %v965_v55 = vsub.f32 %v949_v20, %v957_v51  ;;  %v1824_v15 = vadd.f32 %v6043_v8, %v1783_v3  ;;  %v950_v8 = vld [vmem:[%s7267_s9 + $0x38] sm:$0xff]  ;;  %v1792_v3 = vadd.f32 %v6037_v33, %v1751_v2 }
 0x321   :  { %v2023_v47 = vadd.f32 %v2022_v59, %v1982_v52  ;;  %v2029_v59 = vadd.f32 %v2028_v56, %v1988_v29  ;;  %v7560_v2 = vld [vmem:[#allocation41_spill] sm:$0xff] }
 0x322   :  { %999 = vperm.xlu1 %3393, %v965_v55  }
 0x323   :  { %v2064_v31 = vadd.f32 %v2063_v10, %v2023_v47  ;;  %v886_v10 = vmul.f32 %v878_v32, %v870_v61  ;;  %v2070_v14 = vadd.f32 %v2069_v45, %v2029_v59  ;;  %v1956_v47 = vadd.f32 %v6150_v17, %v6027_v6 }
 0x324   :  { %919 = vperm.xlu2 %3394, %v885_v23   ;;  %v1865_v23 = vadd.f32 %v6047_v41, %v1824_v15  ;;  %v1833_v32 = vadd.f32 %v6086_v24, %v1792_v3  ;;  %v1950_v15 = vadd.f32 %v6103_v37, %v6014_v34  ;;  %v1786_v17 = vadd.f32 %v6010_v28, %v1745_v7  ;;  %v7565_v7 = vld [vmem:[#allocation5_spill] sm:$0xff] }
 0x325   :  { %v6208_v16 = vadd.f32 %v2104_v0, %v2064_v31  ;;  %v6210_v20 = vpop.f32.mrf.mxu3  ;;  %v958_v1 = vmul.f32 %v886_v10, %v6141_v18  ;;  %v2072_v0 = vpop.f32.mrf.mxu1  ;;  %v1739_v24 = vadd.f32 %v5920_v57, %v6175_v38  ;;  %v1944_v37 = vadd.f32 %v6078_v13, %v6175_v38 }
 0x326   :  { %v6223_v52 = vadd.f32 %v6049_v40, %v1865_v23  ;;  %v1874_v59 = vadd.f32 %v6088_v4, %v1833_v32  ;;  %v1991_v6 = vadd.f32 %v1990_v54, %v1950_v15  ;;  %v1827_v62 = vadd.f32 %v6051_v46, %v1786_v17  ;;  %v1656_v15 = vpop.permute.xlu0 %1655  ;;  %v7566_v17 = vld [vmem:[#allocation47_spill] sm:$0xff] }
 0x327   :  { %7550 = vst [vmem:[#allocation25_spill] sm:$0xff] %v6208_v16  ;;  %v1993_v22 = vpop.f32.mrf.mxu2  ;;  %v966_v41 = vsub.f32 %v950_v8, %v958_v1  ;;  %v2034_v18 = vpop.f32.mrf.mxu0  ;;  %v1780_v28 = vadd.f32 %v5986_v42, %v1739_v24  ;;  %v1953_v57 = vadd.f32 %v6125_v19, %v6039_v49  ;;  %v1748_v42 = vadd.f32 %v5971_v12, %v6039_v49 }
 0x328   :  { %7551 = vst [vmem:[#allocation37_spill] sm:$0xff] %v6223_v52  ;;  %v6242_v23 = vadd.f32 %v6099_v26, %v1874_v59  ;;  %v2032_v34 = vadd.f32 %v2031_v39, %v1991_v6  ;;  %v1985_v26 = vadd.f32 %v6169_v58, %v1944_v37  ;;  %v1868_v54 = vadd.f32 %v6057_v63, %v1827_v62 }
 0x329   :  { %v1821_v13 = vadd.f32 %v6029_v36, %v1780_v28  ;;  %v1789_v63 = vadd.f32 %v6023_v9, %v1748_v42  ;;  %v1994_v39 = vadd.f32 %v1993_v22, %v1953_v57  ;;  %v1733_v6 = vadd.f32 %v7566_v17, %v1656_v15  ;;  %v7573_v42 = vld [vmem:[#allocation10_spill] sm:$0xff]  ;;  %v7589_v17 = vld [vmem:[#allocation9_spill] sm:$0xff] }
 0x32a   :  { %924 = vperm.xlu1 %3393, %v886_v10   ;;  %v2026_v38 = vadd.f32 %v6177_v53, %v1985_v26  ;;  %v6263_v46 = vadd.f32 %v6061_v30, %v1868_v54  ;;  %v7570_v26 = vld [vmem:[#allocation49_spill] sm:$0xff] }
 0x32b   :  { %v1830_v30 = vadd.f32 %v6067_v44, %v1789_v63  ;;  %v2035_v8 = vadd.f32 %v2034_v18, %v1994_v39  ;;  %v1774_v54 = vadd.f32 %v7570_v26, %v1733_v6  ;;  %v7574_v63 = vld [vmem:[#allocation23_spill] sm:$0xff] }
 0x32c   :  { %969 = vperm.xlu2 %3394, %v959_v35   ;;  %v2067_v19 = vadd.f32 %v6185_v25, %v2026_v38  ;;  %v7556_v25 = vld [vmem:[#allocation45_spill] sm:$0xff] }
 0x32d   :  { %v2110_v51 = vpop.f32.mrf.mxu3  ;;  %v2075_v55 = vpop.f32.mrf.mxu1  ;;  %v1871_v9 = vadd.f32 %v6074_v21, %v1830_v30 }
 0x32e   :  { %v6225_v56 = vadd.f32 %v2110_v51, %v2070_v14  ;;  %v2073_v14 = vadd.f32 %v2072_v0, %v2032_v34  ;;  %v1862_v0 = vadd.f32 %v6035_v27, %v1821_v13  ;;  %v6273_v36 = vadd.f32 %v6210_v20, %v2067_v19  ;;  %v7572_v13 = vld [vmem:[#allocation43_spill] sm:$0xff] }
 0x32f   :  { %v1996_v40 = vpop.f32.mrf.mxu2  ;;  %v2037_v31 = vpop.f32.mrf.mxu0  ;;  %v2076_v51 = vadd.f32 %v2075_v55, %v2035_v8  ;;  %v1736_v38 = vadd.f32 %v7572_v13, %v6190_v48 }
 0x330   :  { %7552 = vst [vmem:[#allocation35_spill] sm:$0xff] %v6225_v56  ;;  %v2174_v60 = vadd.f32 %v6225_v56, %v6223_v52  ;;  %v1997_v45 = vadd.f32 %v1996_v40, %v1956_v47  ;;  %v6277_v12 = vadd.f32 %v6041_v43, %v1862_v0  ;;  %v7559_v43 = vld [vmem:[#allocation19_spill] sm:$0xff]  ;;  %v7561_v40 = vld [vmem:[#allocation40_spill] sm:$0xff]  ;;  %v7575_v0 = vld [vmem:[#allocation2_spill] sm:$0xff] }
 0x331   :  { %7554 = vst [vmem:[#allocation46_spill] sm:$0xff] %v6273_v36  ;;  %v6291_v18 = vadd.f32 %v7559_v43, %v1871_v9 }
 0x332   :  { %2175 = vadd.xlane.f32.xlu0 %v2174_v60  ;;  %1004 = vperm.xlu1 %3393, %v966_v41   ;;  %v2038_v61 = vadd.f32 %v2037_v31, %v1997_v45  ;;  %7555 = vst [vmem:[#allocation32_spill] sm:$0xff] %v6277_v12  ;;  %v2171_v49 = vadd.f32 %v6273_v36, %v6277_v12 }
 0x335   :  { %v2113_v11 = vpop.f32.mrf.mxu3  ;;  %v2078_v5 = vpop.f32.mrf.mxu1 }
 0x336   :  { %v2079_v10 = vadd.f32 %v2078_v5, %v2038_v61  ;;  %v6256_v1 = vadd.f32 %v2113_v11, %v2073_v14  ;;  %v7564_v5 = vld [vmem:[#allocation36_spill] sm:$0xff]  ;;  %v7571_v14 = vld [vmem:[#allocation27_spill] sm:$0xff] }
 0x338   :  { %7553 = vst [vmem:[#allocation57_spill] sm:$0xff] %v6256_v1  ;;  %v2177_v58 = vadd.f32 %v6256_v1, %v6263_v46 }
 0x33d   :  { %v2116_v29 = vpop.f32.mrf.mxu3 }
 0x33e   :  { %v6284_v20 = vadd.f32 %v2116_v29, %v2076_v51  ;;  %v7579_v51 = vld [vmem:[#allocation18_spill] sm:$0xff] }
 0x340   :  { %v2180_v21 = vadd.f32 %v6284_v20, %v6291_v18 }
 0x345   :  { %v2119_v33 = vpop.f32.mrf.mxu3 }
 0x346   :  { %v6244_v35 = vadd.f32 %v2119_v33, %v2079_v10  ;;  %v7567_v33 = vld [vmem:[#allocation13_spill] sm:$0xff] }
 0x347   :  { %v1938_v24 = vadd.f32 %v7567_v33, %v1656_v15 }
 0x348   :  { %v2183_v4 = vadd.f32 %v6244_v35, %v6242_v23 }
 0x349   :  { %v1979_v57 = vadd.f32 %v7571_v14, %v1938_v24 }
 0x34a   :  { %2184 = vadd.xlane.f32.xlu0 %v2183_v4 }
 0x34b   :  { %v2020_v39 = vadd.f32 %v7574_v63, %v1979_v57  ;;  %v7592_v57 = vld [vmem:[#allocation4_spill] sm:$0xff] }
 0x355   :  { %2178 = vadd.xlane.f32.xlu2 %v2177_v58  ;;  %v1815_v58 = vadd.f32 %v7573_v42, %v1774_v54 }
 0x356   :  { %v900_v53 = vpop.permute.xlu2 %899 }
 0x357   :  { %v931_v27 = vmul.f32 %v900_v53, %v5851_v50  ;;  %v932_v22 = vmul.f32 %v900_v53, %v7556_v25  ;;  %v7576_v53 = vld [vmem:[#allocation3_spill] sm:$0xff]  ;;  %v7580_v25 = vld [vmem:[#allocation8_spill] sm:$0xff] }
 0x358   :  { %v890_v55 = vpop.permute.xlu1 %889 }
 0x359   :  { %v927_v13 = vmul.f32 %v890_v55, %v7592_v57  ;;  %v7610_v57 = vld [vmem:[#allocation11_spill] sm:$0xff] }
 0x35c   :  { %2172 = vadd.xlane.f32.xlu1 %v2171_v49 }
 0x35e   :  { %v980_v41 = vpop.permute.xlu2 %979 }
 0x35f   :  { %v6286_v60 = vadd.f32 %v980_v41, %v931_v27  ;;  %v6288_v44 = vadd.f32 %v980_v41, %v932_v22  ;;  %v1777_v27 = vadd.f32 %v7579_v51, %v1736_v38  ;;  %v1856_v22 = vadd.f32 %v7580_v25, %v1815_v58  ;;  %v7581_v41 = vld [vmem:[#allocation31_spill] sm:$0xff]  ;;  %v7593_v38 = vld [vmem:[#allocation28_spill] sm:$0xff]  ;;  %v7599_v51 = vld [vmem:[#allocation21_spill] sm:$0xff] }
 0x360   :  { %v2061_v43 = vadd.f32 %v7581_v41, %v2020_v39  ;;  %v928_v42 = vmul.f32 %v890_v55, %v7593_v38  ;;  %v7594_v58 = vld [vmem:[#allocation44_spill] sm:$0xff] }
 0x361   :  { %7557 = vst [vmem:[#allocation39_spill] sm:$0xff] %v6286_v60  ;;  %v2136_v11 = vadd.f32 %v6288_v44, %v6286_v60  ;;  %v7595_v39 = vld [vmem:[#allocation16_spill] sm:$0xff] }
 0x362   :  { %7558 = vst [vmem:[#allocation58_spill] sm:$0xff] %v6288_v44 }
 0x363   :  { %2137 = vadd.xlane.f32.xlu0 %v2136_v11 }
 0x364   :  { %2181 = vadd.xlane.f32.xlu1 %v2180_v21  ;;  %v7582_v21 = vld [vmem:[#allocation14_spill] sm:$0xff] }
 0x366   :  { %v905_v50 = vpop.permute.xlu2 %904 }
 0x367   :  { %v933_v47 = vmul.f32 %v905_v50, %v7560_v2  ;;  %v934_v3 = vmul.f32 %v905_v50, %v7561_v40  ;;  %v1818_v50 = vadd.f32 %v7582_v21, %v1777_v27  ;;  %v7583_v2 = vld [vmem:[#allocation7_spill] sm:$0xff]  ;;  %v7584_v40 = vld [vmem:[#allocation6_spill] sm:$0xff] }
 0x369   :  { %v1859_v6 = vadd.f32 %v7589_v17, %v1818_v50 }
 0x36e   :  { %v910_v31 = vpop.permute.xlu2 %909 }
 0x36f   :  { %v935_v59 = vmul.f32 %v910_v31, %v7564_v5  ;;  %v936_v10 = vmul.f32 %v910_v31, %v7565_v7 }
 0x376   :  { %v915_v34 = vpop.permute.xlu2 %914 }
 0x377   :  { %v937_v19 = vmul.f32 %v915_v34, %v7575_v0  ;;  %v938_v30 = vmul.f32 %v915_v34, %v7576_v53 }
 0x37a   :  { %v985_v45 = vpop.permute.xlu1 %984 }
 0x37b   :  { %v6299_v29 = vadd.f32 %v985_v45, %v933_v47  ;;  %v6301_v32 = vadd.f32 %v985_v45, %v934_v3  ;;  %v7585_v45 = vld [vmem:[#allocation12_spill] sm:$0xff] }
 0x37c   :  { %v6336_v31 = vadd.f32 %v7585_v45, %v1856_v22 }
 0x37d   :  { %7562 = vst [vmem:[#allocation42_spill] sm:$0xff] %v6299_v29  ;;  %v2139_v61 = vadd.f32 %v6301_v32, %v6299_v29 }
 0x37e   :  { %7563 = vst [vmem:[#allocation34_spill] sm:$0xff] %v6301_v32  ;;  %v920_v11 = vpop.permute.xlu2 %919 }
 0x37f   :  { %2140 = vadd.xlane.f32.xlu2 %v2139_v61  ;;  %v939_v47 = vmul.f32 %v920_v11, %v7583_v2  ;;  %v940_v3 = vmul.f32 %v920_v11, %v7584_v40  ;;  %7586 = vst [vmem:[#allocation48_spill] sm:$0xff] %v6336_v31  ;;  %v7587_v61 = vld [vmem:[#allocation33_spill] sm:$0xff] }
 0x380   :  { %v6339_v15 = vadd.f32 %v7587_v61, %v2061_v43  ;;  %v7600_v43 = vld [vmem:[#allocation50_spill] sm:$0xff]  ;;  %v7604_v61 = vld [vmem:[#allocation53_spill] sm:$0xff] }
 0x382   :  { %v990_v37 = vpop.permute.xlu1 %989  ;;  %7588 = vst [vmem:[#allocation66_spill] sm:$0xff] %v6339_v15  ;;  %v2165_v24 = vadd.f32 %v6339_v15, %v6336_v31 }
 0x383   :  { %v6309_v4 = vadd.f32 %v990_v37, %v935_v59  ;;  %v6311_v62 = vadd.f32 %v990_v37, %v936_v10  ;;  %v1651_v10 = vpop.permute.xlu0 %1650  ;;  %v7590_v37 = vld [vmem:[#allocation17_spill] sm:$0xff] }
 0x384   :  { %v6351_v34 = vadd.f32 %v7590_v37, %v1859_v6  ;;  %v1730_v63 = vadd.f32 %v7594_v58, %v1651_v10  ;;  %v1935_v0 = vadd.f32 %v7595_v39, %v1651_v10  ;;  %v7605_v10 = vld [vmem:[#allocation15_spill] sm:$0xff] }
 0x385   :  { %7568 = vst [vmem:[#allocation59_spill] sm:$0xff] %v6309_v4  ;;  %v2142_v28 = vadd.f32 %v6311_v62, %v6309_v4 }
 0x386   :  { %7569 = vst [vmem:[#allocation60_spill] sm:$0xff] %v6311_v62  ;;  %v2168_v54 = vadd.f32 %v6208_v16, %v6351_v34  ;;  %v970_v14 = vpop.permute.xlu2 %969  ;;  %v1771_v55 = vadd.f32 %v7600_v43, %v1730_v63 }
 0x387   :  { %2143 = vadd.xlane.f32.xlu1 %v2142_v28  ;;  %7591 = vst [vmem:[#allocation51_spill] sm:$0xff] %v6351_v34  ;;  %v6361_v53 = vadd.f32 %v970_v14, %v928_v42 }
 0x389   :  { %7597 = vst [vmem:[#allocation54_spill] sm:$0xff] %v6361_v53 }
 0x38b   :  { %v895_v26 = vpop.permute.xlu0 %894 }
 0x38c   :  { %v995_v8 = vpop.permute.xlu1 %994 }
 0x38d   :  { %v6323_v49 = vadd.f32 %v995_v8, %v937_v19  ;;  %v6325_v9 = vadd.f32 %v995_v8, %v938_v30  ;;  %v6359_v19 = vadd.f32 %v970_v14, %v927_v13  ;;  %v7598_v30 = vld [vmem:[#allocation26_spill] sm:$0xff]  ;;  %v7612_v13 = vld [vmem:[#allocation56_spill] sm:$0xff] }
 0x38f   :  { %7577 = vst [vmem:[#allocation62_spill] sm:$0xff] %v6323_v49  ;;  %v2145_v48 = vadd.f32 %v6325_v9, %v6323_v49  ;;  %v2130_v21 = vadd.f32 %v6361_v53, %v6359_v19 }
 0x390   :  { %7578 = vst [vmem:[#allocation64_spill] sm:$0xff] %v6325_v9 }
 0x391   :  { %2146 = vadd.xlane.f32.xlu0 %v2145_v48  ;;  %7596 = vst [vmem:[#allocation61_spill] sm:$0xff] %v6359_v19  ;;  %v7601_v48 = vld [vmem:[#allocation24_spill] sm:$0xff] }
 0x392   :  { %v1976_v11 = vadd.f32 %v7601_v48, %v1935_v0 }
 0x393   :  { %v975_v2 = vpop.permute.xlu0 %974 }
 0x394   :  { %v1000_v5 = vpop.permute.xlu1 %999  ;;  %v2017_v17 = vadd.f32 %v7605_v10, %v1976_v11 }
 0x395   :  { %v6341_v59 = vadd.f32 %v1000_v5, %v939_v47  ;;  %v6343_v7 = vadd.f32 %v1000_v5, %v940_v3  ;;  %v7602_v47 = vld [vmem:[#allocation38_spill] sm:$0xff]  ;;  %v1812_v5 = vadd.f32 %v7604_v61, %v1771_v55 }
 0x396   :  { %v929_v40 = vmul.f32 %v895_v26, %v7602_v47  ;;  %v7603_v3 = vld [vmem:[#allocation30_spill] sm:$0xff] }
 0x397   :  { %v2148_v33 = vadd.f32 %v6343_v7, %v6341_v59  ;;  %v930_v45 = vmul.f32 %v895_v26, %v7603_v3 }
 0x398   :  { %v6379_v6 = vadd.f32 %v975_v2, %v929_v40 }
 0x399   :  { %2166 = vadd.xlane.f32.xlu0 %v2165_v24  ;;  %2149 = vadd.xlane.f32.xlu2 %v2148_v33  ;;  %v6381_v33 = vadd.f32 %v975_v2, %v930_v45  ;;  %v7608_v24 = vld [vmem:[#allocation52_spill] sm:$0xff] }
 0x39a   :  { %7606 = vst [vmem:[#allocation63_spill] sm:$0xff] %v6379_v6  ;;  %v1853_v37 = vadd.f32 %v7608_v24, %v1812_v5 }
 0x39b   :  { %7607 = vst [vmem:[#allocation55_spill] sm:$0xff] %v6381_v33  ;;  %v2133_v14 = vadd.f32 %v6381_v33, %v6379_v6 }
 0x39c   :  { %v925_v28 = vpop.permute.xlu1 %924  ;;  %v6388_v26 = vadd.f32 %v7610_v57, %v1853_v37 }
 0x39d   :  { %v941_v8 = vmul.f32 %v925_v28, %v7598_v30  ;;  %v942_v27 = vmul.f32 %v925_v28, %v7599_v51  ;;  %v7609_v28 = vld [vmem:[#allocation29_spill] sm:$0xff] }
 0x39e   :  { %7611 = vst [vmem:[#allocation65_spill] sm:$0xff] %v6388_v26 }
 0x3a1   :  { %2169 = vadd.xlane.f32.xlu2 %v2168_v54  ;;  %v2058_v54 = vadd.f32 %v7609_v28, %v2017_v17 }
 0x3a3   :  { %v6391_v38 = vadd.f32 %v7612_v13, %v2058_v54  ;;  %v6442_v13 = vld [vmem:[%s7268_s10] sm:$0xff] }
 0x3a4   :  { %v1005_v25 = vpop.permute.xlu1 %1004 }
 0x3a5   :  { %v6365_v22 = vadd.f32 %v1005_v25, %v941_v8  ;;  %v6367_v41 = vadd.f32 %v1005_v25, %v942_v27  ;;  %7613 = vst [vmem:[#allocation67_spill] sm:$0xff] %v6391_v38  ;;  %v2176_v42 = vpop.xlane.xlu0 %2175  ;;  %v2162_v58 = vadd.f32 %v6391_v38, %v6388_v26 }
 0x3a6   :  { %v6403_v25 = vmul.f32 0.00390625, %v2176_v42 }
 0x3a7   :  { %v2151_v50 = vadd.f32 %v6367_v41, %v6365_v22 }
 0x3a9   :  { %2131 = vadd.xlane.f32.xlu2 %v2130_v21  ;;  %2152 = vadd.xlane.f32.xlu1 %v2151_v50 }
 0x3b1   :  { %2134 = vadd.xlane.f32.xlu1 %v2133_v14 }
 0x3b9   :  { %2163 = vadd.xlane.f32.xlu1 %v2162_v58 }
 0x3bd   :  { %v2185_v63 = vpop.xlane.xlu0 %2184 }
 0x3be   :  { %v6395_v39 = vmul.f32 0.00390625, %v2185_v63  ;;  %v6455_v63 = vld [vmem:[%s7268_s10 + $0x8] sm:$0xff] }
 0x3c0   :  { %2275 = vmatpush.msrb.mxu0 %v6395_v39 }
 0x3c8   :  { %v2179_v30 = vpop.xlane.xlu2 %2178 }
 0x3c9   :  { %v6400_v27 = vmul.f32 0.00390625, %v2179_v30  ;;  %v6473_v30 = vld [vmem:[%s7268_s10 + $0x18] sm:$0xff] }
 0x3cf   :  { %v2173_v0 = vpop.xlane.xlu1 %2172 }
 0x3d0   :  { %v6406_v43 = vmul.f32 0.00390625, %v2173_v0  ;;  %v6464_v0 = vld [vmem:[%s7268_s10 + $0x10] sm:$0xff] }
 0x3d6   :  { %v2138_v55 = vpop.xlane.xlu0 %2137 }
 0x3d7   :  { %v2182_v8 = vpop.xlane.xlu1 %2181  ;;  %v6430_v28 = vmul.f32 0.00390625, %v2138_v55  ;;  %v6491_v55 = vld [vmem:[%s7268_s10 + $0x28] sm:$0xff] }
 0x3d8   :  { %v6398_v51 = vmul.f32 0.00390625, %v2182_v8  ;;  %v6482_v8 = vld [vmem:[%s7268_s10 + $0x20] sm:$0xff] }
 0x3da   :  { %2276 = vmatpush.msrb.mxu0 %v6398_v51 }
 0x3dc   :  { %2277 = vmatpush.msrb.mxu0 %v6400_v27 }
 0x3de   :  { %2278 = vmatpush.msrb.mxu0 %v6403_v25 }
 0x3e0   :  { %2279 = vmatpush.msrb.mxu0 %v6406_v43 }
 0x3f2   :  { %v2141_v48 = vpop.xlane.xlu2 %2140 }
 0x3f3   :  { %v6427_v37 = vmul.f32 0.00390625, %v2141_v48  ;;  %v6500_v48 = vld [vmem:[%s7268_s10 + $0x30] sm:$0xff] }
 0x3fa   :  { %v2144_v50 = vpop.xlane.xlu1 %2143 }
 0x3fb   :  { %v6424_v17 = vmul.f32 0.00390625, %v2144_v50 }
 0x404   :  { %v2147_v11 = vpop.xlane.xlu0 %2146 }
 0x405   :  { %v6421_v10 = vmul.f32 0.00390625, %v2147_v11  ;;  %v6509_v11 = vld [vmem:[%s7268_s10 + $0x38] sm:$0xff] }
 0x40c   :  { %v2150_v21 = vpop.xlane.xlu2 %2149  ;;  %v2167_v2 = vpop.xlane.xlu0 %2166 }
 0x40d   :  { %v6412_v3 = vmul.f32 0.00390625, %v2167_v2  ;;  %v6418_v5 = vmul.f32 0.00390625, %v2150_v21 }
 0x414   :  { %v2170_v47 = vpop.xlane.xlu2 %2169 }
 0x415   :  { %v6410_v40 = vmul.f32 0.00390625, %v2170_v47 }
 0x417   :  { %2280 = vmatpush.msrb.mxu0 %v6410_v40 }
 0x419   :  { %2281 = vmatpush.msrb.mxu0 %v6412_v3 }
 0x41c   :  { %v2153_v45 = vpop.xlane.xlu1 %2152  ;;  %v2132_v54 = vpop.xlane.xlu2 %2131 }
 0x41d   :  { %v6416_v61 = vmul.f32 0.00390625, %v2153_v45  ;;  %v6436_v57 = vmul.f32 0.00390625, %v2132_v54 }
 0x41f   :  { %2226 = vmatpush.msra.mxu2 %v6416_v61 }
 0x421   :  { %2227 = vmatpush.msra.mxu2 %v6418_v5 }
 0x423   :  { %2228 = vmatpush.msra.mxu2 %v6421_v10 }
 0x424   :  { %v2135_v24 = vpop.xlane.xlu1 %2134 }
 0x425   :  { %2229 = vmatpush.msra.mxu2 %v6424_v17  ;;  %v6433_v14 = vmul.f32 0.00390625, %v2135_v24 }
 0x427   :  { %2230 = vmatpush.msra.mxu2 %v6427_v37 }
 0x429   :  { %2231 = vmatpush.msra.mxu2 %v6430_v28 }
 0x42b   :  { %2232 = vmatpush.msra.mxu2 %v6433_v14 }
 0x42c   :  { %v2164_v42 = vpop.xlane.xlu1 %2163 }
 0x42d   :  { %v6444_v58 = vmul.f32 0.00390625, %v2164_v42  ;;  %2233 = vmatpush.msra.mxu2 %v6436_v57 }
 0x42e   :  { %3307 = vmatmul.msk.f32.vlgmr.msra.gmra.mxu2 %vm224_vm0, %v6442_v13 }
 0x42f   :  { %2282 = vmatpush.msrb.mxu0 %v6444_v58 }
 0x430   :  { %3315 = vmatmul.msk.f32.vlgmr.msrb.gmra.mxu0 %vm224_vm0, %v6442_v13 }
 0x436   :  { %3308 = vmatmul.msk.f32.gmra.mxu2 %vm224_vm0, %v6455_v63 }
 0x438   :  { %3316 = vmatmul.msk.f32.gmra.mxu0 %vm224_vm0, %v6455_v63 }
 0x43e   :  { %3309 = vmatmul.msk.f32.gmra.mxu2 %vm224_vm0, %v6464_v0 }
 0x440   :  { %3317 = vmatmul.msk.f32.gmra.mxu0 %vm224_vm0, %v6464_v0 }
 0x446   :  { %3310 = vmatmul.msk.f32.gmra.mxu2 %vm224_vm0, %v6473_v30 }
 0x448   :  { %3318 = vmatmul.msk.f32.gmra.mxu0 %vm224_vm0, %v6473_v30 }
 0x44e   :  { %3311 = vmatmul.msk.f32.gmra.mxu2 %vm224_vm0, %v6482_v8 }
 0x450   :  { %3319 = vmatmul.msk.f32.gmra.mxu0 %vm224_vm0, %v6482_v8 }
 0x456   :  { %3312 = vmatmul.msk.f32.gmra.mxu2 %vm224_vm0, %v6491_v55 }
 0x458   :  { %3320 = vmatmul.msk.f32.gmra.mxu0 %vm224_vm0, %v6491_v55 }
 0x45e   :  { %3313 = vmatmul.msk.f32.gmra.mxu2 %vm224_vm0, %v6500_v48 }
 0x460   :  { %3321 = vmatmul.msk.f32.gmra.mxu0 %vm224_vm0, %v6500_v48 }
 0x466   :  { %3314 = vmatmul.msk.f32.gmra.mxu2 %vm224_vm0, %v6509_v11 }
 0x468   :  { %3322 = vmatmul.msk.f32.gmra.mxu0 %vm224_vm0, %v6509_v11 }
 0x4ad   :  { %v2284_v21 = vpop.f32.mrf.mxu0 }
 0x4b1   :  { %v2235_v50 = vpop.f32.mrf.mxu2 }
 0x4b5   :  { %v2287_v2 = vpop.f32.mrf.mxu0 }
 0x4b6   :  { %v2309_v1 = vmul.f32 0.25, %v2287_v2 }
 0x4b9   :  { %v2238_v47 = vpop.f32.mrf.mxu2 }
 0x4bd   :  { %v2290_v45 = vpop.f32.mrf.mxu0 }
 0x4be   :  { %v2310_v4 = vmul.f32 0.25, %v2290_v45 }
 0x4c1   :  { %v2241_v24 = vpop.f32.mrf.mxu2 }
 0x4c5   :  { %v2293_v54 = vpop.f32.mrf.mxu0 }
 0x4c6   :  { %v2311_v29 = vmul.f32 0.25, %v2293_v54 }
 0x4c9   :  { %v2244_v42 = vpop.f32.mrf.mxu2 }
 0x4cd   :  { %v2296_v38 = vpop.f32.mrf.mxu0 }
 0x4ce   :  { %v2312_v16 = vmul.f32 0.25, %v2296_v38 }
 0x4d0   :  { %v2344_v9 = vsub.f32 %v6403_v25, %v2312_v16  ;;  %v2342_v16 = vsub.f32 %v6410_v40, %v2310_v4 }
 0x4d1   :  { %v2247_v26 = vpop.f32.mrf.mxu2 }
 0x4d2   :  { %v2263_v49 = vmul.f32 0.25, %v2247_v26  ;;  %v2261_v26 = vmul.f32 0.25, %v2241_v24  ;;  %v2352_v25 = vmul.f32 1.442695, %v2342_v16 }
 0x4d5   :  { %v2299_v53 = vpop.f32.mrf.mxu0 }
 0x4d6   :  { %v2313_v6 = vmul.f32 0.25, %v2299_v53 }
 0x4d8   :  { %v2345_v36 = vsub.f32 %v6400_v27, %v2313_v6 }
 0x4d9   :  { %v2250_v19 = vpop.f32.mrf.mxu2 }
 0x4da   :  { %v2264_v12 = vmul.f32 0.25, %v2250_v19  ;;  %v2308_v19 = vmul.f32 0.25, %v2284_v21 }
 0x4dc   :  { %v2321_v6 = vsub.f32 %v6421_v10, %v2264_v12  ;;  %v2340_v27 = vsub.f32 %v6444_v58, %v2308_v19 }
 0x4dd   :  { %v2302_v15 = vpop.f32.mrf.mxu0 }
 0x4de   :  { %v2314_v33 = vmul.f32 0.25, %v2302_v15 }
 0x4e0   :  { %v2346_v44 = vsub.f32 %v6398_v51, %v2314_v33  ;;  %v2262_v33 = vmul.f32 0.25, %v2244_v42  ;;  %v2334_v51 = vmul.f32 1.442695, %v2321_v6 }
 0x4e1   :  { %v2253_v31 = vpop.f32.mrf.mxu2 }
 0x4e2   :  { %v2265_v60 = vmul.f32 0.25, %v2253_v31  ;;  %v2360_v52 = vmul.f32 1.442695, %v2346_v44  ;;  %v2343_v31 = vsub.f32 %v6406_v43, %v2311_v29  ;;  %v2320_v44 = vsub.f32 %v6424_v17, %v2263_v49 }
 0x4e3   :  { %v2319_v12 = vsub.f32 %v6427_v37, %v2262_v33 }
 0x4e4   :  { %v2322_v15 = vsub.f32 %v6418_v5, %v2265_v60  ;;  %v2354_v29 = vmul.f32 1.442695, %v2343_v31  ;;  %v2332_v49 = vmul.f32 1.442695, %v2320_v44  ;;  %v2348_v5 = vmul.f32 1.442695, %v2340_v27 }
 0x4e5   :  { %v2305_v34 = vpop.f32.mrf.mxu0 }
 0x4e6   :  { %v2315_v32 = vmul.f32 0.25, %v2305_v34  ;;  %v2358_v34 = vmul.f32 1.442695, %v2345_v36  ;;  %v2336_v60 = vmul.f32 1.442695, %v2322_v15  ;;  %v2260_v36 = vmul.f32 0.25, %v2238_v47 }
 0x4e8   :  { %v2347_v62 = vsub.f32 %v6395_v39, %v2315_v32  ;;  %v2356_v39 = vmul.f32 1.442695, %v2344_v9  ;;  %v2259_v9 = vmul.f32 0.25, %v2235_v50  ;;  %v2317_v40 = vsub.f32 %v6433_v14, %v2260_v36 }
 0x4e9   :  { %v2256_v56 = vpop.f32.mrf.mxu2 }
 0x4ea   :  { %v2362_v53 = vmul.f32 1.442695, %v2347_v62  ;;  %v2266_v38 = vmul.f32 0.25, %v2256_v56  ;;  %v2341_v62 = vsub.f32 %v6412_v3, %v2309_v1  ;;  %v2330_v3 = vmul.f32 1.442695, %v2319_v12 }
 0x4eb   :  { %v2316_v17 = vsub.f32 %v6436_v57, %v2259_v9  ;;  %v2326_v58 = vmul.f32 1.442695, %v2317_v40 }
 0x4ec   :  { %3443 = vpow2.f32 %v2362_v53  ;;  %v2323_v32 = vsub.f32 %v6416_v61, %v2266_v38  ;;  %v2350_v43 = vmul.f32 1.442695, %v2341_v62 }
 0x4ed   :  { %3445 = vpow2.f32 %v2360_v52  ;;  %v2318_v52 = vsub.f32 %v6430_v28, %v2261_v26  ;;  %v2324_v50 = vmul.f32 1.442695, %v2316_v17 }
 0x4ee   :  { %v2338_v56 = vmul.f32 1.442695, %v2323_v32  ;;  %3447 = vpow2.f32 %v2358_v34 }
 0x4ef   :  { %v2328_v37 = vmul.f32 1.442695, %v2318_v52 }
 0x4f0   :  { %3449 = vpow2.f32 %v2338_v56 }
 0x4f1   :  { %3451 = vpow2.f32 %v2356_v39 }
 0x4f2   :  { %v6528_v4 = vpop.eup %3443  ;;  %3453 = vpow2.f32 %v2336_v60 }
 0x4f3   :  { %3455 = vpow2.f32 %v2354_v29  ;;  %2533 = vmatpush.msrb.mxu3 %v6528_v4  ;;  %v6532_v1 = vpop.eup %3445 }
 0x4f4   :  { %3457 = vpow2.f32 %v2334_v51  ;;  %v6535_v61 = vpop.eup %3447 }
 0x4f5   :  { %3459 = vpow2.f32 %v2352_v25  ;;  %2534 = vmatpush.msrb.mxu3 %v6532_v1 }
 0x4f6   :  { %v6538_v10 = vpop.eup %3449  ;;  %3461 = vpow2.f32 %v2332_v49 }
 0x4f7   :  { %v6541_v28 = vpop.eup %3451  ;;  %3463 = vpow2.f32 %v2350_v43  ;;  %2372 = vmatpush.msrb.mxu1 %v6538_v10  ;;  %2535 = vmatpush.msrb.mxu3 %v6535_v61 }
 0x4f8   :  { %v6545_v14 = vpop.eup %3453  ;;  %3465 = vpow2.f32 %v2330_v3 }
 0x4f9   :  { %v6547_v21 = vpop.eup %3455  ;;  %3467 = vpow2.f32 %v2348_v5  ;;  %2373 = vmatpush.msrb.mxu1 %v6545_v14  ;;  %2536 = vmatpush.msrb.mxu3 %v6541_v28 }
 0x4fa   :  { %v6551_v57 = vpop.eup %3457  ;;  %3469 = vpow2.f32 %v2328_v37 }
 0x4fb   :  { %v6553_v2 = vpop.eup %3459  ;;  %2374 = vmatpush.msrb.mxu1 %v6551_v57  ;;  %2537 = vmatpush.msrb.mxu3 %v6547_v21  ;;  %3471 = vpow2.f32 %v2326_v58 }
 0x4fc   :  { %v6557_v47 = vpop.eup %3461  ;;  %3473 = vpow2.f32 %v2324_v50 }
 0x4fd   :  { %v6559_v45 = vpop.eup %3463  ;;  %2375 = vmatpush.msrb.mxu1 %v6557_v47  ;;  %2538 = vmatpush.msrb.mxu3 %v6553_v2 }
 0x4fe   :  { %v6563_v24 = vpop.eup %3465 }
 0x4ff   :  { %v6565_v54 = vpop.eup %3467  ;;  %2376 = vmatpush.msrb.mxu1 %v6563_v24  ;;  %2539 = vmatpush.msrb.mxu3 %v6559_v45 }
 0x500   :  { %v6569_v42 = vpop.eup %3469 }
 0x501   :  { %2377 = vmatpush.msrb.mxu1 %v6569_v42  ;;  %2540 = vmatpush.msrb.mxu3 %v6565_v54  ;;  %v6573_v15 = vpop.eup %3471 }
 0x502   :  { %3331 = vmatmul.msk.f32.vlgmr.msrb.gmra.mxu3 %vm224_vm0, %v6442_v13  ;;  %v6578_v53 = vpop.eup %3473 }
 0x503   :  { %2378 = vmatpush.msrb.mxu1 %v6573_v15 }
 0x505   :  { %2379 = vmatpush.msrb.mxu1 %v6578_v53 }
 0x506   :  { %3323 = vmatmul.msk.f32.vlgmr.msrb.gmra.mxu1 %vm224_vm0, %v6442_v13 }
 0x50a   :  { %3332 = vmatmul.msk.f32.gmra.mxu3 %vm224_vm0, %v6455_v63 }
 0x50e   :  { %3324 = vmatmul.msk.f32.gmra.mxu1 %vm224_vm0, %v6455_v63 }
 0x512   :  { %3333 = vmatmul.msk.f32.gmra.mxu3 %vm224_vm0, %v6464_v0 }
 0x516   :  { %3325 = vmatmul.msk.f32.gmra.mxu1 %vm224_vm0, %v6464_v0 }
 0x51a   :  { %3334 = vmatmul.msk.f32.gmra.mxu3 %vm224_vm0, %v6473_v30 }
 0x51e   :  { %3326 = vmatmul.msk.f32.gmra.mxu1 %vm224_vm0, %v6473_v30 }
 0x522   :  { %3335 = vmatmul.msk.f32.gmra.mxu3 %vm224_vm0, %v6482_v8 }
 0x526   :  { %3327 = vmatmul.msk.f32.gmra.mxu1 %vm224_vm0, %v6482_v8 }
 0x52a   :  { %3336 = vmatmul.msk.f32.gmra.mxu3 %vm224_vm0, %v6491_v55 }
 0x52e   :  { %3328 = vmatmul.msk.f32.gmra.mxu1 %vm224_vm0, %v6491_v55 }
 0x532   :  { %3337 = vmatmul.msk.f32.gmra.mxu3 %vm224_vm0, %v6500_v48 }
 0x536   :  { %3329 = vmatmul.msk.f32.gmra.mxu1 %vm224_vm0, %v6500_v48 }
 0x53a   :  { %3338 = vmatmul.msk.f32.gmra.mxu3 %vm224_vm0, %v6509_v11 }
 0x53e   :  { %3330 = vmatmul.msk.f32.gmra.mxu1 %vm224_vm0, %v6509_v11 }
 0x583   :  { %v6611_v13 = vpop.f32.mrf.mxu1 }
 0x585   :  { %v6613_v63 = vpop.f32.mrf.mxu3 }
 0x586   :  { %v2577_v12 = vand.u32 2147483648, %v6613_v63 }
 0x588   :  { %v6666_v37 = vor.u32 1.1754944e-38, %v2577_v12 }
 0x58b   :  { %v6615_v0 = vpop.f32.mrf.mxu1 }
 0x58c   :  { %vm2425_vm3 = vweird.f32 %v6615_v0 }
 0x58d   :  { %v6617_v30 = vpop.f32.mrf.mxu3 }
 0x593   :  { %v6619_v8 = vpop.f32.mrf.mxu1 }
 0x595   :  { %v6621_v55 = vpop.f32.mrf.mxu3 }
 0x59b   :  { %v6623_v38 = vpop.f32.mrf.mxu1 }
 0x59d   :  { %v2551_v48 = vpop.f32.mrf.mxu3 }
 0x59e   :  { %3475 = vrcp.f32 %v2551_v48  ;;  %v2622_v26 = vand.u32 2147483648, %v2551_v48  ;;  %vm2616_vm2 = vweird.f32 %v2551_v48  ;;  %v2620_v60 = vand.u32 2147483647, %v2551_v48 }
 0x59f   :  { %3477 = vrcp.f32 %v6613_v63 }
 0x5a0   :  { %v2623_v49 = vor.u32 1.1754944e-38, %v2622_v26  ;;  %vm2621_vm5 = vcmp.eq.f32.partialorder %v2620_v60, 8.507059e+37 }
 0x5a3   :  { %v6626_v31 = vpop.f32.mrf.mxu1 }
 0x5a4   :  { %v3476_v11 = vpop.eup %3475  ;;  %3479 = vrcp.f32 %v6626_v31  ;;  %vm2470_vm6 = vweird.f32 %v6626_v31  ;;  %v2476_v50 = vand.u32 2147483648, %v6626_v31 }
 0x5a5   :  { %3481 = vrcp.f32 %v6615_v0  ;;  %v2612_v34 = vmul.f32 %v3476_v11, %v2551_v48  ;;  %v6630_v33 = vpop.f32.mrf.mxu3  ;;  %v6633_v32 = vpop.eup %3477  ;;  %vm2617_vm14 = vweird.f32 %v3476_v11 }
 0x5a6   :  { %3483 = vrcp.f32 %v6630_v33  ;;  %vm6646_vm4 = vmor %vm2616_vm2, %vm2617_vm14  ;;  %v2567_v52 = vmul.f32 %v6633_v32, %v6613_v63  ;;  %vm2631_vm7 = vweird.f32 %v6630_v33 }
 0x5a7   :  { %v2613_v6 = vsub.f32 1.0, %v2612_v34  ;;  %3485 = vrcp.f32 %v6611_v13  ;;  %v2431_v34 = vand.u32 2147483648, %v6615_v0 }
 0x5a8   :  { %v2568_v26 = vsub.f32 1.0, %v2567_v52 }
 0x5a9   :  { %v2614_v19 = vmul.f32 %v3476_v11, %v2613_v6  ;;  %v2474_v6 = vand.u32 2147483647, %v6626_v31 }
 0x5aa   :  { %v6635_v16 = vpop.eup %3479 }
 0x5ab   :  { %v6637_v39 = vpop.eup %3481  ;;  %v2615_v44 = vadd.f32 %v3476_v11, %v2614_v19  ;;  %v2466_v56 = vmul.f32 %v6635_v16, %v6626_v31  ;;  %v6641_v62 = vpop.f32.mrf.mxu1  ;;  %vm2471_vm8 = vweird.f32 %v6635_v16  ;;  %vm2475_vm15 = vcmp.eq.f32.partialorder %v2474_v6, 8.507059e+37 }
 0x5ac   :  { %v6643_v29 = vpop.eup %3483  ;;  %v2421_v43 = vmul.f32 %v6637_v39, %v6615_v0  ;;  %vm6680_vm1 = vmor %vm2470_vm6, %vm2471_vm8  ;;  %vm2426_vm11 = vweird.f32 %v6637_v39 }
 0x5ad   :  { %v2467_v51 = vsub.f32 1.0, %v2466_v56  ;;  %v2627_v27 = vmul.f32 %v6643_v29, %v6630_v33  ;;  %v6653_v25 = vpop.f32.mrf.mxu3  ;;  %v2619_v9 = vsel %vm6646_vm4, %v3476_v11, %v2615_v44  ;;  %v6671_v11 = vpop.eup %3485  ;;  %v2637_v56 = vand.u32 2147483648, %v6630_v33  ;;  %vm6775_vm6 = vmor %vm2425_vm3, %vm2426_vm11 }
 0x5ae   :  { %3487 = vrcp.f32 %v6653_v25  ;;  %v2624_v17 = vsel %vm2621_vm5, %v2623_v49, %v2619_v9  ;;  %v2422_v44 = vsub.f32 1.0, %v2421_v43  ;;  %vm2632_vm10 = vweird.f32 %v6643_v29 }
 0x5af   :  { %v2468_v40 = vmul.f32 %v6635_v16, %v2467_v51  ;;  %v2628_v3 = vsub.f32 1.0, %v2627_v27  ;;  %3489 = vrcp.f32 %v6619_v8  ;;  %v2625_v19 = vmul.f32 %v6547_v21, %v2624_v17  ;;  %vm6712_vm9 = vmor %vm2631_vm7, %vm2632_vm10 }
 0x5b0   :  { %3491 = vrcp.f32 %v6623_v38  ;;  %v2477_v27 = vor.u32 1.1754944e-38, %v2476_v50  ;;  %v2635_v9 = vand.u32 2147483647, %v6630_v33  ;;  %v6702_v43 = vor.u32 1.1754944e-38, %v2431_v34 }
 0x5b1   :  { %v2469_v58 = vadd.f32 %v6635_v16, %v2468_v40  ;;  %v2629_v48 = vmul.f32 %v6643_v29, %v2628_v3  ;;  %2759 = vperm.xlu1 %3393, %v2625_v19   ;;  %v6707_v40 = vmul.f32 %v6633_v32, %v2568_v26  ;;  %v2423_v50 = vmul.f32 %v6637_v39, %v2422_v44 }
 0x5b2   :  { %v2638_v33 = vor.u32 1.1754944e-38, %v2637_v56  ;;  %vm2636_vm12 = vcmp.eq.f32.partialorder %v2635_v9, 8.507059e+37  ;;  %v2650_v19 = vand.u32 2147483647, %v6653_v25  ;;  %v2652_v44 = vand.u32 2147483648, %v6653_v25 }
 0x5b3   :  { %v6685_v36 = vpop.f32.mrf.mxu1  ;;  %v2630_v21 = vadd.f32 %v6643_v29, %v2629_v48  ;;  %v2473_v31 = vsel %vm6680_vm1, %v6635_v16, %v2469_v58  ;;  %vm2646_vm14 = vweird.f32 %v6653_v25  ;;  %vm2455_vm1 = vweird.f32 %v6623_v38 }
 0x5b4   :  { %v6687_v12 = vpop.eup %3487  ;;  %3493 = vrcp.f32 %v6685_v36  ;;  %v2478_v17 = vsel %vm2475_vm15, %v2477_v27, %v2473_v31  ;;  %vm6757_vm4 = vcmp.eq.f32.partialorder %v2650_v19, 8.507059e+37  ;;  %vm2500_vm5 = vweird.f32 %v6685_v36 }
 0x5b5   :  { %v2642_v52 = vmul.f32 %v6687_v12, %v6653_v25  ;;  %v6700_v49 = vpop.f32.mrf.mxu3  ;;  %v6716_v58 = vpop.eup %3489  ;;  %v2634_v48 = vsel %vm6712_vm9, %v6643_v29, %v2630_v21  ;;  %vm2647_vm13 = vweird.f32 %v6687_v12  ;;  %v2479_v60 = vmul.f32 %v6557_v47, %v2478_v17 }
 0x5b6   :  { %3495 = vrcp.f32 %v6700_v49  ;;  %v6723_v34 = vpop.eup %3491  ;;  %v2639_v56 = vsel %vm2636_vm12, %v2638_v33, %v2634_v48  ;;  %v6744_v16 = vmul.f32 %v6716_v58, %v6619_v8  ;;  %vm6750_vm2 = vmor %vm2646_vm14, %vm2647_vm13  ;;  %vm2572_vm3 = vweird.f32 %v6633_v32 }
 0x5b7   :  { %3497 = vrcp.f32 %v6617_v30  ;;  %v2643_v3 = vsub.f32 1.0, %v2642_v52  ;;  %v2640_v21 = vmul.f32 %v6541_v28, %v2639_v56  ;;  %v6740_v52 = vadd.f32 %v6637_v39, %v2423_v50 }
 0x5b8   :  { %3499 = vrcp.f32 %v6621_v55  ;;  %v2451_v47 = vmul.f32 %v6723_v34, %v6623_v38  ;;  %vm2571_vm9 = vweird.f32 %v6613_v63  ;;  %vm2661_vm11 = vweird.f32 %v6700_v49 }
 0x5b9   :  { %v2644_v6 = vmul.f32 %v6687_v12, %v2643_v3  ;;  %2708 = vperm.xlu1 %3393, %v2479_v60   ;;  %2764 = vperm.xlu2 %3394, %v2640_v21   ;;  %v2506_v60 = vand.u32 2147483648, %v6685_v36  ;;  %v2428_v25 = vsel %vm6775_vm6, %v6637_v39, %v6740_v52  ;;  %v2665_v39 = vand.u32 2147483647, %v6700_v49 }
 0x5ba   :  { %v3494_v26 = vpop.eup %3493 }
 0x5bb   :  { %v2645_v31 = vadd.f32 %v6687_v12, %v2644_v6  ;;  %v2496_v29 = vmul.f32 %v3494_v26, %v6685_v36  ;;  %v6735_v27 = vpop.f32.mrf.mxu1  ;;  %v2653_v6 = vor.u32 1.1754944e-38, %v2652_v44  ;;  %vm2501_vm8 = vweird.f32 %v3494_v26 }
 0x5bc   :  { %v6737_v9 = vpop.eup %3495  ;;  %3501 = vrcp.f32 %v6735_v27  ;;  %vm6797_vm10 = vmor %vm2500_vm5, %vm2501_vm8  ;;  %v2507_v3 = vor.u32 1.1754944e-38, %v2506_v60  ;;  %vm2666_vm13 = vcmp.eq.f32.partialorder %v2665_v39, 8.507059e+37  ;;  %vm2456_vm5 = vweird.f32 %v6723_v34 }
 0x5bd   :  { %v6755_v28 = vpop.eup %3497  ;;  %v2497_v17 = vsub.f32 1.0, %v2496_v29  ;;  %v2657_v50 = vmul.f32 %v6737_v9, %v6700_v49  ;;  %v6763_v33 = vpop.f32.mrf.mxu3  ;;  %v2649_v48 = vsel %vm6750_vm2, %v6687_v12, %v2645_v31  ;;  %v2504_v29 = vand.u32 2147483647, %v6685_v36 }
 0x5be   :  { %3503 = vrcp.f32 %v6763_v33  ;;  %v6780_v44 = vpop.eup %3499  ;;  %v2452_v31 = vsub.f32 1.0, %v2451_v47  ;;  %v2654_v21 = vsel %vm6757_vm4, %v2653_v6, %v2649_v48  ;;  %vm2662_vm15 = vweird.f32 %v6737_v9 }
 0x5bf   :  { %v2498_v56 = vmul.f32 %v3494_v26, %v2497_v17  ;;  %v2658_v12 = vsub.f32 1.0, %v2657_v50  ;;  %3505 = vrcp.f32 %v6641_v62  ;;  %v2667_v50 = vand.u32 2147483648, %v6700_v49  ;;  %vm2663_vm12 = vmor %vm2661_vm11, %vm2662_vm15 }
 0x5c0   :  { %v2655_v52 = vmul.f32 %v6535_v61, %v2654_v21  ;;  %v2461_v48 = vand.u32 2147483648, %v6623_v38  ;;  %vm2505_vm7 = vcmp.eq.f32.partialorder %v2504_v29, 8.507059e+37  ;;  %vm2676_vm14 = vweird.f32 %v6763_v33 }
 0x5c1   :  { %v2499_v17 = vadd.f32 %v3494_v26, %v2498_v56  ;;  %v2659_v51 = vmul.f32 %v6737_v9, %v2658_v12  ;;  %v2453_v56 = vmul.f32 %v6723_v34, %v2452_v31  ;;  %v2437_v12 = vsub.f32 1.0, %v6744_v16 }
 0x5c2   :  { %v6792_v5 = vpop.eup %3501  ;;  %2769 = vperm.xlu0 %3392, %v2655_v52   ;;  %v2682_v49 = vand.u32 2147483648, %v6763_v33  ;;  %v2680_v16 = vand.u32 2147483647, %v6763_v33  ;;  %vm2441_vm15 = vweird.f32 %v6716_v58 }
 0x5c3   :  { %v2660_v6 = vadd.f32 %v6737_v9, %v2659_v51  ;;  %v2503_v19 = vsel %vm6797_vm10, %v3494_v26, %v2499_v17  ;;  %v2511_v60 = vmul.f32 %v6792_v5, %v6735_v27  ;;  %v2668_v51 = vor.u32 1.1754944e-38, %v2667_v50 }
 0x5c4   :  { %v3504_v36 = vpop.eup %3503  ;;  %v2508_v61 = vsel %vm2505_vm7, %v2507_v3, %v2503_v19  ;;  %v7628_v50 = vand.u32 2147483647, %v6613_v63  ;;  %vm2440_vm10 = vweird.f32 %v6619_v8  ;;  %vm6853_vm7 = vmor %vm2455_vm1, %vm2456_vm5  ;;  %vm2681_vm11 = vcmp.eq.f32.partialorder %v2680_v16, 8.507059e+37 }
 0x5c5   :  { %v2672_v26 = vmul.f32 %v3504_v36, %v6763_v33  ;;  %v2509_v29 = vmul.f32 %v6545_v14, %v2508_v61  ;;  %v6818_v21 = vpop.eup %3505  ;;  %v2664_v31 = vsel %vm2663_vm12, %v6737_v9, %v2660_v6  ;;  %vm2677_vm2 = vweird.f32 %v3504_v36  ;;  %vm6867_vm1 = vmor %vm2571_vm9, %vm2572_vm3 }
 0x5c6   :  { %v2669_v47 = vsel %vm2666_vm13, %v2668_v51, %v2664_v31  ;;  %vm6826_vm4 = vcmp.eq.f32.partialorder %v7628_v50, 8.507059e+37  ;;  %v2454_v14 = vadd.f32 %v6723_v34, %v2453_v56  ;;  %v2512_v39 = vsub.f32 1.0, %v2511_v60  ;;  %vm6844_vm8 = vmor %vm2676_vm14, %vm2677_vm2 }
 0x5c7   :  { %v2673_v17 = vsub.f32 1.0, %v2672_v26  ;;  %2718 = vperm.xlu1 %3393, %v2509_v29   ;;  %v2670_v52 = vmul.f32 %v6532_v1, %v2669_v47  ;;  %v7631_v9 = vand.u32 2147483647, %v6615_v0  ;;  %v2438_v6 = vmul.f32 %v6716_v58, %v2437_v12  ;;  %vm6887_vm3 = vmor %vm2440_vm10, %vm2441_vm15 }
 0x5c8   :  { %v2481_v19 = vmul.f32 %v6818_v21, %v6641_v62  ;;  %v2570_v51 = vadd.f32 %v6633_v32, %v6707_v40  ;;  %v2459_v26 = vand.u32 2147483647, %v6623_v38  ;;  %v2683_v1 = vor.u32 1.1754944e-38, %v2682_v49 }
 0x5c9   :  { %vm2430_vm6 = vcmp.eq.f32.partialorder %v7631_v9, 8.507059e+37  ;;  %v2674_v61 = vmul.f32 %v3504_v36, %v2673_v17  ;;  %v2597_v33 = vmul.f32 %v6780_v44, %v6621_v55  ;;  %v2462_v12 = vor.u32 1.1754944e-38, %v2461_v48 }
 0x5ca   :  { %v2433_v0 = vsel %vm2430_vm6, %v6702_v43, %v2428_v25  ;;  %v2513_v29 = vmul.f32 %v6792_v5, %v2512_v39  ;;  %2774 = vperm.xlu0 %3392, %v2670_v52   ;;  %v2458_v43 = vsel %vm6853_vm7, %v6723_v34, %v2454_v14  ;;  %v2439_v25 = vadd.f32 %v6716_v58, %v2438_v6 }
 0x5cb   :  { %v2675_v60 = vadd.f32 %v3504_v36, %v2674_v61  ;;  %v2482_v49 = vsub.f32 1.0, %v2481_v19  ;;  %v2434_v31 = vmul.f32 %v6573_v15, %v2433_v0  ;;  %v2446_v17 = vand.u32 2147483648, %v6619_v8 }
 0x5cc   :  { %vm2460_vm12 = vcmp.eq.f32.partialorder %v2459_v26, 8.507059e+37  ;;  %v2574_v63 = vsel %vm6867_vm1, %v6633_v32, %v2570_v51  ;;  %v2582_v16 = vmul.f32 %v6755_v28, %v6617_v30  ;;  %v2444_v47 = vand.u32 2147483647, %v6619_v8 }
 0x5cd   :  { %v2679_v48 = vsel %vm6844_vm8, %v3504_v36, %v2675_v60  ;;  %v2463_v50 = vsel %vm2460_vm12, %v2462_v12, %v2458_v43  ;;  %v2598_v36 = vsub.f32 1.0, %v2597_v33  ;;  %v2514_v32 = vadd.f32 %v6792_v5, %v2513_v29 }
 0x5ce   :  { %v2684_v34 = vsel %vm2681_vm11, %v2683_v1, %v2679_v48  ;;  %vm2515_vm9 = vweird.f32 %v6735_v27  ;;  %vm2516_vm13 = vweird.f32 %v6792_v5  ;;  %v2483_v39 = vmul.f32 %v6818_v21, %v2482_v49 }
 0x5cf   :  { %2693 = vperm.xlu1 %3393, %v2434_v31   ;;  %v2685_v14 = vmul.f32 %v6528_v4, %v2684_v34  ;;  %v2521_v52 = vand.u32 2147483648, %v6735_v27  ;;  %v2579_v4 = vsel %vm6826_vm4, %v6666_v37, %v2574_v63  ;;  %v2443_v8 = vsel %vm6887_vm3, %v6716_v58, %v2439_v25  ;;  %vm2517_vm2 = vmor %vm2515_vm9, %vm2516_vm13 }
 0x5d0   :  { %v2447_v9 = vor.u32 1.1754944e-38, %v2446_v17  ;;  %v2519_v6 = vand.u32 2147483647, %v6735_v27  ;;  %v2464_v19 = vmul.f32 %v6563_v24, %v2463_v50  ;;  %v2406_v61 = vmul.f32 %v6671_v11, %v6611_v13 }
 0x5d1   :  { %2779 = vperm.xlu2 %3394, %v2685_v14   ;;  %v2583_v51 = vsub.f32 1.0, %v2582_v16  ;;  %vm2445_vm14 = vcmp.eq.f32.partialorder %v2444_v47, 8.507059e+37  ;;  %v2599_v26 = vmul.f32 %v6780_v44, %v2598_v36  ;;  %v2518_v3 = vsel %vm2517_vm2, %v6792_v5, %v2514_v32 }
 0x5d2   :  { %2703 = vperm.xlu0 %3392, %v2464_v19   ;;  %v2580_v37 = vmul.f32 %v6565_v54, %v2579_v4  ;;  %v2448_v56 = vsel %vm2445_vm14, %v2447_v9, %v2443_v8  ;;  %v2484_v58 = vadd.f32 %v6818_v21, %v2483_v39  ;;  %vm2485_vm4 = vweird.f32 %v6641_v62 }
 0x5d3   :  { %vm2486_vm5 = vweird.f32 %v6818_v21  ;;  %v2522_v24 = vor.u32 1.1754944e-38, %v2521_v52  ;;  %v2491_v27 = vand.u32 2147483648, %v6641_v62  ;;  %vm2520_vm6 = vcmp.eq.f32.partialorder %v2519_v6, 8.507059e+37 }
 0x5d4   :  { %v2489_v1 = vand.u32 2147483647, %v6641_v62  ;;  %v2449_v5 = vmul.f32 %v6569_v42, %v2448_v56  ;;  %v2407_v40 = vsub.f32 1.0, %v2406_v61  ;;  %v2600_v54 = vadd.f32 %v6780_v44, %v2599_v26  ;;  %vm2487_vm10 = vmor %vm2485_vm4, %vm2486_vm5 }
 0x5d5   :  { %v2523_v0 = vsel %vm2520_vm6, %v2522_v24, %v2518_v3  ;;  %vm2602_vm8 = vweird.f32 %v6780_v44  ;;  %v2584_v60 = vmul.f32 %v6755_v28, %v2583_v51  ;;  %v2607_v33 = vand.u32 2147483648, %v6621_v55 }
 0x5d6   :  { %v2488_v12 = vsel %vm2487_vm10, %v6818_v21, %v2484_v58  ;;  %vm2601_vm15 = vweird.f32 %v6621_v55  ;;  %v2605_v62 = vand.u32 2147483647, %v6621_v55  ;;  %v2492_v29 = vor.u32 1.1754944e-38, %v2491_v27  ;;  %v7640_v58 = vld [vmem:[#allocation57_spill] sm:$0xff] }
 0x5d7   :  { %2744 = vperm.xlu1 %3393, %v2580_v37   ;;  %v2524_v42 = vmul.f32 %v6538_v10, %v2523_v0  ;;  %vm2603_vm7 = vmor %vm2601_vm15, %vm2602_vm8  ;;  %vm2490_vm11 = vcmp.eq.f32.partialorder %v2489_v1, 8.507059e+37  ;;  %v2408_v43 = vmul.f32 %v6671_v11, %v2407_v40  ;;  %v2585_v49 = vadd.f32 %v6755_v28, %v2584_v60  ;;  %v7641_v1 = vld [vmem:[#allocation37_spill] sm:$0xff] }
 0x5d8   :  { %v2604_v38 = vsel %vm2603_vm7, %v6780_v44, %v2600_v54  ;;  %v2493_v25 = vsel %vm2490_vm11, %v2492_v29, %v2488_v12  ;;  %vm2587_vm1 = vweird.f32 %v6755_v28  ;;  %v2608_v21 = vor.u32 1.1754944e-38, %v2607_v33  ;;  %v7647_v29 = vld [vmem:[#allocation32_spill] sm:$0xff] }
 0x5d9   :  { %2698 = vperm.xlu2 %3394, %v2449_v5   ;;  %v2592_v48 = vand.u32 2147483648, %v6617_v30  ;;  %vm2606_vm12 = vcmp.eq.f32.partialorder %v2605_v62, 8.507059e+37  ;;  %vm2586_vm3 = vweird.f32 %v6617_v30  ;;  %v2590_v10 = vand.u32 2147483647, %v6617_v30 }
 0x5da   :  { %2723 = vperm.xlu0 %3392, %v2524_v42   ;;  %v2609_v55 = vsel %vm2606_vm12, %v2608_v21, %v2604_v38  ;;  %v2494_v31 = vmul.f32 %v6551_v57, %v2493_v25  ;;  %v2409_v17 = vadd.f32 %v6671_v11, %v2408_v43  ;;  %vm2410_vm9 = vweird.f32 %v6611_v13  ;;  %vm2588_vm14 = vmor %vm2586_vm3, %vm2587_vm1  ;;  %v7648_v43 = vld [vmem:[#allocation46_spill] sm:$0xff] }
 0x5db   :  { %vm2411_vm13 = vweird.f32 %v6671_v11  ;;  %v2416_v44 = vand.u32 2147483648, %v6611_v13  ;;  %v2589_v34 = vsel %vm2588_vm14, %v6755_v28, %v2585_v49  ;;  %v2414_v63 = vand.u32 2147483647, %v6611_v13  ;;  %v7649_v49 = vld [vmem:[#allocation42_spill] sm:$0xff] }
 0x5dc   :  { %v2593_v16 = vor.u32 1.1754944e-38, %v2592_v48  ;;  %v2610_v30 = vmul.f32 %v6553_v2, %v2609_v55  ;;  %vm2412_vm2 = vmor %vm2410_vm9, %vm2411_vm13  ;;  %vm2591_vm4 = vcmp.eq.f32.partialorder %v2590_v10, 8.507059e+37  ;;  %v7650_v48 = vld [vmem:[#allocation34_spill] sm:$0xff] }
 0x5dd   :  { %v2413_v57 = vsel %vm2412_vm2, %v6671_v11, %v2409_v17  ;;  %v2417_v50 = vor.u32 1.1754944e-38, %v2416_v44  ;;  %vm2415_vm5 = vcmp.eq.f32.partialorder %v2414_v63, 8.507059e+37  ;;  %v7651_v44 = vld [vmem:[#allocation39_spill] sm:$0xff]  ;;  %v7652_v63 = vld [vmem:[#allocation58_spill] sm:$0xff] }
 0x5de   :  { %v2594_v47 = vsel %vm2591_vm4, %v2593_v16, %v2589_v34 }
 0x5df   :  { %v2418_v14 = vsel %vm2415_vm5, %v2417_v50, %v2413_v57  ;;  %v2595_v15 = vmul.f32 %v6559_v45, %v2594_v47  ;;  %v7654_v47 = vld [vmem:[#allocation25_spill] sm:$0xff] }
 0x5e0   :  { %v2419_v36 = vmul.f32 %v6578_v53, %v2418_v14  ;;  %v7655_v14 = vld [vmem:[#allocation63_spill] sm:$0xff] }
 0x5e1   :  { %2713 = vperm.xlu2 %3394, %v2494_v31  }
 0x5e2   :  { %2754 = vperm.xlu0 %3392, %v2610_v30   ;;  %v7653_v30 = vld [vmem:[#allocation51_spill] sm:$0xff] }
 0x5e9   :  { %2749 = vperm.xlu2 %3394, %v2595_v15  }
 0x5ea   :  { %2688 = vperm.xlu0 %3392, %v2419_v36  }
 0x613   :  { %v2765_v28 = vpop.permute.xlu2 %2764 }
 0x623   :  { %v2760_v13 = vpop.permute.xlu1 %2759 }
 0x624   :  { %v2788_v21 = vmul.f32 %v2760_v13, %v7649_v49  ;;  %v2789_v10 = vmul.f32 %v2760_v13, %v7650_v48  ;;  %v7657_v13 = vld [vmem:[#allocation48_spill] sm:$0xff] }
 0x62b   :  { %v2780_v39 = vpop.permute.xlu2 %2779  ;;  %v2709_v52 = vpop.permute.xlu1 %2708 }
 0x62c   :  { %v2796_v6 = vmul.f32 %v2780_v39, %v6365_v22  ;;  %v2797_v19 = vmul.f32 %v2780_v39, %v6367_v41  ;;  %v2734_v0 = vmul.f32 %v2709_v52, %v7641_v1  ;;  %v3598_v1 = vld [vmem:[%s7268_s10 + $0x10] sm:$0xff] }
 0x633   :  { %v2699_v4 = vpop.permute.xlu2 %2698 }
 0x634   :  { %v2770_v32 = vpop.permute.xlu0 %2769  ;;  %v2730_v57 = vmul.f32 %v2699_v4, %v7653_v30  ;;  %v2731_v50 = vmul.f32 %v2699_v4, %v7654_v47  ;;  %v7659_v4 = vld [vmem:[#allocation61_spill] sm:$0xff] }
 0x639   :  { %v2719_v9 = vpop.permute.xlu1 %2718 }
 0x63a   :  { %v2738_v3 = vmul.f32 %v2719_v9, %v6291_v18  ;;  %v2739_v56 = vmul.f32 %v2719_v9, %v6284_v20  ;;  %v7646_v20 = vld [vmem:[#allocation60_spill] sm:$0xff] }
 0x63b   :  { %v2714_v11 = vpop.permute.xlu2 %2713  ;;  %v2791_v33 = vmul.f32 %v2765_v28, %v7646_v20 }
 0x63c   :  { %v2775_v2 = vpop.permute.xlu0 %2774  ;;  %v2736_v37 = vmul.f32 %v2714_v11, %v6263_v46  ;;  %v2737_v24 = vmul.f32 %v2714_v11, %v7640_v58  ;;  %v7645_v46 = vld [vmem:[#allocation59_spill] sm:$0xff] }
 0x63d   :  { %v2794_v45 = vmul.f32 %v2775_v2, %v6341_v59  ;;  %v2795_v53 = vmul.f32 %v2775_v2, %v6343_v7  ;;  %v7642_v59 = vld [vmem:[#allocation35_spill] sm:$0xff]  ;;  %v7643_v7 = vld [vmem:[#allocation62_spill] sm:$0xff]  ;;  %v2790_v18 = vmul.f32 %v2765_v28, %v7645_v46 }
 0x63e   :  { %v2735_v5 = vmul.f32 %v2709_v52, %v7642_v59  ;;  %v2792_v40 = vmul.f32 %v2770_v32, %v7643_v7  ;;  %v7658_v52 = vld [vmem:[#allocation66_spill] sm:$0xff]  ;;  %v3602_v7 = vld [vmem:[%s7268_s10 + $0x30] sm:$0xff] }
 0x63f   :  { %v2811_v60 = vadd.f32 %v2795_v53, %v2739_v56  ;;  %v2806_v55 = vadd.f32 %v2790_v18, %v2734_v0  ;;  %v7662_v56 = vld [vmem:[#allocation67_spill] sm:$0xff]  ;;  %v3599_v0 = vld [vmem:[%s7268_s10 + $0x18] sm:$0xff]  ;;  %v3600_v59 = vld [vmem:[%s7268_s10 + $0x20] sm:$0xff] }
 0x640   :  { %v2808_v12 = vadd.f32 %v2792_v40, %v2736_v37  ;;  %v2807_v17 = vadd.f32 %v2791_v33, %v2735_v5  ;;  %v3601_v5 = vld [vmem:[%s7268_s10 + $0x28] sm:$0xff]  ;;  %v3603_v40 = vld [vmem:[%s7268_s10 + $0x38] sm:$0xff] }
 0x641   :  { %v2694_v22 = vpop.permute.xlu1 %2693 }
 0x642   :  { %v2728_v2 = vmul.f32 %v2694_v22, %v7657_v13 }
 0x643   :  { %v2750_v25 = vpop.permute.xlu2 %2749 }
 0x644   :  { %v2704_v8 = vpop.permute.xlu0 %2703  ;;  %v2784_v15 = vmul.f32 %v2750_v25, %v7655_v14 }
 0x645   :  { %v2732_v42 = vmul.f32 %v2704_v8, %v7647_v29  ;;  %v2733_v38 = vmul.f32 %v2704_v8, %v7648_v43  ;;  %v2729_v8 = vmul.f32 %v2694_v22, %v7658_v52 }
 0x647   :  { %v2804_v36 = vadd.f32 %v2788_v21, %v2732_v42  ;;  %v2805_v28 = vadd.f32 %v2789_v10, %v2733_v38 }
 0x649   :  { %v2745_v9 = vpop.permute.xlu1 %2744 }
 0x64c   :  { %v2724_v61 = vpop.permute.xlu0 %2723 }
 0x64d   :  { %v2740_v51 = vmul.f32 %v2724_v61, %v6242_v23  ;;  %v2741_v26 = vmul.f32 %v2724_v61, %v6244_v35  ;;  %v7644_v23 = vld [vmem:[#allocation64_spill] sm:$0xff]  ;;  %v2810_v35 = vadd.f32 %v2794_v45, %v2738_v3  ;;  %v2782_v45 = vmul.f32 %v2745_v9, %v7659_v4  ;;  %v7661_v3 = vld [vmem:[#allocation65_spill] sm:$0xff] }
 0x64e   :  { %v2793_v54 = vmul.f32 %v2770_v32, %v7644_v23  ;;  %v7656_v32 = vld [vmem:[#allocation55_spill] sm:$0xff] }
 0x64f   :  { %v2812_v27 = vadd.f32 %v2796_v6, %v2740_v51  ;;  %v2813_v41 = vadd.f32 %v2797_v19, %v2741_v26  ;;  %v2785_v39 = vmul.f32 %v2750_v25, %v7656_v32  ;;  %v2800_v19 = vadd.f32 %v2784_v15, %v2728_v2  ;;  %v7660_v51 = vld [vmem:[#allocation54_spill] sm:$0xff] }
 0x650   :  { %v2809_v62 = vadd.f32 %v2793_v54, %v2737_v24  ;;  %v2783_v26 = vmul.f32 %v2745_v9, %v7660_v51 }
 0x651   :  { %2822 = vmatpush.msrb.mxu2 %v2812_v27  ;;  %2863 = vmatpush.msra.mxu0 %v2813_v41  ;;  %v2801_v61 = vadd.f32 %v2785_v39, %v2729_v8  ;;  %v3596_v27 = vld [vmem:[%s7268_s10] sm:$0xff]  ;;  %v3597_v41 = vld [vmem:[%s7268_s10 + $0x8] sm:$0xff] }
 0x653   :  { %2823 = vmatpush.msrb.mxu2 %v2810_v35  ;;  %2864 = vmatpush.msra.mxu0 %v2811_v60 }
 0x654   :  { %v2755_v31 = vpop.permute.xlu0 %2754 }
 0x655   :  { %v2786_v34 = vmul.f32 %v2755_v31, %v7651_v44  ;;  %v2787_v16 = vmul.f32 %v2755_v31, %v7652_v63  ;;  %2824 = vmatpush.msrb.mxu2 %v2808_v12  ;;  %2865 = vmatpush.msra.mxu0 %v2809_v62 }
 0x657   :  { %2825 = vmatpush.msrb.mxu2 %v2806_v55  ;;  %2866 = vmatpush.msra.mxu0 %v2807_v17  ;;  %v2802_v11 = vadd.f32 %v2786_v34, %v2730_v57  ;;  %v2803_v6 = vadd.f32 %v2787_v16, %v2731_v50 }
 0x659   :  { %2826 = vmatpush.msrb.mxu2 %v2804_v36  ;;  %2867 = vmatpush.msra.mxu0 %v2805_v28 }
 0x65b   :  { %2827 = vmatpush.msrb.mxu2 %v2802_v11  ;;  %2868 = vmatpush.msra.mxu0 %v2803_v6 }
 0x65c   :  { %v2689_v53 = vpop.permute.xlu0 %2688 }
 0x65d   :  { %v2726_v37 = vmul.f32 %v2689_v53, %v7661_v3  ;;  %v2727_v58 = vmul.f32 %v2689_v53, %v7662_v56  ;;  %2828 = vmatpush.msrb.mxu2 %v2800_v19  ;;  %2869 = vmatpush.msra.mxu0 %v2801_v61  ;;  %v3604_v19 = vld [vmem:[%s7260_s0 + $0x8] sm:$0xff] }
 0x65f   :  { %v2798_v24 = vadd.f32 %v2782_v45, %v2726_v37  ;;  %v2799_v22 = vadd.f32 %v2783_v26, %v2727_v58 }
 0x661   :  { %2829 = vmatpush.msrb.mxu2 %v2798_v24  ;;  %2870 = vmatpush.msra.mxu0 %v2799_v22 }
 0x662   :  { %3339 = vmatmul.msk.f32.vlgmr.msrb.gmra.mxu2 %vm224_vm0, %v3596_v27  ;;  %3347 = vmatmul.msk.f32.vlgmr.msra.gmra.mxu0 %vm224_vm0, %v3596_v27 }
 0x66a   :  { %3340 = vmatmul.msk.f32.gmra.mxu2 %vm224_vm0, %v3597_v41  ;;  %3348 = vmatmul.msk.f32.gmra.mxu0 %vm224_vm0, %v3597_v41 }
 0x672   :  { %3341 = vmatmul.msk.f32.gmra.mxu2 %vm224_vm0, %v3598_v1  ;;  %3349 = vmatmul.msk.f32.gmra.mxu0 %vm224_vm0, %v3598_v1 }
 0x67a   :  { %3342 = vmatmul.msk.f32.gmra.mxu2 %vm224_vm0, %v3599_v0  ;;  %3350 = vmatmul.msk.f32.gmra.mxu0 %vm224_vm0, %v3599_v0 }
 0x682   :  { %3343 = vmatmul.msk.f32.gmra.mxu2 %vm224_vm0, %v3600_v59  ;;  %3351 = vmatmul.msk.f32.gmra.mxu0 %vm224_vm0, %v3600_v59 }
 0x68a   :  { %3344 = vmatmul.msk.f32.gmra.mxu2 %vm224_vm0, %v3601_v5  ;;  %3352 = vmatmul.msk.f32.gmra.mxu0 %vm224_vm0, %v3601_v5 }
 0x692   :  { %3345 = vmatmul.msk.f32.gmra.mxu2 %vm224_vm0, %v3602_v7  ;;  %3353 = vmatmul.msk.f32.gmra.mxu0 %vm224_vm0, %v3602_v7 }
 0x69a   :  { %3346 = vmatmul.msk.f32.gmra.mxu2 %vm224_vm0, %v3603_v40  ;;  %3354 = vmatmul.msk.f32.gmra.mxu0 %vm224_vm0, %v3603_v40 }
 0x6df   :  { %v2872_v23 = vpop.f32.mrf.mxu0 }
 0x6e0   :  { %v3356_v54 = vmul.f32 -1.442695, %v2872_v23 }
 0x6e2   :  { %3507 = vpow2.f32 %v3356_v54  ;;  %v3605_v54 = vld [vmem:[%s7260_s0] sm:$0xff] }
 0x6e5   :  { %v2831_v35 = vpop.f32.mrf.mxu2 }
 0x6e6   :  { %v3355_v60 = vmul.f32 -1.442695, %v2831_v35 }
 0x6e7   :  { %v2875_v46 = vpop.f32.mrf.mxu0 }
 0x6e8   :  { %v3508_v18 = vpop.eup %3507  ;;  %3509 = vpow2.f32 %v3355_v60  ;;  %v3358_v20 = vmul.f32 -1.442695, %v2875_v46 }
 0x6e9   :  { %v2945_v33 = vadd.f32 1.0, %v3508_v18 }
 0x6ea   :  { %3511 = vpow2.f32 %v3358_v20 }
 0x6eb   :  { %3513 = vrcp.f32 %v2945_v33  ;;  %v2984_v55 = vand.u32 2147483647, %v2945_v33  ;;  %v2986_v31 = vand.u32 2147483648, %v2945_v33  ;;  %vm2980_vm0 = vweird.f32 %v2945_v33 }
 0x6ed   :  { %v2834_v12 = vpop.f32.mrf.mxu2  ;;  %vm2985_vm8 = vcmp.eq.f32.partialorder %v2984_v55, 8.507059e+37  ;;  %v2987_v28 = vor.u32 1.1754944e-38, %v2986_v31 }
 0x6ee   :  { %v3510_v62 = vpop.eup %3509  ;;  %v3357_v29 = vmul.f32 -1.442695, %v2834_v12 }
 0x6ef   :  { %v2944_v42 = vadd.f32 1.0, %v3510_v62  ;;  %v2878_v43 = vpop.f32.mrf.mxu0 }
 0x6f0   :  { %v3512_v38 = vpop.eup %3511  ;;  %3515 = vpow2.f32 %v3357_v29  ;;  %v3360_v25 = vmul.f32 -1.442695, %v2878_v43  ;;  %v3606_v43 = vld [vmem:[%s7260_s0 + $0x18] sm:$0xff] }
 0x6f1   :  { %v3514_v49 = vpop.eup %3513  ;;  %3517 = vrcp.f32 %v2944_v42  ;;  %v7013_v48 = vadd.f32 1.0, %v3512_v38  ;;  %v2969_v15 = vand.u32 2147483647, %v2944_v42  ;;  %v2971_v36 = vand.u32 2147483648, %v2944_v42 }
 0x6f2   :  { %v2976_v21 = vmul.f32 %v3514_v49, %v2945_v33  ;;  %3519 = vpow2.f32 %v3360_v25  ;;  %vm2981_vm6 = vweird.f32 %v3514_v49  ;;  %vm2965_vm15 = vweird.f32 %v2944_v42 }
 0x6f3   :  { %3521 = vrcp.f32 %v7013_v48  ;;  %vm2982_vm10 = vmor %vm2980_vm0, %vm2981_vm6  ;;  %v3014_v11 = vand.u32 2147483647, %v7013_v48  ;;  %vm7027_vm11 = vcmp.eq.f32.partialorder %v2969_v15, 8.507059e+37  ;;  %v2972_v45 = vor.u32 1.1754944e-38, %v2971_v36  ;;  %v3607_v36 = vld [vmem:[%s7260_s0 + $0x10] sm:$0xff] }
 0x6f4   :  { %v2977_v10 = vsub.f32 1.0, %v2976_v21  ;;  %v3016_v51 = vand.u32 2147483648, %v7013_v48  ;;  %vm3010_vm1 = vweird.f32 %v7013_v48 }
 0x6f5   :  { %v2837_v17 = vpop.f32.mrf.mxu2  ;;  %vm7042_vm9 = vcmp.eq.f32.partialorder %v3014_v11, 8.507059e+37 }
 0x6f6   :  { %v3516_v44 = vpop.eup %3515  ;;  %v2978_v34 = vmul.f32 %v3514_v49, %v2977_v10  ;;  %v3359_v63 = vmul.f32 -1.442695, %v2837_v17  ;;  %v3017_v40 = vor.u32 1.1754944e-38, %v3016_v51 }
 0x6f7   :  { %v3518_v16 = vpop.eup %3517  ;;  %v7016_v30 = vadd.f32 1.0, %v3516_v44  ;;  %v2881_v57 = vpop.f32.mrf.mxu0 }
 0x6f8   :  { %v3520_v47 = vpop.eup %3519  ;;  %v2961_v50 = vmul.f32 %v3518_v16, %v2944_v42  ;;  %v2979_v14 = vadd.f32 %v3514_v49, %v2978_v34  ;;  %3523 = vpow2.f32 %v3359_v63  ;;  %v3362_v52 = vmul.f32 -1.442695, %v2881_v57 }
 0x6f9   :  { %3525 = vrcp.f32 %v7016_v30  ;;  %v3522_v32 = vpop.eup %3521  ;;  %v7019_v2 = vadd.f32 1.0, %v3520_v47  ;;  %vm2966_vm7 = vweird.f32 %v3518_v16  ;;  %v3001_v24 = vand.u32 2147483648, %v7016_v30 }
 0x6fa   :  { %v2962_v39 = vsub.f32 1.0, %v2961_v50  ;;  %v2983_v13 = vsel %vm2982_vm10, %v3514_v49, %v2979_v14  ;;  %v3006_v9 = vmul.f32 %v3522_v32, %v7013_v48  ;;  %vm2967_vm12 = vmor %vm2965_vm15, %vm2966_vm7  ;;  %vm3011_vm3 = vweird.f32 %v3522_v32 }
 0x6fb   :  { %v2988_v8 = vsel %vm2985_vm8, %v2987_v28, %v2983_v13  ;;  %3527 = vrcp.f32 %v7019_v2  ;;  %vm2995_vm13 = vweird.f32 %v7016_v30  ;;  %v2999_v46 = vand.u32 2147483647, %v7016_v30  ;;  %vm3012_vm14 = vmor %vm3010_vm1, %vm3011_vm3 }
 0x6fc   :  { %v2963_v6 = vmul.f32 %v3518_v16, %v2962_v39  ;;  %v3201_v61 = vmul.f32 %v3604_v19, %v2988_v8  ;;  %v3007_v53 = vsub.f32 1.0, %v3006_v9  ;;  %3529 = vpow2.f32 %v3362_v52  ;;  %v3608_v19 = vld [vmem:[%s7260_s0 + $0x28] sm:$0xff] }
 0x6fd   :  { %v2840_v26 = vpop.f32.mrf.mxu2  ;;  %v3002_v18 = vor.u32 1.1754944e-38, %v3001_v24  ;;  %vm3040_vm4 = vweird.f32 %v7019_v2  ;;  %v3044_v55 = vand.u32 2147483647, %v7019_v2  ;;  %v3046_v31 = vand.u32 2147483648, %v7019_v2 }
 0x6fe   :  { %v3524_v3 = vpop.eup %3523  ;;  %v2964_v37 = vadd.f32 %v3518_v16, %v2963_v6  ;;  %3217 = vst [vmem:[%s7269_s11 + $0x8] sm:$0xff] %v3201_v61  ;;  %v3361_v56 = vmul.f32 -1.442695, %v2840_v26  ;;  %v3008_v22 = vmul.f32 %v3522_v32, %v3007_v53  ;;  %vm3000_vm6 = vcmp.eq.f32.partialorder %v2999_v46, 8.507059e+37 }
 0x6ff   :  { %v3526_v58 = vpop.eup %3525  ;;  %v7039_v27 = vadd.f32 1.0, %v3524_v3  ;;  %v2884_v41 = vpop.f32.mrf.mxu0  ;;  %v3047_v39 = vor.u32 1.1754944e-38, %v3046_v31  ;;  %vm3045_vm10 = vcmp.eq.f32.partialorder %v3044_v55, 8.507059e+37  ;;  %v3610_v31 = vld [vmem:[%s7260_s0 + $0x38] sm:$0xff] }
 0x700   :  { %v2968_v1 = vsel %vm2967_vm12, %v3518_v16, %v2964_v37  ;;  %v2991_v0 = vmul.f32 %v3526_v58, %v7016_v30  ;;  %3531 = vpow2.f32 %v3361_v56  ;;  %v3009_v7 = vadd.f32 %v3522_v32, %v3008_v22 }
 0x701   :  { %v2973_v5 = vsel %vm7027_vm11, %v2972_v45, %v2968_v1  ;;  %3533 = vrcp.f32 %v7039_v27  ;;  %v3528_v23 = vpop.eup %3527  ;;  %v3364_v12 = vmul.f32 -1.442695, %v2884_v41  ;;  %vm2996_vm2 = vweird.f32 %v3526_v58 }
 0x702   :  { %v3200_v35 = vmul.f32 %v3605_v54, %v2973_v5  ;;  %v2992_v60 = vsub.f32 1.0, %v2991_v0  ;;  %v3013_v20 = vsel %vm3012_vm14, %v3522_v32, %v3009_v7  ;;  %v3036_v33 = vmul.f32 %v3528_v23, %v7019_v2  ;;  %v3530_v62 = vpop.eup %3529  ;;  %vm2997_vm0 = vmor %vm2995_vm13, %vm2996_vm2  ;;  %v3609_v7 = vld [vmem:[%s7260_s0 + $0x20] sm:$0xff] }
 0x703   :  { %v3018_v42 = vsel %vm7042_vm9, %v3017_v40, %v3013_v20  ;;  %v7067_v49 = vadd.f32 1.0, %v3530_v62  ;;  %3535 = vpow2.f32 %v3364_v12  ;;  %vm3041_vm5 = vweird.f32 %v3528_v23 }
 0x704   :  { %3216 = vst [vmem:[%s7269_s11] sm:$0xff] %v3200_v35  ;;  %v2993_v29 = vmul.f32 %v3526_v58, %v2992_v60  ;;  %v3203_v38 = vmul.f32 %v3606_v43, %v3018_v42  ;;  %v3037_v25 = vsub.f32 1.0, %v3036_v33  ;;  %v3029_v50 = vand.u32 2147483647, %v7039_v27  ;;  %vm3042_vm8 = vmor %vm3040_vm4, %vm3041_vm5 }
 0x705   :  { %v2843_v21 = vpop.f32.mrf.mxu2  ;;  %3537 = vrcp.f32 %v7067_v49  ;;  %v3031_v30 = vand.u32 2147483648, %v7039_v27  ;;  %vm3025_vm15 = vweird.f32 %v7039_v27  ;;  %v3074_v26 = vand.u32 2147483647, %v7067_v49 }
 0x706   :  { %v3532_v48 = vpop.eup %3531  ;;  %v2994_v10 = vadd.f32 %v3526_v58, %v2993_v29  ;;  %3219 = vst [vmem:[%s7269_s11 + $0x18] sm:$0xff] %v3203_v38  ;;  %v3038_v44 = vmul.f32 %v3528_v23, %v3037_v25  ;;  %v3363_v63 = vmul.f32 -1.442695, %v2843_v21  ;;  %vm7094_vm11 = vcmp.eq.f32.partialorder %v3029_v50, 8.507059e+37 }
 0x707   :  { %v3534_v17 = vpop.eup %3533  ;;  %v7077_v34 = vadd.f32 1.0, %v3532_v48  ;;  %v2887_v16 = vpop.f32.mrf.mxu0  ;;  %v3032_v2 = vor.u32 1.1754944e-38, %v3031_v30  ;;  %vm3070_vm12 = vweird.f32 %v7067_v49  ;;  %v3076_v5 = vand.u32 2147483648, %v7067_v49 }
 0x708   :  { %v2998_v57 = vsel %vm2997_vm0, %v3526_v58, %v2994_v10  ;;  %v3021_v47 = vmul.f32 %v3534_v17, %v7039_v27  ;;  %v3039_v15 = vadd.f32 %v3528_v23, %v3038_v44  ;;  %vm3026_vm7 = vweird.f32 %v3534_v17 }
 0x709   :  { %v3003_v14 = vsel %vm3000_vm6, %v3002_v18, %v2998_v57  ;;  %3539 = vrcp.f32 %v7077_v34  ;;  %v3536_v13 = vpop.eup %3535  ;;  %vm3027_vm1 = vmor %vm3025_vm15, %vm3026_vm7  ;;  %v3059_v56 = vand.u32 2147483647, %v7077_v34  ;;  %v3366_v58 = vmul.f32 -1.442695, %v2887_v16 }
 0x70a   :  { %v3202_v28 = vmul.f32 %v3607_v36, %v3003_v14  ;;  %v3022_v32 = vsub.f32 1.0, %v3021_v47  ;;  %v3043_v52 = vsel %vm3042_vm8, %v3528_v23, %v3039_v15  ;;  %3541 = vpow2.f32 %v3363_v63  ;;  %v3611_v14 = vld [vmem:[%s7260_s0 + $0x30] sm:$0xff] }
 0x70b   :  { %v3048_v9 = vsel %vm3045_vm10, %v3047_v39, %v3043_v52  ;;  %v3538_v11 = vpop.eup %3537  ;;  %v7101_v4 = vadd.f32 1.0, %v3536_v13  ;;  %v3061_v1 = vand.u32 2147483648, %v7077_v34  ;;  %vm3055_vm9 = vweird.f32 %v7077_v34 }
 0x70c   :  { %3218 = vst [vmem:[%s7269_s11 + $0x10] sm:$0xff] %v3202_v28  ;;  %v3023_v8 = vmul.f32 %v3534_v17, %v3022_v32  ;;  %v3205_v61 = vmul.f32 %v3608_v19, %v3048_v9  ;;  %v3066_v51 = vmul.f32 %v3538_v11, %v7067_v49  ;;  %vm3071_vm3 = vweird.f32 %v3538_v11 }
 0x70d   :  { %v2846_v45 = vpop.f32.mrf.mxu2  ;;  %3543 = vrcp.f32 %v7101_v4  ;;  %vm7128_vm14 = vcmp.eq.f32.partialorder %v3059_v56, 8.507059e+37  ;;  %vm3072_vm2 = vmor %vm3070_vm12, %vm3071_vm3  ;;  %vm3075_vm4 = vcmp.eq.f32.partialorder %v3074_v26, 8.507059e+37  ;;  %v3077_v12 = vor.u32 1.1754944e-38, %v3076_v5 }
 0x70e   :  { %v3024_v53 = vadd.f32 %v3534_v17, %v3023_v8  ;;  %v3365_v3 = vmul.f32 -1.442695, %v2846_v45  ;;  %3221 = vst [vmem:[%s7269_s11 + $0x28] sm:$0xff] %v3205_v61  ;;  %v3067_v0 = vsub.f32 1.0, %v3066_v51  ;;  %v3062_v42 = vor.u32 1.1754944e-38, %v3061_v1 }
 0x70f   :  { %v3540_v37 = vpop.eup %3539  ;;  %v2890_v24 = vpop.f32.mrf.mxu0  ;;  %vm3100_vm0 = vweird.f32 %v7101_v4  ;;  %v3104_v49 = vand.u32 2147483647, %v7101_v4  ;;  %v3106_v57 = vand.u32 2147483648, %v7101_v4 }
 0x710   :  { %v3028_v22 = vsel %vm3027_vm1, %v3534_v17, %v3024_v53  ;;  %v3051_v41 = vmul.f32 %v3540_v37, %v7077_v34  ;;  %v3542_v27 = vpop.eup %3541  ;;  %3545 = vpow2.f32 %v3365_v3  ;;  %v3068_v54 = vmul.f32 %v3538_v11, %v3067_v0 }
 0x711   :  { %v3033_v59 = vsel %vm7094_vm11, %v3032_v2, %v3028_v22  ;;  %v7121_v35 = vadd.f32 1.0, %v3542_v27  ;;  %3547 = vpow2.f32 %v3366_v58  ;;  %v3368_v60 = vmul.f32 -1.442695, %v2890_v24 }
 0x712   :  { %v3204_v40 = vmul.f32 %v3609_v7, %v3033_v59  ;;  %v3052_v23 = vsub.f32 1.0, %v3051_v41  ;;  %vm3056_vm13 = vweird.f32 %v3540_v37  ;;  %v3069_v18 = vadd.f32 %v3538_v11, %v3068_v54 }
 0x713   :  { %3549 = vrcp.f32 %v7121_v35  ;;  %v3544_v20 = vpop.eup %3543  ;;  %vm3057_vm5 = vmor %vm3055_vm9, %vm3056_vm13  ;;  %vm3105_vm10 = vcmp.eq.f32.partialorder %v3104_v49, 8.507059e+37  ;;  %v3107_v8 = vor.u32 1.1754944e-38, %v3106_v57  ;;  %v3089_v9 = vand.u32 2147483647, %v7121_v35 }
 0x714   :  { %3220 = vst [vmem:[%s7269_s11 + $0x20] sm:$0xff] %v3204_v40  ;;  %v3053_v46 = vmul.f32 %v3540_v37, %v3052_v23  ;;  %3551 = vpow2.f32 %v3368_v60  ;;  %v3073_v43 = vsel %vm3072_vm2, %v3538_v11, %v3069_v18  ;;  %v3096_v38 = vmul.f32 %v3544_v20, %v7101_v4  ;;  %v3612_v4 = vld [vmem:[%s7260_s0 + $0x48] sm:$0xff]  ;;  %v3613_v23 = vld [vmem:[%s7260_s0 + $0x40] sm:$0xff] }
 0x715   :  { %v2849_v62 = vpop.f32.mrf.mxu2  ;;  %v3078_v21 = vsel %vm3075_vm4, %v3077_v12, %v3073_v43  ;;  %vm3101_vm6 = vweird.f32 %v3544_v20  ;;  %v3091_v11 = vand.u32 2147483648, %v7121_v35  ;;  %vm3085_vm7 = vweird.f32 %v7121_v35 }
 0x716   :  { %v3054_v29 = vadd.f32 %v3540_v37, %v3053_v46  ;;  %v3546_v25 = vpop.eup %3545  ;;  %v3367_v48 = vmul.f32 -1.442695, %v2849_v62  ;;  %v3207_v17 = vmul.f32 %v3610_v31, %v3078_v21  ;;  %v3097_v44 = vsub.f32 1.0, %v3096_v38  ;;  %vm3102_vm8 = vmor %vm3100_vm0, %vm3101_vm6 }
 0x717   :  { %v2893_v10 = vpop.f32.mrf.mxu0  ;;  %v7144_v63 = vadd.f32 1.0, %v3546_v25  ;;  %v3548_v16 = vpop.eup %3547  ;;  %v3092_v24 = vor.u32 1.1754944e-38, %v3091_v11  ;;  %vm3090_vm1 = vcmp.eq.f32.partialorder %v3089_v9, 8.507059e+37 }
 0x718   :  { %v3058_v55 = vsel %vm3057_vm5, %v3540_v37, %v3054_v29  ;;  %3553 = vpow2.f32 %v3367_v48  ;;  %v3370_v47 = vmul.f32 -1.442695, %v2893_v10  ;;  %3223 = vst [vmem:[%s7269_s11 + $0x38] sm:$0xff] %v3207_v17  ;;  %v3098_v15 = vmul.f32 %v3544_v20, %v3097_v44 }
 0x719   :  { %v3063_v34 = vsel %vm7128_vm14, %v3062_v42, %v3058_v55  ;;  %v3550_v50 = vpop.eup %3549  ;;  %3555 = vrcp.f32 %v7144_v63  ;;  %v7160_v39 = vadd.f32 1.0, %v3548_v16  ;;  %v3119_v51 = vand.u32 2147483647, %v7144_v63  ;;  %v3614_v55 = vld [vmem:[%s7260_s0 + $0x50] sm:$0xff] }
 0x71a   :  { %v3206_v30 = vmul.f32 %v3611_v14, %v3063_v34  ;;  %v3552_v36 = vpop.eup %3551  ;;  %v3081_v28 = vmul.f32 %v3550_v50, %v7121_v35  ;;  %v3099_v32 = vadd.f32 %v3544_v20, %v3098_v15  ;;  %3557 = vpow2.f32 %v3370_v47 }
 0x71b   :  { %v7162_v13 = vadd.f32 1.0, %v3552_v36  ;;  %3559 = vrcp.f32 %v7160_v39  ;;  %vm3086_vm15 = vweird.f32 %v3550_v50  ;;  %v3121_v26 = vand.u32 2147483648, %v7144_v63 }
 0x71c   :  { %3222 = vst [vmem:[%s7269_s11 + $0x30] sm:$0xff] %v3206_v30  ;;  %v3082_v52 = vsub.f32 1.0, %v3081_v28  ;;  %v3103_v6 = vsel %vm3102_vm8, %v3544_v20, %v3099_v32  ;;  %vm3087_vm11 = vmor %vm3085_vm7, %vm3086_vm15  ;;  %vm3115_vm12 = vweird.f32 %v7144_v63  ;;  %vm7184_vm3 = vcmp.eq.f32.partialorder %v3119_v51, 8.507059e+37  ;;  %v3615_v32 = vld [vmem:[%s7260_s0 + $0x58] sm:$0xff] }
 0x71d   :  { %v3108_v61 = vsel %vm3105_vm10, %v3107_v8, %v3103_v6  ;;  %3561 = vrcp.f32 %v7162_v13  ;;  %v2852_v58 = vpop.f32.mrf.mxu2  ;;  %v3122_v5 = vor.u32 1.1754944e-38, %v3121_v26  ;;  %vm3130_vm13 = vweird.f32 %v7160_v39 }
 0x71e   :  { %v3554_v2 = vpop.eup %3553  ;;  %v3083_v19 = vmul.f32 %v3550_v50, %v3082_v52  ;;  %v3209_v53 = vmul.f32 %v3612_v4, %v3108_v61  ;;  %v3369_v7 = vmul.f32 -1.442695, %v2852_v58  ;;  %v3134_v46 = vand.u32 2147483647, %v7160_v39 }
 0x71f   :  { %v3556_v45 = vpop.eup %3555  ;;  %v7175_v3 = vadd.f32 1.0, %v3554_v2  ;;  %v3136_v18 = vand.u32 2147483648, %v7160_v39  ;;  %vm3160_vm2 = vweird.f32 %v7162_v13  ;;  %v3164_v43 = vand.u32 2147483647, %v7162_v13 }
 0x720   :  { %v3084_v37 = vadd.f32 %v3550_v50, %v3083_v19  ;;  %v3111_v56 = vmul.f32 %v3556_v45, %v7144_v63  ;;  %3225 = vst [vmem:[%s7269_s11 + $0x48] sm:$0xff] %v3209_v53  ;;  %v3558_v22 = vpop.eup %3557  ;;  %vm3116_vm9 = vweird.f32 %v3556_v45  ;;  %v3166_v38 = vand.u32 2147483648, %v7162_v13 }
 0x721   :  { %3563 = vrcp.f32 %v7175_v3  ;;  %v3560_v0 = vpop.eup %3559  ;;  %v7199_v62 = vadd.f32 1.0, %v3558_v22  ;;  %vm3117_vm14 = vmor %vm3115_vm12, %vm3116_vm9  ;;  %vm3135_vm0 = vcmp.eq.f32.partialorder %v3134_v46, 8.507059e+37  ;;  %v3137_v63 = vor.u32 1.1754944e-38, %v3136_v18 }
 0x722   :  { %v3088_v41 = vsel %vm3087_vm11, %v3550_v50, %v3084_v37  ;;  %v3112_v1 = vsub.f32 1.0, %v3111_v56  ;;  %v3126_v60 = vmul.f32 %v3560_v0, %v7160_v39  ;;  %3565 = vpow2.f32 %v3369_v7 }
 0x723   :  { %v3093_v27 = vsel %vm3090_vm1, %v3092_v24, %v3088_v41  ;;  %v3562_v40 = vpop.eup %3561  ;;  %vm3131_vm4 = vweird.f32 %v3560_v0  ;;  %3567 = vrcp.f32 %v7199_v62  ;;  %v3149_v16 = vand.u32 2147483647, %v7175_v3 }
 0x724   :  { %v3208_v54 = vmul.f32 %v3613_v23, %v3093_v27  ;;  %v3113_v35 = vmul.f32 %v3556_v45, %v3112_v1  ;;  %v3156_v20 = vmul.f32 %v3562_v40, %v7162_v13  ;;  %v3127_v12 = vsub.f32 1.0, %v3126_v60  ;;  %vm3132_vm6 = vmor %vm3130_vm13, %vm3131_vm4  ;;  %v3616_v13 = vld [vmem:[%s7260_s0 + $0x68] sm:$0xff]  ;;  %v3619_v60 = vld [vmem:[%s7260_s0 + $0x70] sm:$0xff] }
 0x725   :  { %vm3161_vm5 = vweird.f32 %v3562_v40  ;;  %v3151_v34 = vand.u32 2147483648, %v7175_v3  ;;  %v3167_v30 = vor.u32 1.1754944e-38, %v3166_v38  ;;  %vm3165_vm15 = vcmp.eq.f32.partialorder %v3164_v43, 8.507059e+37 }
 0x726   :  { %3224 = vst [vmem:[%s7269_s11 + $0x40] sm:$0xff] %v3208_v54  ;;  %v3114_v33 = vadd.f32 %v3556_v45, %v3113_v35  ;;  %v3157_v42 = vsub.f32 1.0, %v3156_v20  ;;  %v3128_v21 = vmul.f32 %v3560_v0, %v3127_v12  ;;  %vm3162_vm10 = vmor %vm3160_vm2, %vm3161_vm5  ;;  %vm3145_vm7 = vweird.f32 %v7175_v3 }
 0x727   :  { %v3564_v29 = vpop.eup %3563  ;;  %v3152_v11 = vor.u32 1.1754944e-38, %v3151_v34  ;;  %vm3150_vm1 = vcmp.eq.f32.partialorder %v3149_v16, 8.507059e+37  ;;  %v3196_v51 = vand.u32 2147483648, %v7199_v62  ;;  %vm3190_vm12 = vweird.f32 %v7199_v62 }
 0x728   :  { %v3118_v25 = vsel %vm3117_vm14, %v3556_v45, %v3114_v33  ;;  %v3141_v49 = vmul.f32 %v3564_v29, %v7175_v3  ;;  %v3158_v10 = vmul.f32 %v3562_v40, %v3157_v42  ;;  %v3129_v17 = vadd.f32 %v3560_v0, %v3128_v21  ;;  %v3566_v47 = vpop.eup %3565  ;;  %v3617_v45 = vld [vmem:[%s7260_s0 + $0x60] sm:$0xff] }
 0x729   :  { %v3123_v48 = vsel %vm7184_vm3, %v3122_v5, %v3118_v25  ;;  %vm3146_vm8 = vweird.f32 %v3564_v29  ;;  %v2958_v28 = vadd.f32 1.0, %v3566_v47  ;;  %v3568_v9 = vpop.eup %3567  ;;  %v3194_v3 = vand.u32 2147483647, %v7199_v62  ;;  %v3618_v5 = vld [vmem:[%s7260_s0 + $0x78] sm:$0xff] }
 0x72a   :  { %v3210_v31 = vmul.f32 %v3614_v55, %v3123_v48  ;;  %v3142_v44 = vsub.f32 1.0, %v3141_v49  ;;  %v3159_v57 = vadd.f32 %v3562_v40, %v3158_v10  ;;  %v3133_v50 = vsel %vm3132_vm6, %v3560_v0, %v3129_v17  ;;  %vm3147_vm11 = vmor %vm3145_vm7, %vm3146_vm8 }
 0x72b   :  { %v3138_v15 = vsel %vm3135_vm0, %v3137_v63, %v3133_v50  ;;  %3569 = vrcp.f32 %v2958_v28  ;;  %v3186_v19 = vmul.f32 %v3568_v9, %v7199_v62  ;;  %vm3191_vm3 = vweird.f32 %v3568_v9 }
 0x72c   :  { %3226 = vst [vmem:[%s7269_s11 + $0x50] sm:$0xff] %v3210_v31  ;;  %v3143_v14 = vmul.f32 %v3564_v29, %v3142_v44  ;;  %v3163_v36 = vsel %vm3162_vm10, %v3562_v40, %v3159_v57  ;;  %v3211_v39 = vmul.f32 %v3615_v32, %v3138_v15  ;;  %vm3192_vm9 = vmor %vm3190_vm12, %vm3191_vm3  ;;  %v3197_v24 = vor.u32 1.1754944e-38, %v3196_v51 }
 0x72d   :  { %v3168_v8 = vsel %vm3165_vm15, %v3167_v30, %v3163_v36  ;;  %v3187_v53 = vsub.f32 1.0, %v3186_v19  ;;  %vm3195_vm13 = vcmp.eq.f32.partialorder %v3194_v3, 8.507059e+37  ;;  %v3181_v1 = vand.u32 2147483648, %v2958_v28 }
 0x72e   :  { %v3144_v52 = vadd.f32 %v3564_v29, %v3143_v14  ;;  %v3213_v6 = vmul.f32 %v3616_v13, %v3168_v8  ;;  %3227 = vst [vmem:[%s7269_s11 + $0x58] sm:$0xff] %v3211_v39  ;;  %v3179_v59 = vand.u32 2147483647, %v2958_v28  ;;  %vm3175_vm2 = vweird.f32 %v2958_v28 }
 0x72f   :  { %v3188_v26 = vmul.f32 %v3568_v9, %v3187_v53  ;;  %v3182_v23 = vor.u32 1.1754944e-38, %v3181_v1 }
 0x730   :  { %v3148_v2 = vsel %vm3147_vm11, %v3564_v29, %v3144_v52  ;;  %3229 = vst [vmem:[%s7269_s11 + $0x68] sm:$0xff] %v3213_v6  ;;  %vm3180_vm5 = vcmp.eq.f32.partialorder %v3179_v59, 8.507059e+37 }
 0x731   :  { %v3153_v61 = vsel %vm3150_vm1, %v3152_v11, %v3148_v2  ;;  %v3570_v37 = vpop.eup %3569  ;;  %v3189_v58 = vadd.f32 %v3568_v9, %v3188_v26 }
 0x732   :  { %v3212_v4 = vmul.f32 %v3617_v45, %v3153_v61  ;;  %v3171_v56 = vmul.f32 %v3570_v37, %v2958_v28  ;;  %vm3176_vm14 = vweird.f32 %v3570_v37 }
 0x733   :  { %v3193_v41 = vsel %vm3192_vm9, %v3568_v9, %v3189_v58  ;;  %vm3177_vm4 = vmor %vm3175_vm2, %vm3176_vm14 }
 0x734   :  { %3228 = vst [vmem:[%s7269_s11 + $0x60] sm:$0xff] %v3212_v4  ;;  %v3172_v22 = vsub.f32 1.0, %v3171_v56  ;;  %v3198_v0 = vsel %vm3195_vm13, %v3197_v24, %v3193_v41 }
 0x735   :  { %v3215_v7 = vmul.f32 %v3618_v5, %v3198_v0 }
 0x736   :  { %v3173_v27 = vmul.f32 %v3570_v37, %v3172_v22 }
 0x737   :  { %3231 = vst [vmem:[%s7269_s11 + $0x78] sm:$0xff] %v3215_v7 }
 0x738   :  { %v3174_v40 = vadd.f32 %v3570_v37, %v3173_v27 }
 0x73a   :  { %v3178_v54 = vsel %vm3177_vm4, %v3570_v37, %v3174_v40 }
 0x73b   :  { %v3183_v35 = vsel %vm3180_vm5, %v3182_v23, %v3178_v54 }
 0x73c   :  { %v3214_v46 = vmul.f32 %v3619_v60, %v3183_v35 }
 0x73e   :  { %3230 = vst [vmem:[%s7269_s11 + $0x70] sm:$0xff] %v3214_v46 }

</bundles_post_ra>
